<compile_context>
chip_gen: v7x
topology: tpu7x:2x2x1
jax: 0.10.0
libtpu: 0.0.40
codegen_flags: <defaults>
</compile_context>

<pallas_src>
import functools

import jax
import jax.numpy as jnp
from jax import lax
from jax.experimental import pallas as pl
from jax.experimental.pallas import tpu as pltpu


def _phase_conv_stats_kernel(xm_ref, xh_ref, w_ref, b_ref,
                             y_ref, s_ref, q_ref, slab_ref,
                             *, th, w_in, cin, cp, cout_p):
    # xm_ref: (1, th, w_in+2, cin)  bf16  main rows of the zero-padded input
    # xh_ref: (1, 2,  w_in+2, cin)  bf16  2-row bottom halo of the same array
    # w_ref:  (4, 4, cin, cp)       bf16  per-phase folded 2x2 conv weights
    # b_ref:  (1, cp)               f32   conv bias (padded to cp)
    # y_ref:  (1, 4, cout_p, rows)  bf16  channel-major conv output per phase
    # s_ref:  (1, 4, 1, cp)         f32   per-(tile, phase) channel sums
    # q_ref:  (1, 4, 1, cp)         f32   per-(tile, phase) centered sum-squares
    # slab_ref: VMEM (th+2, w_in+2, cin) bf16 scratch (main rows + halo)
    slab_ref[0:th] = xm_ref[0]
    slab_ref[th:th + 2] = xh_ref[0]

    rows = th * w_in
    bias = b_ref[...]
    inv_rows = 1.0 / rows

    for p in range(4):                              # static unroll: 4 phases
        py, px = divmod(p, 2)
        acc = jnp.zeros((rows, cp), jnp.float32)
        for tap, (ky, kx) in enumerate(((0, 0), (0, 1), (1, 0), (1, 1))):
            win = slab_ref[py + ky:py + ky + th, px + kx:px + kx + w_in, :]
            acc = acc + jnp.dot(win.reshape(rows, cin), w_ref[p, tap],
                                preferred_element_type=jnp.float32)
        acc = acc + bias

        acc_bf = acc.astype(jnp.bfloat16)           # exactly what BN will see
        accr = acc_bf.astype(jnp.float32)

        # channel-major store: slice real channels first, then transpose (XLU).
        y_ref[0, p] = jnp.transpose(accr[:, 0:cout_p], (1, 0)).astype(jnp.bfloat16)

        # per-(tile, phase) partial statistics (parallel-variance form).
        s = jnp.sum(accr, axis=0, keepdims=True)    # (1, cp)
        d = accr - s * inv_rows
        s_ref[0, p] = s
        q_ref[0, p] = jnp.sum(d * d, axis=0, keepdims=True)


def _bn_relu_kernel(y_ref, scale_ref, shift_ref, o_ref, *, cout):
    # y_ref: (1, 4, cout_p, rows) bf16; scale/shift: (cout_p, 1) f32
    # o_ref: (1, 1, 4, cout, rows) f32  (phase-major, channel-major)
    sc = scale_ref[...]
    sh = shift_ref[...]
    for p in range(4):
        z = y_ref[0, p].astype(jnp.float32) * sc + sh        # (cout_p, rows)
        o_ref[0, 0, p] = jnp.maximum(z, 0.0)[0:cout, :]      # drop channel pad


def upconv_forward(x_nchw, params, *, eps=1e-5, tile_in_rows=None):
    w_hwio, b, gamma, beta = params
    n, cin, h_in, w_in = x_nchw.shape
    cout = w_hwio.shape[-1]
    h, w = 2 * h_in, 2 * w_in
    cp = ((cout + 127) // 128) * 128       # MXU N dim (lane dense)
    cout_p = ((cout + 7) // 8) * 8         # HBM storage channels (sublane dense)

    th = h_in if tile_in_rows is None else tile_in_rows   # input rows per step
    assert h_in % th == 0 and th % 2 == 0, "tile_in_rows must be even and divide H_in"
    t = h_in // th
    rows = th * w_in

    # ---- layout glue (tiny): NCHW -> NHWC bf16 + 1-pixel zero pad.  No upsample! ----
    x_nhwc = jnp.transpose(x_nchw, (0, 2, 3, 1)).astype(jnp.bfloat16)
    x_pad = jnp.pad(x_nhwc, ((0, 0), (1, 1), (1, 1), (0, 0)))   # (n, h_in+2, w_in+2, cin)

    # ---- sub-pixel phase decomposition of (2x nearest upsample ∘ 3x3 conv) ----
    # Output pixel (2i+py, 2j+px) = 2x2 conv of x_pad at window start (i+py, j+px)
    # with row/col-folded weights.
    def _fold_rows(wk, p):     # (3,3,cin,cout) -> (2,3,cin,cout)
        return (jnp.stack([wk[0], wk[1] + wk[2]], 0) if p == 0
                else jnp.stack([wk[0] + wk[1], wk[2]], 0))

    def _fold_cols(wk, p):     # (2,3,cin,cout) -> (2,2,cin,cout)
        return (jnp.stack([wk[:, 0], wk[:, 1] + wk[:, 2]], 1) if p == 0
                else jnp.stack([wk[:, 0] + wk[:, 1], wk[:, 2]], 1))

    w_phase = jnp.stack([_fold_cols(_fold_rows(w_hwio, py), px)
                         for py in (0, 1) for px in (0, 1)], 0)   # (4,2,2,cin,cout)
    w_phase = jnp.pad(w_phase, ((0, 0), (0, 0), (0, 0), (0, 0), (0, cp - cout)))
    w_taps = w_phase.reshape(4, 4, cin, cp).astype(jnp.bfloat16)  # taps in (ky,kx) order
    b_p = jnp.pad(b, (0, cp - cout)).reshape(1, cp).astype(jnp.float32)

    # ---- kernel 1: per-phase 2x2 conv (MXU) + bias + per-tile BN partials ----
    kern1 = functools.partial(_phase_conv_stats_kernel,
                              th=th, w_in=w_in, cin=cin, cp=cp, cout_p=cout_p)
    y, s_part, q_part = pl.pallas_call(
        kern1,
        out_shape=(
            jax.ShapeDtypeStruct((n, t * 4, cout_p, rows), jnp.bfloat16),
            jax.ShapeDtypeStruct((n, t * 4, 1, cp), jnp.float32),
            jax.ShapeDtypeStruct((n, t * 4, 1, cp), jnp.float32),
        ),
        grid_spec=pltpu.PrefetchScalarGridSpec(
            num_scalar_prefetch=0,
            grid=(n, t),
            in_specs=[
                # main th-row slab of the padded original input
                pl.BlockSpec((1, th, w_in + 2, cin), lambda bi, ti: (bi, ti, 0, 0)),
                # 2-row bottom halo (next rows of the same array, 2-row blocks)
                pl.BlockSpec((1, 2, w_in + 2, cin),
                             lambda bi, ti: (bi, (ti + 1) * (th // 2), 0, 0)),
                # constant weight / bias blocks (index_map constant across grid)
                pl.BlockSpec((4, 4, cin, cp), lambda bi, ti: (0, 0, 0, 0)),
                pl.BlockSpec((1, cp), lambda bi, ti: (0, 0)),
            ],
            out_specs=[
                pl.BlockSpec((1, 4, cout_p, rows), lambda bi, ti: (bi, ti, 0, 0)),
                pl.BlockSpec((1, 4, 1, cp), lambda bi, ti: (bi, ti, 0, 0)),
                pl.BlockSpec((1, 4, 1, cp), lambda bi, ti: (bi, ti, 0, 0)),
            ],
            scratch_shapes=[pltpu.VMEM((th + 2, w_in + 2, cin), jnp.bfloat16)],
        ),
        compiler_params=pltpu.CompilerParams(
            dimension_semantics=("parallel", "parallel")),   # no carried state
    )(x_pad, x_pad, w_taps, b_p)

    # ---- wrapper: combine per-(tile,phase) partials (parallel variance), fold BN ----
    count = n * h * w
    s_all = s_part.reshape(n * t * 4, cp)
    q_all = q_part.reshape(n * t * 4, cp)
    mean = jnp.sum(s_all, axis=0) / count
    grp_mean = s_all / rows
    var = (jnp.sum(q_all, axis=0)
           + rows * jnp.sum((grp_mean - mean) ** 2, axis=0)) / count   # biased
    gamma_cp = jnp.pad(gamma, (0, cp - cout)).astype(jnp.float32)
    beta_cp = jnp.pad(beta, (0, cp - cout)).astype(jnp.float32)
    scale = gamma_cp * lax.rsqrt(var + eps)
    shift = beta_cp - mean * scale
    scale2 = scale[:cout_p].reshape(cout_p, 1)
    shift2 = shift[:cout_p].reshape(cout_p, 1)

    # ---- kernel 2: fused BN affine + ReLU, channel-major lane-dense stores ----
    kern2 = functools.partial(_bn_relu_kernel, cout=cout)
    o5 = pl.pallas_call(
        kern2,
        out_shape=jax.ShapeDtypeStruct((n, t, 4, cout, rows), jnp.float32),
        grid_spec=pltpu.PrefetchScalarGridSpec(
            num_scalar_prefetch=0,
            grid=(n, t),
            in_specs=[
                pl.BlockSpec((1, 4, cout_p, rows), lambda bi, ti: (bi, ti, 0, 0)),
                pl.BlockSpec((cout_p, 1), lambda bi, ti: (0, 0)),
                pl.BlockSpec((cout_p, 1), lambda bi, ti: (0, 0)),
            ],
            out_specs=pl.BlockSpec((1, 1, 4, cout, rows),
                                   lambda bi, ti: (bi, ti, 0, 0, 0)),
        ),
        compiler_params=pltpu.CompilerParams(
            dimension_semantics=("parallel", "parallel")),
    )(y, scale2, shift2)

    # ---- phase interleave: (n, ti, py, px, c, i, j) -> NCHW (one cheap XLA pass) ----
    out = o5.reshape(n, t, 2, 2, cout, th, w_in)
    out = jnp.transpose(out, (0, 4, 1, 5, 2, 6, 3)).reshape(n, cout, h, w)
    return out


def upconv_reference(x_nchw, params, eps=1e-5):
    """Pure-JAX f32 reference matching the PyTorch forward (training-mode BN)."""
    w_hwio, b, gamma, beta = params
    x_up = jnp.repeat(jnp.repeat(x_nchw, 2, axis=2), 2, axis=3)
    x_nhwc = jnp.transpose(x_up, (0, 2, 3, 1)).astype(jnp.float32)
    y = lax.conv_general_dilated(
        x_nhwc, w_hwio, window_strides=(1, 1), padding="SAME",
        dimension_numbers=("NHWC", "HWIO", "NHWC")) + b
    mean = jnp.mean(y, axis=(0, 1, 2))
    var = jnp.var(y, axis=(0, 1, 2))   # biased, as BN uses to normalize
    yn = (y - mean) / jnp.sqrt(var + eps) * gamma + beta
    return jnp.transpose(jnp.maximum(yn, 0.0), (0, 3, 1, 2))


if __name__ == "__main__":
    key = jax.random.PRNGKey(0)
    k1, k2, k3, k4, k5 = jax.random.split(key, 5)

    N, Cin, Cout, H_in, W_in = 2, 4, 8, 16, 16        # output spatial = 32x32
    x = jax.random.normal(k1, (N, Cin, H_in, W_in), jnp.float32)

    # Conv2d(Cin, Cout, 3, padding=1, bias=True) weights in HWIO layout; BN affine.
    w = 0.1 * jax.random.normal(k2, (3, 3, Cin, Cout), jnp.float32)
    b = 0.1 * jax.random.normal(k3, (Cout,), jnp.float32)
    gamma = 1.0 + 0.1 * jax.random.normal(k4, (Cout,), jnp.float32)
    beta = 0.1 * jax.random.normal(k5, (Cout,), jnp.float32)
    params = (w, b, gamma, beta)

    fwd = jax.jit(functools.partial(upconv_forward, tile_in_rows=8))  # T=2 tiles
    out = jax.block_until_ready(fwd(x, params))
    ref = upconv_reference(x, params)

    assert out.shape == (N, Cout, 2 * H_in, 2 * W_in), out.shape
    # bf16 conv operands + bf16 intermediate -> compare at bf16-level tolerance.
    err = float(jnp.max(jnp.abs(out - ref)))
    assert jnp.allclose(out, ref, atol=3e-2, rtol=3e-2), err
    print("KERNEL_OK")
</pallas_src>

<mosaic_0001>
module attributes {stable_mosaic.version = 11 : i64} {
  func.func @_phase_conv_stats_kernel(%arg0: i32, %arg1: i32, %arg2: memref<1x8x18x4xbf16, #tpu.memory_space<vmem>>, %arg3: memref<1x2x18x4xbf16, #tpu.memory_space<vmem>>, %arg4: memref<4x4x4x128xbf16, #tpu.memory_space<vmem>>, %arg5: memref<1x128xf32, #tpu.memory_space<vmem>>, %arg6: memref<1x4x8x128xbf16, #tpu.memory_space<vmem>>, %arg7: memref<1x4x1x128xf32, #tpu.memory_space<vmem>>, %arg8: memref<1x4x1x128xf32, #tpu.memory_space<vmem>>, %arg9: memref<10x18x4xbf16, #tpu.memory_space<vmem>>) attributes {dimension_semantics = [#tpu.dimension_semantics<parallel>, #tpu.dimension_semantics<parallel>], iteration_bounds = array<i64: 2, 2>, scalar_prefetch = 0 : i64, scratch_operands = 1 : i64, tpu.core_type = #tpu.core_type<tc>, window_params = [{transform_indices = @transform_0, window_bounds = array<i64: 1, 8, 18, 4>}, {transform_indices = @transform_1, window_bounds = array<i64: 1, 2, 18, 4>}, {pipeline_mode = #tpu.pipeline_mode<synchronous>, transform_indices = @transform_2, window_bounds = array<i64: 4, 4, 4, 128>}, {pipeline_mode = #tpu.pipeline_mode<synchronous>, transform_indices = @transform_3, window_bounds = array<i64: 1, 128>}, {transform_indices = @transform_4, window_bounds = array<i64: 1, 4, 8, 128>}, {transform_indices = @transform_5, window_bounds = array<i64: 1, 4, 1, 128>}, {transform_indices = @transform_6, window_bounds = array<i64: 1, 4, 1, 128>}]} {
    %c0 = arith.constant 0 : index
    %c0_0 = arith.constant 0 : index
    %c0_1 = arith.constant 0 : index
    %c0_2 = arith.constant 0 : index
    %0 = vector.load %arg2[%c0, %c0_0, %c0_1, %c0_2] : memref<1x8x18x4xbf16, #tpu.memory_space<vmem>>, vector<1x8x18x4xbf16>
    %1 = vector.shape_cast %0 : vector<1x8x18x4xbf16> to vector<8x18x4xbf16>
    %c0_3 = arith.constant 0 : index
    %c0_4 = arith.constant 0 : index
    %c0_5 = arith.constant 0 : index
    %2 = vector.load %arg9[%c0_3, %c0_4, %c0_5] : memref<10x18x4xbf16, #tpu.memory_space<vmem>>, vector<8x18x4xbf16>
    tpu.vector_store %arg9[%c0_3, %c0_4, %c0_5], %1 {strides = array<i32>} : memref<10x18x4xbf16, #tpu.memory_space<vmem>>, vector<8x18x4xbf16>,
    %c0_6 = arith.constant 0 : index
    %c0_7 = arith.constant 0 : index
    %c0_8 = arith.constant 0 : index
    %c0_9 = arith.constant 0 : index
    %3 = vector.load %arg3[%c0_6, %c0_7, %c0_8, %c0_9] : memref<1x2x18x4xbf16, #tpu.memory_space<vmem>>, vector<1x2x18x4xbf16>
    %4 = vector.shape_cast %3 : vector<1x2x18x4xbf16> to vector<2x18x4xbf16>
    %c8 = arith.constant 8 : index
    %c0_10 = arith.constant 0 : index
    %c0_11 = arith.constant 0 : index
    %5 = vector.load %arg9[%c8, %c0_10, %c0_11] : memref<10x18x4xbf16, #tpu.memory_space<vmem>>, vector<2x18x4xbf16>
    tpu.vector_store %arg9[%c8, %c0_10, %c0_11], %4 {strides = array<i32>} : memref<10x18x4xbf16, #tpu.memory_space<vmem>>, vector<2x18x4xbf16>,
    %c0_12 = arith.constant 0 : index
    %c0_13 = arith.constant 0 : index
    %6 = vector.load %arg5[%c0_12, %c0_13] : memref<1x128xf32, #tpu.memory_space<vmem>>, vector<1x128xf32>
    %cst = arith.constant 0.000000e+00 : f32
    %7 = vector.broadcast %cst : f32 to vector<128x128xf32>
    %c0_14 = arith.constant 0 : index
    %c0_15 = arith.constant 0 : index
    %c0_16 = arith.constant 0 : index
    %8 = vector.load %arg9[%c0_14, %c0_15, %c0_16] : memref<10x18x4xbf16, #tpu.memory_space<vmem>>, vector<8x16x4xbf16>
    %9 = vector.shape_cast %8 : vector<8x16x4xbf16> to vector<128x4xbf16>
    %c0_17 = arith.constant 0 : index
    %c0_18 = arith.constant 0 : index
    %c0_19 = arith.constant 0 : index
    %c0_20 = arith.constant 0 : index
    %10 = vector.load %arg4[%c0_17, %c0_18, %c0_19, %c0_20] : memref<4x4x4x128xbf16, #tpu.memory_space<vmem>>, vector<1x1x4x128xbf16>
    %11 = vector.shape_cast %10 : vector<1x1x4x128xbf16> to vector<4x128xbf16>
    %cst_21 = arith.constant dense<0.000000e+00> : vector<128x128xf32>
    %12 = tpu.matmul %9, %11, %cst_21 {dimension_numbers = #tpu.dot_dimension_numbers<[1], [0], [0], [1], [0, 0, 1, 1], [], []>} : vector<128x4xbf16>, vector<4x128xbf16>, vector<128x128xf32> -> vector<128x128xf32>
    %13 = arith.addf %7, %12 : vector<128x128xf32>
    %c0_22 = arith.constant 0 : index
    %c1 = arith.constant 1 : index
    %c0_23 = arith.constant 0 : index
    %14 = vector.load %arg9[%c0_22, %c1, %c0_23] : memref<10x18x4xbf16, #tpu.memory_space<vmem>>, vector<8x16x4xbf16>
    %15 = vector.shape_cast %14 : vector<8x16x4xbf16> to vector<128x4xbf16>
    %c0_24 = arith.constant 0 : index
    %c1_25 = arith.constant 1 : index
    %c0_26 = arith.constant 0 : index
    %c0_27 = arith.constant 0 : index
    %16 = vector.load %arg4[%c0_24, %c1_25, %c0_26, %c0_27] : memref<4x4x4x128xbf16, #tpu.memory_space<vmem>>, vector<1x1x4x128xbf16>
    %17 = vector.shape_cast %16 : vector<1x1x4x128xbf16> to vector<4x128xbf16>
    %cst_28 = arith.constant dense<0.000000e+00> : vector<128x128xf32>
    %18 = tpu.matmul %15, %17, %cst_28 {dimension_numbers = #tpu.dot_dimension_numbers<[1], [0], [0], [1], [0, 0, 1, 1], [], []>} : vector<128x4xbf16>, vector<4x128xbf16>, vector<128x128xf32> -> vector<128x128xf32>
    %19 = arith.addf %13, %18 : vector<128x128xf32>
    %c1_29 = arith.constant 1 : index
    %c0_30 = arith.constant 0 : index
    %c0_31 = arith.constant 0 : index
    %20 = vector.load %arg9[%c1_29, %c0_30, %c0_31] : memref<10x18x4xbf16, #tpu.memory_space<vmem>>, vector<8x16x4xbf16>
    %21 = vector.shape_cast %20 : vector<8x16x4xbf16> to vector<128x4xbf16>
    %c0_32 = arith.constant 0 : index
    %c2 = arith.constant 2 : index
    %c0_33 = arith.constant 0 : index
    %c0_34 = arith.constant 0 : index
    %22 = vector.load %arg4[%c0_32, %c2, %c0_33, %c0_34] : memref<4x4x4x128xbf16, #tpu.memory_space<vmem>>, vector<1x1x4x128xbf16>
    %23 = vector.shape_cast %22 : vector<1x1x4x128xbf16> to vector<4x128xbf16>
    %cst_35 = arith.constant dense<0.000000e+00> : vector<128x128xf32>
    %24 = tpu.matmul %21, %23, %cst_35 {dimension_numbers = #tpu.dot_dimension_numbers<[1], [0], [0], [1], [0, 0, 1, 1], [], []>} : vector<128x4xbf16>, vector<4x128xbf16>, vector<128x128xf32> -> vector<128x128xf32>
    %25 = arith.addf %19, %24 : vector<128x128xf32>
    %c1_36 = arith.constant 1 : index
    %c1_37 = arith.constant 1 : index
    %c0_38 = arith.constant 0 : index
    %26 = vector.load %arg9[%c1_36, %c1_37, %c0_38] : memref<10x18x4xbf16, #tpu.memory_space<vmem>>, vector<8x16x4xbf16>
    %27 = vector.shape_cast %26 : vector<8x16x4xbf16> to vector<128x4xbf16>
    %c0_39 = arith.constant 0 : index
    %c3 = arith.constant 3 : index
    %c0_40 = arith.constant 0 : index
    %c0_41 = arith.constant 0 : index
    %28 = vector.load %arg4[%c0_39, %c3, %c0_40, %c0_41] : memref<4x4x4x128xbf16, #tpu.memory_space<vmem>>, vector<1x1x4x128xbf16>
    %29 = vector.shape_cast %28 : vector<1x1x4x128xbf16> to vector<4x128xbf16>
    %cst_42 = arith.constant dense<0.000000e+00> : vector<128x128xf32>
    %30 = tpu.matmul %27, %29, %cst_42 {dimension_numbers = #tpu.dot_dimension_numbers<[1], [0], [0], [1], [0, 0, 1, 1], [], []>} : vector<128x4xbf16>, vector<4x128xbf16>, vector<128x128xf32> -> vector<128x128xf32>
    %31 = arith.addf %25, %30 : vector<128x128xf32>
    %32 = vector.broadcast %6 : vector<1x128xf32> to vector<128x128xf32>
    %33 = arith.addf %31, %32 : vector<128x128xf32>
    %34 = arith.truncf %33 : vector<128x128xf32> to vector<128x128xbf16>
    %35 = arith.extf %34 : vector<128x128xbf16> to vector<128x128xf32>
    %36 = vector.extract_strided_slice %35 {offsets = [0, 0], sizes = [128, 8], strides = [1, 1]} : vector<128x128xf32> to vector<128x8xf32>
    %37 = tpu.transpose %36, [1, 0] : vector<128x8xf32> -> vector<8x128xf32>
    %38 = arith.truncf %37 : vector<8x128xf32> to vector<8x128xbf16>
    %c0_43 = arith.constant 0 : index
    %c0_44 = arith.constant 0 : index
    %c0_45 = arith.constant 0 : index
    %c0_46 = arith.constant 0 : index
    %39 = vector.load %arg6[%c0_43, %c0_44, %c0_45, %c0_46] : memref<1x4x8x128xbf16, #tpu.memory_space<vmem>>, vector<1x1x8x128xbf16>
    %40 = vector.shape_cast %39 : vector<1x1x8x128xbf16> to vector<8x128xbf16>
    %41 = vector.shape_cast %38 : vector<8x128xbf16> to vector<1x1x8x128xbf16>
    tpu.vector_store %arg6[%c0_43, %c0_44, %c0_45, %c0_46], %41 {strides = array<i32>} : memref<1x4x8x128xbf16, #tpu.memory_space<vmem>>, vector<1x1x8x128xbf16>,
    %cst_47 = arith.constant dense<0.000000e+00> : vector<128xf32>
    %42 = vector.multi_reduction <add>, %35, %cst_47 [0] : vector<128x128xf32> to vector<128xf32>
    %43 = vector.shape_cast %42 : vector<128xf32> to vector<1x128xf32>
    %cst_48 = arith.constant 7.812500e-03 : f32
    %44 = vector.broadcast %cst_48 : f32 to vector<1x128xf32>
    %45 = arith.mulf %43, %44 : vector<1x128xf32>
    %46 = vector.broadcast %45 : vector<1x128xf32> to vector<128x128xf32>
    %47 = arith.subf %35, %46 : vector<128x128xf32>
    %c0_49 = arith.constant 0 : index
    %c0_50 = arith.constant 0 : index
    %c0_51 = arith.constant 0 : index
    %c0_52 = arith.constant 0 : index
    %48 = vector.load %arg7[%c0_49, %c0_50, %c0_51, %c0_52] : memref<1x4x1x128xf32, #tpu.memory_space<vmem>>, vector<1x1x1x128xf32>
    %49 = vector.shape_cast %48 : vector<1x1x1x128xf32> to vector<1x128xf32>
    %50 = vector.shape_cast %43 : vector<1x128xf32> to vector<1x1x1x128xf32>
    tpu.vector_store %arg7[%c0_49, %c0_50, %c0_51, %c0_52], %50 {strides = array<i32>} : memref<1x4x1x128xf32, #tpu.memory_space<vmem>>, vector<1x1x1x128xf32>,
    %51 = arith.mulf %47, %47 : vector<128x128xf32>
    %cst_53 = arith.constant dense<0.000000e+00> : vector<128xf32>
    %52 = vector.multi_reduction <add>, %51, %cst_53 [0] : vector<128x128xf32> to vector<128xf32>
    %53 = vector.shape_cast %52 : vector<128xf32> to vector<1x128xf32>
    %c0_54 = arith.constant 0 : index
    %c0_55 = arith.constant 0 : index
    %c0_56 = arith.constant 0 : index
    %c0_57 = arith.constant 0 : index
    %54 = vector.load %arg8[%c0_54, %c0_55, %c0_56, %c0_57] : memref<1x4x1x128xf32, #tpu.memory_space<vmem>>, vector<1x1x1x128xf32>
    %55 = vector.shape_cast %54 : vector<1x1x1x128xf32> to vector<1x128xf32>
    %56 = vector.shape_cast %53 : vector<1x128xf32> to vector<1x1x1x128xf32>
    tpu.vector_store %arg8[%c0_54, %c0_55, %c0_56, %c0_57], %56 {strides = array<i32>} : memref<1x4x1x128xf32, #tpu.memory_space<vmem>>, vector<1x1x1x128xf32>,
    %cst_58 = arith.constant 0.000000e+00 : f32
    %57 = vector.broadcast %cst_58 : f32 to vector<128x128xf32>
    %c0_59 = arith.constant 0 : index
    %c1_60 = arith.constant 1 : index
    %c0_61 = arith.constant 0 : index
    %58 = vector.load %arg9[%c0_59, %c1_60, %c0_61] : memref<10x18x4xbf16, #tpu.memory_space<vmem>>, vector<8x16x4xbf16>
    %59 = vector.shape_cast %58 : vector<8x16x4xbf16> to vector<128x4xbf16>
    %c1_62 = arith.constant 1 : index
    %c0_63 = arith.constant 0 : index
    %c0_64 = arith.constant 0 : index
    %c0_65 = arith.constant 0 : index
    %60 = vector.load %arg4[%c1_62, %c0_63, %c0_64, %c0_65] : memref<4x4x4x128xbf16, #tpu.memory_space<vmem>>, vector<1x1x4x128xbf16>
    %61 = vector.shape_cast %60 : vector<1x1x4x128xbf16> to vector<4x128xbf16>
    %cst_66 = arith.constant dense<0.000000e+00> : vector<128x128xf32>
    %62 = tpu.matmul %59, %61, %cst_66 {dimension_numbers = #tpu.dot_dimension_numbers<[1], [0], [0], [1], [0, 0, 1, 1], [], []>} : vector<128x4xbf16>, vector<4x128xbf16>, vector<128x128xf32> -> vector<128x128xf32>
    %63 = arith.addf %57, %62 : vector<128x128xf32>
    %c0_67 = arith.constant 0 : index
    %c2_68 = arith.constant 2 : index
    %c0_69 = arith.constant 0 : index
    %64 = vector.load %arg9[%c0_67, %c2_68, %c0_69] : memref<10x18x4xbf16, #tpu.memory_space<vmem>>, vector<8x16x4xbf16>
    %65 = vector.shape_cast %64 : vector<8x16x4xbf16> to vector<128x4xbf16>
    %c1_70 = arith.constant 1 : index
    %c1_71 = arith.constant 1 : index
    %c0_72 = arith.constant 0 : index
    %c0_73 = arith.constant 0 : index
    %66 = vector.load %arg4[%c1_70, %c1_71, %c0_72, %c0_73] : memref<4x4x4x128xbf16, #tpu.memory_space<vmem>>, vector<1x1x4x128xbf16>
    %67 = vector.shape_cast %66 : vector<1x1x4x128xbf16> to vector<4x128xbf16>
    %cst_74 = arith.constant dense<0.000000e+00> : vector<128x128xf32>
    %68 = tpu.matmul %65, %67, %cst_74 {dimension_numbers = #tpu.dot_dimension_numbers<[1], [0], [0], [1], [0, 0, 1, 1], [], []>} : vector<128x4xbf16>, vector<4x128xbf16>, vector<128x128xf32> -> vector<128x128xf32>
    %69 = arith.addf %63, %68 : vector<128x128xf32>
    %c1_75 = arith.constant 1 : index
    %c1_76 = arith.constant 1 : index
    %c0_77 = arith.constant 0 : index
    %70 = vector.load %arg9[%c1_75, %c1_76, %c0_77] : memref<10x18x4xbf16, #tpu.memory_space<vmem>>, vector<8x16x4xbf16>
    %71 = vector.shape_cast %70 : vector<8x16x4xbf16> to vector<128x4xbf16>
    %c1_78 = arith.constant 1 : index
    %c2_79 = arith.constant 2 : index
    %c0_80 = arith.constant 0 : index
    %c0_81 = arith.constant 0 : index
    %72 = vector.load %arg4[%c1_78, %c2_79, %c0_80, %c0_81] : memref<4x4x4x128xbf16, #tpu.memory_space<vmem>>, vector<1x1x4x128xbf16>
    %73 = vector.shape_cast %72 : vector<1x1x4x128xbf16> to vector<4x128xbf16>
    %cst_82 = arith.constant dense<0.000000e+00> : vector<128x128xf32>
    %74 = tpu.matmul %71, %73, %cst_82 {dimension_numbers = #tpu.dot_dimension_numbers<[1], [0], [0], [1], [0, 0, 1, 1], [], []>} : vector<128x4xbf16>, vector<4x128xbf16>, vector<128x128xf32> -> vector<128x128xf32>
    %75 = arith.addf %69, %74 : vector<128x128xf32>
    %c1_83 = arith.constant 1 : index
    %c2_84 = arith.constant 2 : index
    %c0_85 = arith.constant 0 : index
    %76 = vector.load %arg9[%c1_83, %c2_84, %c0_85] : memref<10x18x4xbf16, #tpu.memory_space<vmem>>, vector<8x16x4xbf16>
    %77 = vector.shape_cast %76 : vector<8x16x4xbf16> to vector<128x4xbf16>
    %c1_86 = arith.constant 1 : index
    %c3_87 = arith.constant 3 : index
    %c0_88 = arith.constant 0 : index
    %c0_89 = arith.constant 0 : index
    %78 = vector.load %arg4[%c1_86, %c3_87, %c0_88, %c0_89] : memref<4x4x4x128xbf16, #tpu.memory_space<vmem>>, vector<1x1x4x128xbf16>
    %79 = vector.shape_cast %78 : vector<1x1x4x128xbf16> to vector<4x128xbf16>
    %cst_90 = arith.constant dense<0.000000e+00> : vector<128x128xf32>
    %80 = tpu.matmul %77, %79, %cst_90 {dimension_numbers = #tpu.dot_dimension_numbers<[1], [0], [0], [1], [0, 0, 1, 1], [], []>} : vector<128x4xbf16>, vector<4x128xbf16>, vector<128x128xf32> -> vector<128x128xf32>
    %81 = arith.addf %75, %80 : vector<128x128xf32>
    %82 = vector.broadcast %6 : vector<1x128xf32> to vector<128x128xf32>
    %83 = arith.addf %81, %82 : vector<128x128xf32>
    %84 = arith.truncf %83 : vector<128x128xf32> to vector<128x128xbf16>
    %85 = arith.extf %84 : vector<128x128xbf16> to vector<128x128xf32>
    %86 = vector.extract_strided_slice %85 {offsets = [0, 0], sizes = [128, 8], strides = [1, 1]} : vector<128x128xf32> to vector<128x8xf32>
    %87 = tpu.transpose %86, [1, 0] : vector<128x8xf32> -> vector<8x128xf32>
    %88 = arith.truncf %87 : vector<8x128xf32> to vector<8x128xbf16>
    %c0_91 = arith.constant 0 : index
    %c1_92 = arith.constant 1 : index
    %c0_93 = arith.constant 0 : index
    %c0_94 = arith.constant 0 : index
    %89 = vector.load %arg6[%c0_91, %c1_92, %c0_93, %c0_94] : memref<1x4x8x128xbf16, #tpu.memory_space<vmem>>, vector<1x1x8x128xbf16>
    %90 = vector.shape_cast %89 : vector<1x1x8x128xbf16> to vector<8x128xbf16>
    %91 = vector.shape_cast %88 : vector<8x128xbf16> to vector<1x1x8x128xbf16>
    tpu.vector_store %arg6[%c0_91, %c1_92, %c0_93, %c0_94], %91 {strides = array<i32>} : memref<1x4x8x128xbf16, #tpu.memory_space<vmem>>, vector<1x1x8x128xbf16>,
    %cst_95 = arith.constant dense<0.000000e+00> : vector<128xf32>
    %92 = vector.multi_reduction <add>, %85, %cst_95 [0] : vector<128x128xf32> to vector<128xf32>
    %93 = vector.shape_cast %92 : vector<128xf32> to vector<1x128xf32>
    %cst_96 = arith.constant 7.812500e-03 : f32
    %94 = vector.broadcast %cst_96 : f32 to vector<1x128xf32>
    %95 = arith.mulf %93, %94 : vector<1x128xf32>
    %96 = vector.broadcast %95 : vector<1x128xf32> to vector<128x128xf32>
    %97 = arith.subf %85, %96 : vector<128x128xf32>
    %c0_97 = arith.constant 0 : index
    %c1_98 = arith.constant 1 : index
    %c0_99 = arith.constant 0 : index
    %c0_100 = arith.constant 0 : index
    %98 = vector.load %arg7[%c0_97, %c1_98, %c0_99, %c0_100] : memref<1x4x1x128xf32, #tpu.memory_space<vmem>>, vector<1x1x1x128xf32>
    %99 = vector.shape_cast %98 : vector<1x1x1x128xf32> to vector<1x128xf32>
    %100 = vector.shape_cast %93 : vector<1x128xf32> to vector<1x1x1x128xf32>
    tpu.vector_store %arg7[%c0_97, %c1_98, %c0_99, %c0_100], %100 {strides = array<i32>} : memref<1x4x1x128xf32, #tpu.memory_space<vmem>>, vector<1x1x1x128xf32>,
    %101 = arith.mulf %97, %97 : vector<128x128xf32>
    %cst_101 = arith.constant dense<0.000000e+00> : vector<128xf32>
    %102 = vector.multi_reduction <add>, %101, %cst_101 [0] : vector<128x128xf32> to vector<128xf32>
    %103 = vector.shape_cast %102 : vector<128xf32> to vector<1x128xf32>
    %c0_102 = arith.constant 0 : index
    %c1_103 = arith.constant 1 : index
    %c0_104 = arith.constant 0 : index
    %c0_105 = arith.constant 0 : index
    %104 = vector.load %arg8[%c0_102, %c1_103, %c0_104, %c0_105] : memref<1x4x1x128xf32, #tpu.memory_space<vmem>>, vector<1x1x1x128xf32>
    %105 = vector.shape_cast %104 : vector<1x1x1x128xf32> to vector<1x128xf32>
    %106 = vector.shape_cast %103 : vector<1x128xf32> to vector<1x1x1x128xf32>
    tpu.vector_store %arg8[%c0_102, %c1_103, %c0_104, %c0_105], %106 {strides = array<i32>} : memref<1x4x1x128xf32, #tpu.memory_space<vmem>>, vector<1x1x1x128xf32>,
    %cst_106 = arith.constant 0.000000e+00 : f32
    %107 = vector.broadcast %cst_106 : f32 to vector<128x128xf32>
    %c1_107 = arith.constant 1 : index
    %c0_108 = arith.constant 0 : index
    %c0_109 = arith.constant 0 : index
    %108 = vector.load %arg9[%c1_107, %c0_108, %c0_109] : memref<10x18x4xbf16, #tpu.memory_space<vmem>>, vector<8x16x4xbf16>
    %109 = vector.shape_cast %108 : vector<8x16x4xbf16> to vector<128x4xbf16>
    %c2_110 = arith.constant 2 : index
    %c0_111 = arith.constant 0 : index
    %c0_112 = arith.constant 0 : index
    %c0_113 = arith.constant 0 : index
    %110 = vector.load %arg4[%c2_110, %c0_111, %c0_112, %c0_113] : memref<4x4x4x128xbf16, #tpu.memory_space<vmem>>, vector<1x1x4x128xbf16>
    %111 = vector.shape_cast %110 : vector<1x1x4x128xbf16> to vector<4x128xbf16>
    %cst_114 = arith.constant dense<0.000000e+00> : vector<128x128xf32>
    %112 = tpu.matmul %109, %111, %cst_114 {dimension_numbers = #tpu.dot_dimension_numbers<[1], [0], [0], [1], [0, 0, 1, 1], [], []>} : vector<128x4xbf16>, vector<4x128xbf16>, vector<128x128xf32> -> vector<128x128xf32>
    %113 = arith.addf %107, %112 : vector<128x128xf32>
    %c1_115 = arith.constant 1 : index
    %c1_116 = arith.constant 1 : index
    %c0_117 = arith.constant 0 : index
    %114 = vector.load %arg9[%c1_115, %c1_116, %c0_117] : memref<10x18x4xbf16, #tpu.memory_space<vmem>>, vector<8x16x4xbf16>
    %115 = vector.shape_cast %114 : vector<8x16x4xbf16> to vector<128x4xbf16>
    %c2_118 = arith.constant 2 : index
    %c1_119 = arith.constant 1 : index
    %c0_120 = arith.constant 0 : index
    %c0_121 = arith.constant 0 : index
    %116 = vector.load %arg4[%c2_118, %c1_119, %c0_120, %c0_121] : memref<4x4x4x128xbf16, #tpu.memory_space<vmem>>, vector<1x1x4x128xbf16>
    %117 = vector.shape_cast %116 : vector<1x1x4x128xbf16> to vector<4x128xbf16>
    %cst_122 = arith.constant dense<0.000000e+00> : vector<128x128xf32>
    %118 = tpu.matmul %115, %117, %cst_122 {dimension_numbers = #tpu.dot_dimension_numbers<[1], [0], [0], [1], [0, 0, 1, 1], [], []>} : vector<128x4xbf16>, vector<4x128xbf16>, vector<128x128xf32> -> vector<128x128xf32>
    %119 = arith.addf %113, %118 : vector<128x128xf32>
    %c2_123 = arith.constant 2 : index
    %c0_124 = arith.constant 0 : index
    %c0_125 = arith.constant 0 : index
    %120 = vector.load %arg9[%c2_123, %c0_124, %c0_125] : memref<10x18x4xbf16, #tpu.memory_space<vmem>>, vector<8x16x4xbf16>
    %121 = vector.shape_cast %120 : vector<8x16x4xbf16> to vector<128x4xbf16>
    %c2_126 = arith.constant 2 : index
    %c2_127 = arith.constant 2 : index
    %c0_128 = arith.constant 0 : index
    %c0_129 = arith.constant 0 : index
    %122 = vector.load %arg4[%c2_126, %c2_127, %c0_128, %c0_129] : memref<4x4x4x128xbf16, #tpu.memory_space<vmem>>, vector<1x1x4x128xbf16>
    %123 = vector.shape_cast %122 : vector<1x1x4x128xbf16> to vector<4x128xbf16>
    %cst_130 = arith.constant dense<0.000000e+00> : vector<128x128xf32>
    %124 = tpu.matmul %121, %123, %cst_130 {dimension_numbers = #tpu.dot_dimension_numbers<[1], [0], [0], [1], [0, 0, 1, 1], [], []>} : vector<128x4xbf16>, vector<4x128xbf16>, vector<128x128xf32> -> vector<128x128xf32>
    %125 = arith.addf %119, %124 : vector<128x128xf32>
    %c2_131 = arith.constant 2 : index
    %c1_132 = arith.constant 1 : index
    %c0_133 = arith.constant 0 : index
    %126 = vector.load %arg9[%c2_131, %c1_132, %c0_133] : memref<10x18x4xbf16, #tpu.memory_space<vmem>>, vector<8x16x4xbf16>
    %127 = vector.shape_cast %126 : vector<8x16x4xbf16> to vector<128x4xbf16>
    %c2_134 = arith.constant 2 : index
    %c3_135 = arith.constant 3 : index
    %c0_136 = arith.constant 0 : index
    %c0_137 = arith.constant 0 : index
    %128 = vector.load %arg4[%c2_134, %c3_135, %c0_136, %c0_137] : memref<4x4x4x128xbf16, #tpu.memory_space<vmem>>, vector<1x1x4x128xbf16>
    %129 = vector.shape_cast %128 : vector<1x1x4x128xbf16> to vector<4x128xbf16>
    %cst_138 = arith.constant dense<0.000000e+00> : vector<128x128xf32>
    %130 = tpu.matmul %127, %129, %cst_138 {dimension_numbers = #tpu.dot_dimension_numbers<[1], [0], [0], [1], [0, 0, 1, 1], [], []>} : vector<128x4xbf16>, vector<4x128xbf16>, vector<128x128xf32> -> vector<128x128xf32>
    %131 = arith.addf %125, %130 : vector<128x128xf32>
    %132 = vector.broadcast %6 : vector<1x128xf32> to vector<128x128xf32>
    %133 = arith.addf %131, %132 : vector<128x128xf32>
    %134 = arith.truncf %133 : vector<128x128xf32> to vector<128x128xbf16>
    %135 = arith.extf %134 : vector<128x128xbf16> to vector<128x128xf32>
    %136 = vector.extract_strided_slice %135 {offsets = [0, 0], sizes = [128, 8], strides = [1, 1]} : vector<128x128xf32> to vector<128x8xf32>
    %137 = tpu.transpose %136, [1, 0] : vector<128x8xf32> -> vector<8x128xf32>
    %138 = arith.truncf %137 : vector<8x128xf32> to vector<8x128xbf16>
    %c0_139 = arith.constant 0 : index
    %c2_140 = arith.constant 2 : index
    %c0_141 = arith.constant 0 : index
    %c0_142 = arith.constant 0 : index
    %139 = vector.load %arg6[%c0_139, %c2_140, %c0_141, %c0_142] : memref<1x4x8x128xbf16, #tpu.memory_space<vmem>>, vector<1x1x8x128xbf16>
    %140 = vector.shape_cast %139 : vector<1x1x8x128xbf16> to vector<8x128xbf16>
    %141 = vector.shape_cast %138 : vector<8x128xbf16> to vector<1x1x8x128xbf16>
    tpu.vector_store %arg6[%c0_139, %c2_140, %c0_141, %c0_142], %141 {strides = array<i32>} : memref<1x4x8x128xbf16, #tpu.memory_space<vmem>>, vector<1x1x8x128xbf16>,
    %cst_143 = arith.constant dense<0.000000e+00> : vector<128xf32>
    %142 = vector.multi_reduction <add>, %135, %cst_143 [0] : vector<128x128xf32> to vector<128xf32>
    %143 = vector.shape_cast %142 : vector<128xf32> to vector<1x128xf32>
    %cst_144 = arith.constant 7.812500e-03 : f32
    %144 = vector.broadcast %cst_144 : f32 to vector<1x128xf32>
    %145 = arith.mulf %143, %144 : vector<1x128xf32>
    %146 = vector.broadcast %145 : vector<1x128xf32> to vector<128x128xf32>
    %147 = arith.subf %135, %146 : vector<128x128xf32>
    %c0_145 = arith.constant 0 : index
    %c2_146 = arith.constant 2 : index
    %c0_147 = arith.constant 0 : index
    %c0_148 = arith.constant 0 : index
    %148 = vector.load %arg7[%c0_145, %c2_146, %c0_147, %c0_148] : memref<1x4x1x128xf32, #tpu.memory_space<vmem>>, vector<1x1x1x128xf32>
    %149 = vector.shape_cast %148 : vector<1x1x1x128xf32> to vector<1x128xf32>
    %150 = vector.shape_cast %143 : vector<1x128xf32> to vector<1x1x1x128xf32>
    tpu.vector_store %arg7[%c0_145, %c2_146, %c0_147, %c0_148], %150 {strides = array<i32>} : memref<1x4x1x128xf32, #tpu.memory_space<vmem>>, vector<1x1x1x128xf32>,
    %151 = arith.mulf %147, %147 : vector<128x128xf32>
    %cst_149 = arith.constant dense<0.000000e+00> : vector<128xf32>
    %152 = vector.multi_reduction <add>, %151, %cst_149 [0] : vector<128x128xf32> to vector<128xf32>
    %153 = vector.shape_cast %152 : vector<128xf32> to vector<1x128xf32>
    %c0_150 = arith.constant 0 : index
    %c2_151 = arith.constant 2 : index
    %c0_152 = arith.constant 0 : index
    %c0_153 = arith.constant 0 : index
    %154 = vector.load %arg8[%c0_150, %c2_151, %c0_152, %c0_153] : memref<1x4x1x128xf32, #tpu.memory_space<vmem>>, vector<1x1x1x128xf32>
    %155 = vector.shape_cast %154 : vector<1x1x1x128xf32> to vector<1x128xf32>
    %156 = vector.shape_cast %153 : vector<1x128xf32> to vector<1x1x1x128xf32>
    tpu.vector_store %arg8[%c0_150, %c2_151, %c0_152, %c0_153], %156 {strides = array<i32>} : memref<1x4x1x128xf32, #tpu.memory_space<vmem>>, vector<1x1x1x128xf32>,
    %cst_154 = arith.constant 0.000000e+00 : f32
    %157 = vector.broadcast %cst_154 : f32 to vector<128x128xf32>
    %c1_155 = arith.constant 1 : index
    %c1_156 = arith.constant 1 : index
    %c0_157 = arith.constant 0 : index
    %158 = vector.load %arg9[%c1_155, %c1_156, %c0_157] : memref<10x18x4xbf16, #tpu.memory_space<vmem>>, vector<8x16x4xbf16>
    %159 = vector.shape_cast %158 : vector<8x16x4xbf16> to vector<128x4xbf16>
    %c3_158 = arith.constant 3 : index
    %c0_159 = arith.constant 0 : index
    %c0_160 = arith.constant 0 : index
    %c0_161 = arith.constant 0 : index
    %160 = vector.load %arg4[%c3_158, %c0_159, %c0_160, %c0_161] : memref<4x4x4x128xbf16, #tpu.memory_space<vmem>>, vector<1x1x4x128xbf16>
    %161 = vector.shape_cast %160 : vector<1x1x4x128xbf16> to vector<4x128xbf16>
    %cst_162 = arith.constant dense<0.000000e+00> : vector<128x128xf32>
    %162 = tpu.matmul %159, %161, %cst_162 {dimension_numbers = #tpu.dot_dimension_numbers<[1], [0], [0], [1], [0, 0, 1, 1], [], []>} : vector<128x4xbf16>, vector<4x128xbf16>, vector<128x128xf32> -> vector<128x128xf32>
    %163 = arith.addf %157, %162 : vector<128x128xf32>
    %c1_163 = arith.constant 1 : index
    %c2_164 = arith.constant 2 : index
    %c0_165 = arith.constant 0 : index
    %164 = vector.load %arg9[%c1_163, %c2_164, %c0_165] : memref<10x18x4xbf16, #tpu.memory_space<vmem>>, vector<8x16x4xbf16>
    %165 = vector.shape_cast %164 : vector<8x16x4xbf16> to vector<128x4xbf16>
    %c3_166 = arith.constant 3 : index
    %c1_167 = arith.constant 1 : index
    %c0_168 = arith.constant 0 : index
    %c0_169 = arith.constant 0 : index
    %166 = vector.load %arg4[%c3_166, %c1_167, %c0_168, %c0_169] : memref<4x4x4x128xbf16, #tpu.memory_space<vmem>>, vector<1x1x4x128xbf16>
    %167 = vector.shape_cast %166 : vector<1x1x4x128xbf16> to vector<4x128xbf16>
    %cst_170 = arith.constant dense<0.000000e+00> : vector<128x128xf32>
    %168 = tpu.matmul %165, %167, %cst_170 {dimension_numbers = #tpu.dot_dimension_numbers<[1], [0], [0], [1], [0, 0, 1, 1], [], []>} : vector<128x4xbf16>, vector<4x128xbf16>, vector<128x128xf32> -> vector<128x128xf32>
    %169 = arith.addf %163, %168 : vector<128x128xf32>
    %c2_171 = arith.constant 2 : index
    %c1_172 = arith.constant 1 : index
    %c0_173 = arith.constant 0 : index
    %170 = vector.load %arg9[%c2_171, %c1_172, %c0_173] : memref<10x18x4xbf16, #tpu.memory_space<vmem>>, vector<8x16x4xbf16>
    %171 = vector.shape_cast %170 : vector<8x16x4xbf16> to vector<128x4xbf16>
    %c3_174 = arith.constant 3 : index
    %c2_175 = arith.constant 2 : index
    %c0_176 = arith.constant 0 : index
    %c0_177 = arith.constant 0 : index
    %172 = vector.load %arg4[%c3_174, %c2_175, %c0_176, %c0_177] : memref<4x4x4x128xbf16, #tpu.memory_space<vmem>>, vector<1x1x4x128xbf16>
    %173 = vector.shape_cast %172 : vector<1x1x4x128xbf16> to vector<4x128xbf16>
    %cst_178 = arith.constant dense<0.000000e+00> : vector<128x128xf32>
    %174 = tpu.matmul %171, %173, %cst_178 {dimension_numbers = #tpu.dot_dimension_numbers<[1], [0], [0], [1], [0, 0, 1, 1], [], []>} : vector<128x4xbf16>, vector<4x128xbf16>, vector<128x128xf32> -> vector<128x128xf32>
    %175 = arith.addf %169, %174 : vector<128x128xf32>
    %c2_179 = arith.constant 2 : index
    %c2_180 = arith.constant 2 : index
    %c0_181 = arith.constant 0 : index
    %176 = vector.load %arg9[%c2_179, %c2_180, %c0_181] : memref<10x18x4xbf16, #tpu.memory_space<vmem>>, vector<8x16x4xbf16>
    %177 = vector.shape_cast %176 : vector<8x16x4xbf16> to vector<128x4xbf16>
    %c3_182 = arith.constant 3 : index
    %c3_183 = arith.constant 3 : index
    %c0_184 = arith.constant 0 : index
    %c0_185 = arith.constant 0 : index
    %178 = vector.load %arg4[%c3_182, %c3_183, %c0_184, %c0_185] : memref<4x4x4x128xbf16, #tpu.memory_space<vmem>>, vector<1x1x4x128xbf16>
    %179 = vector.shape_cast %178 : vector<1x1x4x128xbf16> to vector<4x128xbf16>
    %cst_186 = arith.constant dense<0.000000e+00> : vector<128x128xf32>
    %180 = tpu.matmul %177, %179, %cst_186 {dimension_numbers = #tpu.dot_dimension_numbers<[1], [0], [0], [1], [0, 0, 1, 1], [], []>} : vector<128x4xbf16>, vector<4x128xbf16>, vector<128x128xf32> -> vector<128x128xf32>
    %181 = arith.addf %175, %180 : vector<128x128xf32>
    %182 = vector.broadcast %6 : vector<1x128xf32> to vector<128x128xf32>
    %183 = arith.addf %181, %182 : vector<128x128xf32>
    %184 = arith.truncf %183 : vector<128x128xf32> to vector<128x128xbf16>
    %185 = arith.extf %184 : vector<128x128xbf16> to vector<128x128xf32>
    %186 = vector.extract_strided_slice %185 {offsets = [0, 0], sizes = [128, 8], strides = [1, 1]} : vector<128x128xf32> to vector<128x8xf32>
    %187 = tpu.transpose %186, [1, 0] : vector<128x8xf32> -> vector<8x128xf32>
    %188 = arith.truncf %187 : vector<8x128xf32> to vector<8x128xbf16>
    %c0_187 = arith.constant 0 : index
    %c3_188 = arith.constant 3 : index
    %c0_189 = arith.constant 0 : index
    %c0_190 = arith.constant 0 : index
    %189 = vector.load %arg6[%c0_187, %c3_188, %c0_189, %c0_190] : memref<1x4x8x128xbf16, #tpu.memory_space<vmem>>, vector<1x1x8x128xbf16>
    %190 = vector.shape_cast %189 : vector<1x1x8x128xbf16> to vector<8x128xbf16>
    %191 = vector.shape_cast %188 : vector<8x128xbf16> to vector<1x1x8x128xbf16>
    tpu.vector_store %arg6[%c0_187, %c3_188, %c0_189, %c0_190], %191 {strides = array<i32>} : memref<1x4x8x128xbf16, #tpu.memory_space<vmem>>, vector<1x1x8x128xbf16>,
    %cst_191 = arith.constant dense<0.000000e+00> : vector<128xf32>
    %192 = vector.multi_reduction <add>, %185, %cst_191 [0] : vector<128x128xf32> to vector<128xf32>
    %193 = vector.shape_cast %192 : vector<128xf32> to vector<1x128xf32>
    %cst_192 = arith.constant 7.812500e-03 : f32
    %194 = vector.broadcast %cst_192 : f32 to vector<1x128xf32>
    %195 = arith.mulf %193, %194 : vector<1x128xf32>
    %196 = vector.broadcast %195 : vector<1x128xf32> to vector<128x128xf32>
    %197 = arith.subf %185, %196 : vector<128x128xf32>
    %c0_193 = arith.constant 0 : index
    %c3_194 = arith.constant 3 : index
    %c0_195 = arith.constant 0 : index
    %c0_196 = arith.constant 0 : index
    %198 = vector.load %arg7[%c0_193, %c3_194, %c0_195, %c0_196] : memref<1x4x1x128xf32, #tpu.memory_space<vmem>>, vector<1x1x1x128xf32>
    %199 = vector.shape_cast %198 : vector<1x1x1x128xf32> to vector<1x128xf32>
    %200 = vector.shape_cast %193 : vector<1x128xf32> to vector<1x1x1x128xf32>
    tpu.vector_store %arg7[%c0_193, %c3_194, %c0_195, %c0_196], %200 {strides = array<i32>} : memref<1x4x1x128xf32, #tpu.memory_space<vmem>>, vector<1x1x1x128xf32>,
    %201 = arith.mulf %197, %197 : vector<128x128xf32>
    %cst_197 = arith.constant dense<0.000000e+00> : vector<128xf32>
    %202 = vector.multi_reduction <add>, %201, %cst_197 [0] : vector<128x128xf32> to vector<128xf32>
    %203 = vector.shape_cast %202 : vector<128xf32> to vector<1x128xf32>
    %c0_198 = arith.constant 0 : index
    %c3_199 = arith.constant 3 : index
    %c0_200 = arith.constant 0 : index
    %c0_201 = arith.constant 0 : index
    %204 = vector.load %arg8[%c0_198, %c3_199, %c0_200, %c0_201] : memref<1x4x1x128xf32, #tpu.memory_space<vmem>>, vector<1x1x1x128xf32>
    %205 = vector.shape_cast %204 : vector<1x1x1x128xf32> to vector<1x128xf32>
    %206 = vector.shape_cast %203 : vector<1x128xf32> to vector<1x1x1x128xf32>
    tpu.vector_store %arg8[%c0_198, %c3_199, %c0_200, %c0_201], %206 {strides = array<i32>} : memref<1x4x1x128xf32, #tpu.memory_space<vmem>>, vector<1x1x1x128xf32>,
    return
  }
  func.func @transform_0(%arg0: i32, %arg1: i32) -> (i32, i32, i32, i32) {
    %c0_i32 = arith.constant 0 : i32
    %c0_i32_0 = arith.constant 0 : i32
    %c0_i32_1 = arith.constant 0 : i32
    return %arg0, %arg1, %c0_i32, %c0_i32_0 : i32, i32, i32, i32
  }
  func.func @transform_1(%arg0: i32, %arg1: i32) -> (i32, i32, i32, i32) {
    %c1_i32 = arith.constant 1 : i32
    %0 = arith.addi %arg1, %c1_i32 : i32
    %c4_i32 = arith.constant 4 : i32
    %1 = arith.muli %0, %c4_i32 : i32
    %c0_i32 = arith.constant 0 : i32
    %c0_i32_0 = arith.constant 0 : i32
    %c0_i32_1 = arith.constant 0 : i32
    return %arg0, %1, %c0_i32, %c0_i32_0 : i32, i32, i32, i32
  }
  func.func @transform_2(%arg0: i32, %arg1: i32) -> (i32, i32, i32, i32) {
    %c0_i32 = arith.constant 0 : i32
    %c0_i32_0 = arith.constant 0 : i32
    %c0_i32_1 = arith.constant 0 : i32
    %c0_i32_2 = arith.constant 0 : i32
    %c0_i32_3 = arith.constant 0 : i32
    return %c0_i32, %c0_i32_0, %c0_i32_1, %c0_i32_2 : i32, i32, i32, i32
  }
  func.func @transform_3(%arg0: i32, %arg1: i32) -> (i32, i32) {
    %c0_i32 = arith.constant 0 : i32
    %c0_i32_0 = arith.constant 0 : i32
    %c0_i32_1 = arith.constant 0 : i32
    return %c0_i32, %c0_i32_0 : i32, i32
  }
  func.func @transform_4(%arg0: i32, %arg1: i32) -> (i32, i32, i32, i32) {
    %c0_i32 = arith.constant 0 : i32
    %c0_i32_0 = arith.constant 0 : i32
    %c0_i32_1 = arith.constant 0 : i32
    return %arg0, %arg1, %c0_i32, %c0_i32_0 : i32, i32, i32, i32
  }
  func.func @transform_5(%arg0: i32, %arg1: i32) -> (i32, i32, i32, i32) {
    %c0_i32 = arith.constant 0 : i32
    %c0_i32_0 = arith.constant 0 : i32
    %c0_i32_1 = arith.constant 0 : i32
    return %arg0, %arg1, %c0_i32, %c0_i32_0 : i32, i32, i32, i32
  }
  func.func @transform_6(%arg0: i32, %arg1: i32) -> (i32, i32, i32, i32) {
    %c0_i32 = arith.constant 0 : i32
    %c0_i32_0 = arith.constant 0 : i32
    %c0_i32_1 = arith.constant 0 : i32
    return %arg0, %arg1, %c0_i32, %c0_i32_0 : i32, i32, i32, i32
  }
}

module attributes {stable_mosaic.version = 11 : i64} {
  func.func @_bn_relu_kernel(%arg0: i32, %arg1: i32, %arg2: memref<1x4x8x128xbf16, #tpu.memory_space<vmem>>, %arg3: memref<8x1xf32, #tpu.memory_space<vmem>>, %arg4: memref<8x1xf32, #tpu.memory_space<vmem>>, %arg5: memref<1x1x4x8x128xf32, #tpu.memory_space<vmem>>) attributes {dimension_semantics = [#tpu.dimension_semantics<parallel>, #tpu.dimension_semantics<parallel>], iteration_bounds = array<i64: 2, 2>, scalar_prefetch = 0 : i64, scratch_operands = 0 : i64, tpu.core_type = #tpu.core_type<tc>, window_params = [{transform_indices = @transform_0, window_bounds = array<i64: 1, 4, 8, 128>}, {pipeline_mode = #tpu.pipeline_mode<synchronous>, transform_indices = @transform_1, window_bounds = array<i64: 8, 1>}, {pipeline_mode = #tpu.pipeline_mode<synchronous>, transform_indices = @transform_2, window_bounds = array<i64: 8, 1>}, {transform_indices = @transform_3, window_bounds = array<i64: 1, 1, 4, 8, 128>}]} {
    %c0 = arith.constant 0 : index
    %c0_0 = arith.constant 0 : index
    %0 = vector.load %arg3[%c0, %c0_0] : memref<8x1xf32, #tpu.memory_space<vmem>>, vector<8x1xf32>
    %c0_1 = arith.constant 0 : index
    %c0_2 = arith.constant 0 : index
    %1 = vector.load %arg4[%c0_1, %c0_2] : memref<8x1xf32, #tpu.memory_space<vmem>>, vector<8x1xf32>
    %c0_3 = arith.constant 0 : index
    %c0_4 = arith.constant 0 : index
    %c0_5 = arith.constant 0 : index
    %c0_6 = arith.constant 0 : index
    %2 = vector.load %arg2[%c0_3, %c0_4, %c0_5, %c0_6] : memref<1x4x8x128xbf16, #tpu.memory_space<vmem>>, vector<1x1x8x128xbf16>
    %3 = vector.shape_cast %2 : vector<1x1x8x128xbf16> to vector<8x128xbf16>
    %4 = arith.extf %3 : vector<8x128xbf16> to vector<8x128xf32>
    %5 = vector.broadcast %0 : vector<8x1xf32> to vector<8x128xf32>
    %6 = arith.mulf %4, %5 : vector<8x128xf32>
    %7 = vector.broadcast %1 : vector<8x1xf32> to vector<8x128xf32>
    %8 = arith.addf %6, %7 : vector<8x128xf32>
    %cst = arith.constant 0.000000e+00 : f32
    %9 = vector.broadcast %cst : f32 to vector<8x128xf32>
    %10 = arith.maximumf %8, %9 : vector<8x128xf32>
    %c0_7 = arith.constant 0 : index
    %c0_8 = arith.constant 0 : index
    %c0_9 = arith.constant 0 : index
    %c0_10 = arith.constant 0 : index
    %c0_11 = arith.constant 0 : index
    %11 = vector.load %arg5[%c0_7, %c0_8, %c0_9, %c0_10, %c0_11] : memref<1x1x4x8x128xf32, #tpu.memory_space<vmem>>, vector<1x1x1x8x128xf32>
    %12 = vector.shape_cast %11 : vector<1x1x1x8x128xf32> to vector<8x128xf32>
    %13 = vector.shape_cast %10 : vector<8x128xf32> to vector<1x1x1x8x128xf32>
    tpu.vector_store %arg5[%c0_7, %c0_8, %c0_9, %c0_10, %c0_11], %13 {strides = array<i32>} : memref<1x1x4x8x128xf32, #tpu.memory_space<vmem>>, vector<1x1x1x8x128xf32>,
    %c0_12 = arith.constant 0 : index
    %c1 = arith.constant 1 : index
    %c0_13 = arith.constant 0 : index
    %c0_14 = arith.constant 0 : index
    %14 = vector.load %arg2[%c0_12, %c1, %c0_13, %c0_14] : memref<1x4x8x128xbf16, #tpu.memory_space<vmem>>, vector<1x1x8x128xbf16>
    %15 = vector.shape_cast %14 : vector<1x1x8x128xbf16> to vector<8x128xbf16>
    %16 = arith.extf %15 : vector<8x128xbf16> to vector<8x128xf32>
    %17 = vector.broadcast %0 : vector<8x1xf32> to vector<8x128xf32>
    %18 = arith.mulf %16, %17 : vector<8x128xf32>
    %19 = vector.broadcast %1 : vector<8x1xf32> to vector<8x128xf32>
    %20 = arith.addf %18, %19 : vector<8x128xf32>
    %cst_15 = arith.constant 0.000000e+00 : f32
    %21 = vector.broadcast %cst_15 : f32 to vector<8x128xf32>
    %22 = arith.maximumf %20, %21 : vector<8x128xf32>
    %c0_16 = arith.constant 0 : index
    %c0_17 = arith.constant 0 : index
    %c1_18 = arith.constant 1 : index
    %c0_19 = arith.constant 0 : index
    %c0_20 = arith.constant 0 : index
    %23 = vector.load %arg5[%c0_16, %c0_17, %c1_18, %c0_19, %c0_20] : memref<1x1x4x8x128xf32, #tpu.memory_space<vmem>>, vector<1x1x1x8x128xf32>
    %24 = vector.shape_cast %23 : vector<1x1x1x8x128xf32> to vector<8x128xf32>
    %25 = vector.shape_cast %22 : vector<8x128xf32> to vector<1x1x1x8x128xf32>
    tpu.vector_store %arg5[%c0_16, %c0_17, %c1_18, %c0_19, %c0_20], %25 {strides = array<i32>} : memref<1x1x4x8x128xf32, #tpu.memory_space<vmem>>, vector<1x1x1x8x128xf32>,
    %c0_21 = arith.constant 0 : index
    %c2 = arith.constant 2 : index
    %c0_22 = arith.constant 0 : index
    %c0_23 = arith.constant 0 : index
    %26 = vector.load %arg2[%c0_21, %c2, %c0_22, %c0_23] : memref<1x4x8x128xbf16, #tpu.memory_space<vmem>>, vector<1x1x8x128xbf16>
    %27 = vector.shape_cast %26 : vector<1x1x8x128xbf16> to vector<8x128xbf16>
    %28 = arith.extf %27 : vector<8x128xbf16> to vector<8x128xf32>
    %29 = vector.broadcast %0 : vector<8x1xf32> to vector<8x128xf32>
    %30 = arith.mulf %28, %29 : vector<8x128xf32>
    %31 = vector.broadcast %1 : vector<8x1xf32> to vector<8x128xf32>
    %32 = arith.addf %30, %31 : vector<8x128xf32>
    %cst_24 = arith.constant 0.000000e+00 : f32
    %33 = vector.broadcast %cst_24 : f32 to vector<8x128xf32>
    %34 = arith.maximumf %32, %33 : vector<8x128xf32>
    %c0_25 = arith.constant 0 : index
    %c0_26 = arith.constant 0 : index
    %c2_27 = arith.constant 2 : index
    %c0_28 = arith.constant 0 : index
    %c0_29 = arith.constant 0 : index
    %35 = vector.load %arg5[%c0_25, %c0_26, %c2_27, %c0_28, %c0_29] : memref<1x1x4x8x128xf32, #tpu.memory_space<vmem>>, vector<1x1x1x8x128xf32>
    %36 = vector.shape_cast %35 : vector<1x1x1x8x128xf32> to vector<8x128xf32>
    %37 = vector.shape_cast %34 : vector<8x128xf32> to vector<1x1x1x8x128xf32>
    tpu.vector_store %arg5[%c0_25, %c0_26, %c2_27, %c0_28, %c0_29], %37 {strides = array<i32>} : memref<1x1x4x8x128xf32, #tpu.memory_space<vmem>>, vector<1x1x1x8x128xf32>,
    %c0_30 = arith.constant 0 : index
    %c3 = arith.constant 3 : index
    %c0_31 = arith.constant 0 : index
    %c0_32 = arith.constant 0 : index
    %38 = vector.load %arg2[%c0_30, %c3, %c0_31, %c0_32] : memref<1x4x8x128xbf16, #tpu.memory_space<vmem>>, vector<1x1x8x128xbf16>
    %39 = vector.shape_cast %38 : vector<1x1x8x128xbf16> to vector<8x128xbf16>
    %40 = arith.extf %39 : vector<8x128xbf16> to vector<8x128xf32>
    %41 = vector.broadcast %0 : vector<8x1xf32> to vector<8x128xf32>
    %42 = arith.mulf %40, %41 : vector<8x128xf32>
    %43 = vector.broadcast %1 : vector<8x1xf32> to vector<8x128xf32>
    %44 = arith.addf %42, %43 : vector<8x128xf32>
    %cst_33 = arith.constant 0.000000e+00 : f32
    %45 = vector.broadcast %cst_33 : f32 to vector<8x128xf32>
    %46 = arith.maximumf %44, %45 : vector<8x128xf32>
    %c0_34 = arith.constant 0 : index
    %c0_35 = arith.constant 0 : index
    %c3_36 = arith.constant 3 : index
    %c0_37 = arith.constant 0 : index
    %c0_38 = arith.constant 0 : index
    %47 = vector.load %arg5[%c0_34, %c0_35, %c3_36, %c0_37, %c0_38] : memref<1x1x4x8x128xf32, #tpu.memory_space<vmem>>, vector<1x1x1x8x128xf32>
    %48 = vector.shape_cast %47 : vector<1x1x1x8x128xf32> to vector<8x128xf32>
    %49 = vector.shape_cast %46 : vector<8x128xf32> to vector<1x1x1x8x128xf32>
    tpu.vector_store %arg5[%c0_34, %c0_35, %c3_36, %c0_37, %c0_38], %49 {strides = array<i32>} : memref<1x1x4x8x128xf32, #tpu.memory_space<vmem>>, vector<1x1x1x8x128xf32>,
    return
  }
  func.func @transform_0(%arg0: i32, %arg1: i32) -> (i32, i32, i32, i32) {
    %c0_i32 = arith.constant 0 : i32
    %c0_i32_0 = arith.constant 0 : i32
    %c0_i32_1 = arith.constant 0 : i32
    return %arg0, %arg1, %c0_i32, %c0_i32_0 : i32, i32, i32, i32
  }
  func.func @transform_1(%arg0: i32, %arg1: i32) -> (i32, i32) {
    %c0_i32 = arith.constant 0 : i32
    %c0_i32_0 = arith.constant 0 : i32
    %c0_i32_1 = arith.constant 0 : i32
    return %c0_i32, %c0_i32_0 : i32, i32
  }
  func.func @transform_2(%arg0: i32, %arg1: i32) -> (i32, i32) {
    %c0_i32 = arith.constant 0 : i32
    %c0_i32_0 = arith.constant 0 : i32
    %c0_i32_1 = arith.constant 0 : i32
    return %c0_i32, %c0_i32_0 : i32, i32
  }
  func.func @transform_3(%arg0: i32, %arg1: i32) -> (i32, i32, i32, i32, i32) {
    %c0_i32 = arith.constant 0 : i32
    %c0_i32_0 = arith.constant 0 : i32
    %c0_i32_1 = arith.constant 0 : i32
    %c0_i32_2 = arith.constant 0 : i32
    return %arg0, %arg1, %c0_i32, %c0_i32_0, %c0_i32_1 : i32, i32, i32, i32, i32
  }
}

</mosaic_0001>

<bundles_post_ra>
// kernel: upconv_forward.3
= control target key start
LH: loop header
LB: loop body
LE: loop exit
PB: predicated region body
PF: predicated region fallthrough
CT: control target
= control target key end

     0   :  { %s465_s12 = smov 0   ;;  %s467_s13 = smov 0   ;;  %s527_s0 = inlined_call_operand.vmem [shape: bf16[2,8,8,128], index: 0, kind: input, shape index: {}]   ;;  %s528_s1 = inlined_call_operand.vmem [shape: f32[8,1], index: 1, kind: input, shape index: {}]   ;;  %s529_s2 = inlined_call_operand.vmem [shape: f32[8,1], index: 2, kind: input, shape index: {}]   ;;  %s530_s3 = inlined_call_operand.vmem [shape: f32[2,2,4,8,128], index: 3, kind: output, shape index: {}]  }
   0x1   :  { %s469_s14 = smov 0   ;;  %s471_s15 = smov 0  }
   0x2   :  { %s473_s16 = smov 0  }
   0x3 LB: > { %s22_s17 = sadd.s32 1, %s434_s14  ;;  %s25_s18 = sadd.s32 1, %s438_s15  ;;  %s442_s16 = sphi %s473_s16, %s13_s16   ;;  %s438_s15 = sphi %s471_s15, %s534_s15   ;;  %s434_s14 = sphi %s469_s14, %s533_s14   ;;  %s430_s13 = sphi %s467_s13, %s532_s13   ;;  %s426_s12 = sphi %s465_s12, %s531_s12  }
   0x4   : > { %p23_p0 = scmp.ge.s32.totalorder %s22_s17, 2  ;;  %p347_p1 = scmp.ge.s32.totalorder %s442_s16, 1 }
   0x5   : > { %p158_p2 = scmp.lt.s32.totalorder %s442_s16, 5 }
   0x6   : > { %s536_s17 = smov (%p23_p0, %s22_s17), 0  ;;  %s538_s18 = smov (!%p23_p0, %s25_s18), %s438_s15 }
   0x7   : > { %p159_p3 = pnand %p347_p1, %p158_p2  ;;  %p27_p4 = scmp.ge.s32.totalorder %s538_s18, 2 }
   0x8   : > { %v209_v0 = vld [vmem:[%s528_s1] sm:$0xff] (!%p159_p3)  ;;  %v444_v1 = vmov (!%p159_p3), 0   ;;  %s348_s23 = sshll.u32 (!%p159_p3), %s426_s12, 2  ;;  %p191_p5 = scmp.lt.s32.totalorder (!%p159_p3), %s430_s13, 1 }
   0x9   : > { %s540_s18 = smov (%p27_p4, %s538_s18), 0  ;;  %162 = sbr.rel (%p159_p3) target bundleno = 149 (0x95), region = 32 }
   0xa   : > { %403 = vset.pattern.permute.xlu0 (!%p159_p3), %v444_v1  ;;  %v210_v2 = vld [vmem:[%s529_s2] sm:$0xff] (!%p159_p3)  ;;  %p193_p6 = scmp.lt.s32.totalorder (!%p159_p3), %s348_s23, 7  ;;  %p202_p7 = scmp.lt.s32.totalorder (!%p159_p3), %s426_s12, 1 }
   0xb   : > { %215 = vperm.xlu0 (!%p159_p3), %403, %v209_v0  }
   0xf   : > { %221 = vperm.xlu0 (!%p159_p3), %403, %v210_v2  }
  0x10   : > { %s542_s13 = smov (!%p191_p5, %s430_s13), 1  ;;  %s544_s23 = smov (!%p193_p6, %s348_s23), 7 }
  0x11   : > { %s349_s24 = sshll.u32 %s542_s13, 3  ;;  %s546_s12 = smov (!%p202_p7, %s426_s12), 1 }
  0x12   : > { %s196_s25 = sadd.s32 %s349_s24, %s544_s23  ;;  %s351_s30 = sshll.u32 %s546_s12, 2 }
  0x13   : > { %s350_s26 = sshll.u32 %s196_s25, 2  ;;  %s206_s4 = sadd.s32 %s351_s30, %s349_s24 }
  0x14   : > { %s198_s29 = scalar_lea.vmem %s527_s0, %s350_s26  ;;  %s353_s5 = sshll.u32 %s206_s4, 3 }
  0x15   : > { %v211_v3 = vld [vmem:[%s198_s29] sm:$0xff]   ;;  %v356_v4 = vld [vmem:[%s198_s29 + $0x8] sm:$0xff]   ;;  %s208_s8 = scalar_lea.vmem %s530_s3, %s353_s5 }
  0x16   : > { %v212_v5 = vunpack.c.l.bf16 %v211_v3  ;;  %v229_v6 = vunpack.c.h.bf16 %v211_v3  ;;  %v237_v7 = vunpack.c.l.bf16 %v356_v4  ;;  %v245_v8 = vunpack.c.h.bf16 %v356_v4 }
  0x8a   : > { %v216_v9 = vpop.permute.xlu0 %215 }
  0x8b   : > { %v218_v10 = vmul.f32 %v216_v9, %v212_v5  ;;  %v230_v11 = vmul.f32 %v229_v6, %v216_v9  ;;  %v238_v12 = vmul.f32 %v237_v7, %v216_v9  ;;  %v246_v13 = vmul.f32 %v245_v8, %v216_v9 }
  0x8e   : > { %v222_v14 = vpop.permute.xlu0 %221 }
  0x8f   : > { %v224_v15 = vadd.f32 %v222_v14, %v218_v10  ;;  %v231_v16 = vadd.f32 %v230_v11, %v222_v14  ;;  %v239_v17 = vadd.f32 %v238_v12, %v222_v14  ;;  %v247_v18 = vadd.f32 %v246_v13, %v222_v14 }
  0x91   : > { %v225_v19 = vmax.f32 %v224_v15, 0.0  ;;  %v232_v20 = vmax.f32 %v231_v16, 0.0  ;;  %v240_v21 = vmax.f32 %v239_v17, 0.0  ;;  %v248_v22 = vmax.f32 %v247_v18, 0.0 }
  0x93   : > { %226 = vst [vmem:[%s208_s8] sm:$0xff] %v225_v19  ;;  %355 = vst [vmem:[%s208_s8 + $0x8] sm:$0xff] %v232_v20 }
  0x94   : > { %357 = vst [vmem:[%s208_s8 + $0x10] sm:$0xff] %v240_v21  ;;  %359 = vst [vmem:[%s208_s8 + $0x18] sm:$0xff] %v248_v22 }
  0x95 PF: > { %s13_s16 = sadd.s32 1, %s442_s16   ;;  %s531_s12 = smov %s434_s14 }
  0x96   : > { %p10_p8 = scmp.ge.s32.totalorder %s13_s16, 6   ;;  %s532_s13 = smov %s438_s15 }
  0x97   : > { %s533_s14 = smov %s536_s17  ;;  %s534_s15 = smov %s540_s18 }
  0x98   :  { %12 = sbr.rel (!%p10_p8) target bundleno = 3 (0x3), region = 68 }

// kernel: upconv_forward.2
= control target key start
LH: loop header
LB: loop body
LE: loop exit
PB: predicated region body
PF: predicated region fallthrough
CT: control target
= control target key end

     0   :  { %s7215_s21 = smov 0   ;;  %s7217_s22 = smov 0   ;;  %s8897_s0 = inlined_call_operand.vmem [shape: bf16[2,18,18,4], index: 0, kind: input, shape index: {}, may-alias: {0,1}]   ;;  %s8898_s1 = inlined_call_operand.vmem [shape: bf16[2,18,18,4], index: 1, kind: input, shape index: {}, may-alias: {0,1}]   ;;  %s8899_s2 = inlined_call_operand.vmem [shape: bf16[4,4,4,128], index: 2, kind: input, shape index: {}]   ;;  %s8900_s3 = inlined_call_operand.vmem [shape: f32[1,128], index: 3, kind: input, shape index: {}]   ;;  %s8901_s4 = inlined_call_operand.vmem [shape: bf16[2,8,8,128], index: 4, kind: output, shape index: {0}]   ;;  %s8902_s5 = inlined_call_operand.vmem [shape: f32[2,8,1,128], index: 5, kind: output, shape index: {1}]   ;;  %s8903_s6 = inlined_call_operand.vmem [shape: f32[2,8,1,128], index: 6, kind: output, shape index: {2}]  }
   0x1   :  { %s7219_s23 = smov 0   ;;  %s7221_s24 = smov 0  }
   0x2   :  { %s7223_s25 = smov 0  }
   0x3 LB: > { %s26_s26 = sadd.s32 1, %s7170_s23  ;;  %s29_s27 = sadd.s32 1, %s7174_s24  ;;  %s7178_s25 = sphi %s7223_s25, %s17_s25   ;;  %s7174_s24 = sphi %s7221_s24, %s8925_s24   ;;  %s7170_s23 = sphi %s7219_s23, %s8924_s23   ;;  %s7166_s22 = sphi %s7217_s22, %s8923_s22   ;;  %s7162_s21 = sphi %s7215_s21, %s8922_s21  }
   0x4   : > { %p27_p0 = scmp.ge.s32.totalorder %s26_s26, 2  ;;  %p6020_p1 = scmp.ge.s32.totalorder %s7178_s25, 1 }
   0x5   : > { %p279_p2 = scmp.lt.s32.totalorder %s7178_s25, 5 }
   0x6   : > { %s8927_s26 = smov (%p27_p0, %s26_s26), 0  ;;  %s8929_s27 = smov (!%p27_p0, %s29_s27), %s7174_s24 }
   0x7   : > { %p280_p3 = pnand %p6020_p1, %p279_p2  ;;  %p31_p4 = scmp.ge.s32.totalorder %s8929_s27, 2 }
   0x9   : > { %s8931_s27 = smov (%p31_p4, %s8929_s27), 0  ;;  %283 = sbr.rel (%p280_p3) target bundleno = 703 (0x2bf), region = 36 }
  0x10   : > { %vm751_vm0 = vcmask 1041408   ;;  %v6110_v0 = vld [vmem:[%s8899_s2 + $0xa] sm:$0x3]  ;;  %v6033_v1 = vld [vmem:[%s8899_s2 + $0x2] sm:$0x3]  ;;  %s6021_s8 = sshll.u32 %s7162_s21, 3 }
  0x11   : > { %6985 = vmatprep.subr.msk.bf16.mxu1 %vm751_vm0, %v6110_v0  ;;  %v2114_v2 = vsel %vm751_vm0, %v6110_v0, 0  ;;  %6981 = vmatprep.subr.msk.bf16.mxu0 %vm751_vm0, %v6033_v1  ;;  %p357_p5 = scmp.lt.s32.totalorder %s7166_s22, 1  ;;  %p359_p6 = scmp.lt.s32.totalorder %s6021_s8, 17  ;;  %v753_v3 = vsel %vm751_vm0, %v6033_v1, 0  ;;  %v496_v4 = vld [vmem:[%s8899_s2] sm:$0x3] }
  0x12   : > { %6574 = vmatpush3.bf16.msra.mxu1 %v2114_v2  ;;  %s6356_s9 = sadd.s32 8, %s6021_s8  ;;  %6502 = vmatpush3.bf16.msra.mxu0 %v753_v3  ;;  %v6101_v5 = vld [vmem:[%s8899_s2 + $0x8] sm:$0x3]  ;;  %v7272_v6 = vld [vmem:[%s8899_s2 + $0x4] sm:$0x3]  ;;  %vm440_vm1 = vcmask 27648  }
  0x13   : > { %s8933_s22 = smov (!%p357_p5, %s7166_s22), 1  ;;  %s8935_s8 = smov (!%p359_p6, %s6021_s8), 17  ;;  %6982 = vmatprep.subr.msk.bf16.mxu0 %vm751_vm0, %v496_v4  ;;  %6986 = vmatprep.subr.msk.bf16.mxu1 %vm751_vm0, %v6101_v5  ;;  %v7277_v7 = vld [vmem:[%s8899_s2 + $0xc] sm:$0x3]  ;;  %v7282_v8 = vld [vmem:[%s8899_s2 + $0x6] sm:$0x3] }
  0x14   : > { %s6998_s14 = smul.u32 54, %s8933_s22  ;;  %p377_p7 = scmp.lt.s32.totalorder %s6356_s9, 17  ;;  %v7287_v9 = vld [vmem:[%s8899_s2 + $0xe] sm:$0x3]  ;;  %vm443_vm2 = vcmask 24576   ;;  %vm2004_vm3 = vcmask 1042432  }
  0x15   : > { %s6997_s15 = smul.u32 3, %s8935_s8  ;;  %vm2005_vm4 = vcmask 1046532   ;;  %v7290_v10 = vsel %vm751_vm0, %v496_v4, 0  ;;  %v7293_v11 = vsel %vm751_vm0, %v6101_v5, 0  ;;  %v7302_v12 = vsel %vm751_vm0, %v7272_v6, 0  ;;  %s6026_s19 = sshll.u32 %s7162_s21, 2 }
  0x16   : > { %s8937_s9 = smov (!%p377_p7, %s6356_s9), 17  ;;  %v7306_v13 = vsel %vm751_vm0, %v7277_v7, 0  ;;  %v7310_v14 = vsel %vm751_vm0, %v7282_v8, 0  ;;  %v7314_v15 = vsel %vm751_vm0, %v7287_v9, 0  ;;  %vm726_vm5 = vcmask 31744   ;;  %vm7368_vm8 = vmor %vm2004_vm3, %vm2005_vm4  ;;  %p390_p8 = scmp.lt.s32.totalorder %s6026_s19, 7 }
  0x17   : > { %s363_s7 = sadd.s32 %s6998_s14, %s6997_s15  ;;  %s6999_s10 = smul.u32 3, %s8937_s9  ;;  %8908 = vst [vmem:[#allocation3_spill] sm:$0xff] %v7310_v14  ;;  %8909 = vst [vmem:[#allocation4_spill] sm:$0xff] %v7314_v15  ;;  %vm505_vm6 = vsmask.f32 3328  ;;  %v8910_v46 = vmov 0 }
  0x18   : > { %s6022_s8 = sshll.u32 %s363_s7, 2  ;;  %vm506_vm7 = vsmask.f32 7440  ;;  %v8911_v46 = vsel %vm7368_vm8, 4294967295, %v8910_v46  ;;  %s8939_s19 = smov (!%p390_p8, %s6026_s19), 7 }
  0x19   : > { %s7298_s13 = scalar_lea.vmem %s8897_s0, %s6022_s8  ;;  %s7319_s9 = sadd.s32 %s6999_s10, %s6998_s14  ;;  %8912 = vst [vmem:[#allocation5_spill] sm:$0xff] %v8911_v46  ;;  %vm7412_vm9 = vmor %vm505_vm6, %vm506_vm7 }
  0x1a   : > { %v416_v16 = vld [vmem:[%s7298_s13] sm:$0xf]  ;;  %v417_v17 = vld [vmem:[%s7298_s13 + $0x4] sm:$0xf]  ;;  %v418_v18 = vld [vmem:[%s7298_s13 + $0x8] sm:$0x1] }
  0x1b   : > { %441 = vst.msk [vmem:[#allocation2] sm:$0xf] %vm440_vm1, %v416_v16  ;;  %442 = vst.msk [vmem:[#allocation2 + $0x4] sm:$0xf] %vm440_vm1, %v417_v17  ;;  %v419_v19 = vld [vmem:[%s7298_s13 + $0xc] sm:$0xf] }
  0x1c   : > { %444 = vst.msk [vmem:[#allocation2 + $0x8] sm:$0x1] %vm443_vm2, %v418_v18  ;;  %v420_v20 = vld [vmem:[%s7298_s13 + $0x10] sm:$0xf]  ;;  %v421_v21 = vld [vmem:[%s7298_s13 + $0x14] sm:$0x1] }
  0x1d   : > { %445 = vst.msk [vmem:[#allocation2 + $0xc] sm:$0xf] %vm440_vm1, %v419_v19  ;;  %446 = vst.msk [vmem:[#allocation2 + $0x10] sm:$0xf] %vm440_vm1, %v420_v20  ;;  %v422_v22 = vld [vmem:[%s7298_s13 + $0x18] sm:$0xf] }
  0x1e   : > { %447 = vst.msk [vmem:[#allocation2 + $0x14] sm:$0x1] %vm443_vm2, %v421_v21  ;;  %v423_v23 = vld [vmem:[%s7298_s13 + $0x1c] sm:$0xf]  ;;  %v424_v24 = vld [vmem:[%s7298_s13 + $0x20] sm:$0x1] }
  0x1f   : > { %448 = vst.msk [vmem:[#allocation2 + $0x18] sm:$0xf] %vm440_vm1, %v422_v22  ;;  %449 = vst.msk [vmem:[#allocation2 + $0x1c] sm:$0xf] %vm440_vm1, %v423_v23  ;;  %v425_v25 = vld [vmem:[%s7298_s13 + $0x24] sm:$0xf] }
  0x20   : > { %450 = vst.msk [vmem:[#allocation2 + $0x20] sm:$0x1] %vm443_vm2, %v424_v24  ;;  %v426_v26 = vld [vmem:[%s7298_s13 + $0x28] sm:$0xf]  ;;  %v427_v27 = vld [vmem:[%s7298_s13 + $0x2c] sm:$0x1] }
  0x21   : > { %451 = vst.msk [vmem:[#allocation2 + $0x24] sm:$0xf] %vm440_vm1, %v425_v25  ;;  %452 = vst.msk [vmem:[#allocation2 + $0x28] sm:$0xf] %vm440_vm1, %v426_v26  ;;  %v428_v28 = vld [vmem:[%s7298_s13 + $0x30] sm:$0xf] }
  0x22   : > { %453 = vst.msk [vmem:[#allocation2 + $0x2c] sm:$0x1] %vm443_vm2, %v427_v27  ;;  %v429_v29 = vld [vmem:[%s7298_s13 + $0x34] sm:$0xf]  ;;  %v430_v30 = vld [vmem:[%s7298_s13 + $0x38] sm:$0x1] }
  0x23   : > { %454 = vst.msk [vmem:[#allocation2 + $0x30] sm:$0xf] %vm440_vm1, %v428_v28  ;;  %455 = vst.msk [vmem:[#allocation2 + $0x34] sm:$0xf] %vm440_vm1, %v429_v29  ;;  %v431_v31 = vld [vmem:[%s7298_s13 + $0x3c] sm:$0xf] }
  0x24   : > { %456 = vst.msk [vmem:[#allocation2 + $0x38] sm:$0x1] %vm443_vm2, %v430_v30  ;;  %v432_v32 = vld [vmem:[%s7298_s13 + $0x40] sm:$0xf]  ;;  %v433_v33 = vld [vmem:[%s7298_s13 + $0x44] sm:$0x1] }
  0x25   : > { %457 = vst.msk [vmem:[#allocation2 + $0x3c] sm:$0xf] %vm440_vm1, %v431_v31  ;;  %458 = vst.msk [vmem:[#allocation2 + $0x40] sm:$0xf] %vm440_vm1, %v432_v32  ;;  %v434_v34 = vld [vmem:[%s7298_s13 + $0x48] sm:$0xf] }
  0x26   : > { %459 = vst.msk [vmem:[#allocation2 + $0x44] sm:$0x1] %vm443_vm2, %v433_v33  ;;  %v435_v35 = vld [vmem:[%s7298_s13 + $0x4c] sm:$0xf]  ;;  %v436_v36 = vld [vmem:[%s7298_s13 + $0x50] sm:$0x1] }
  0x27   : > { %460 = vst.msk [vmem:[#allocation2 + $0x48] sm:$0xf] %vm440_vm1, %v434_v34  ;;  %461 = vst.msk [vmem:[#allocation2 + $0x4c] sm:$0xf] %vm440_vm1, %v435_v35  ;;  %v437_v37 = vld [vmem:[%s7298_s13 + $0x54] sm:$0xf] }
  0x28   : > { %462 = vst.msk [vmem:[#allocation2 + $0x50] sm:$0x1] %vm443_vm2, %v436_v36  ;;  %v438_v38 = vld [vmem:[%s7298_s13 + $0x58] sm:$0xf]  ;;  %v439_v39 = vld [vmem:[%s7298_s13 + $0x5c] sm:$0x1] }
  0x29   : > { %v1755_v40 = vld [vmem:[#allocation2 + $0x4] sm:$0xf]  ;;  %v1756_v41 = vld [vmem:[#allocation2 + $0x8] sm:$0x1]  ;;  %v1972_v42 = vld [vmem:[#allocation2] sm:$0xe] }
  0x2a   : > { %463 = vst.msk [vmem:[#allocation2 + $0x54] sm:$0xf] %vm440_vm1, %v437_v37  ;;  %464 = vst.msk [vmem:[#allocation2 + $0x58] sm:$0xf] %vm440_vm1, %v438_v38  ;;  %v1788_v43 = vshll.u32 %v1755_v40, 16  ;;  %v1792_v44 = vshrl.u32 %v1755_v40, 16 }
  0x2b   : > { %465 = vst.msk [vmem:[#allocation2 + $0x5c] sm:$0x1] %vm443_vm2, %v439_v39  ;;  %v1798_v45 = vshll.u32 %v1756_v41, 16  ;;  %v6102_v47 = vrot.slane %v1972_v42, 9  ;;  %v1758_v48 = vld [vmem:[#allocation2 + $0x10] sm:$0xf] }
  0x2c   : > { %v2009_v49 = vrot.slane %v1755_v40, 5  ;;  %v2012_v50 = vrot.slane %v1756_v41, 5  ;;  %v1759_v51 = vld [vmem:[#allocation2 + $0x14] sm:$0x1]  ;;  %v1812_v52 = vshll.u32 %v1758_v48, 16  ;;  %v1816_v53 = vshrl.u32 %v1758_v48, 16 }
  0x2d   : > { %v7372_v54 = vrot.slane %v1788_v43, 5  ;;  %v7374_v55 = vrot.slane %v1792_v44, 4  ;;  %v7376_v56 = vrot.slane %v1798_v45, 5  ;;  %v1822_v57 = vshll.u32 %v1759_v51, 16  ;;  %v1973_v58 = vld [vmem:[#allocation2 + $0xc] sm:$0xe] }
  0x2e   : > { %v2010_v59 = vsel %vm7368_vm8, %v6102_v47, %v2009_v49  ;;  %v2011_v60 = vrot.slane %v2009_v49, 4  ;;  %v7380_v61 = vrot.slane %v1812_v52, 5  ;;  %v1818_v62 = vrot.slane %v1816_v53, 4  ;;  %v7382_v63 = vld [vmem:[#allocation2] sm:$0xf]  ;;  %s6025_s14 = sshll.u32 %s7319_s9, 2 }
  0x2f   : > { %v7384_v0 = vrot.slane %v1822_v57, 5  ;;  %v6103_v1 = vrot.slane %v1973_v58, 9  ;;  %v2016_v2 = vrot.slane %v1758_v48, 5  ;;  %v2019_v3 = vrot.slane %v1759_v51, 5  ;;  %v7386_v4 = vld [vmem:[#allocation2 + $0x4] sm:$0xf]  ;;  %s7600_s17 = scalar_lea.vmem %s8898_s1, %s6025_s14 }
  0x30   : > { %v2013_v5 = vsel %vm7368_vm8, %v2011_v60, %v2012_v50  ;;  %v1819_v16 = vor.u32 %v1818_v62, %v7380_v61  ;;  %v497_v17 = vld [vmem:[#allocation2 + $0x8] sm:$0x1]  ;;  %v509_v18 = vshrl.u32 %v7382_v63, 16  ;;  %v512_v19 = vshll.u32 %v7382_v63, 16  ;;  %v7393_v20 = vld [vmem:[#allocation2 + $0xc] sm:$0xf] }
  0x31   : > { %v6111_v21 = vcombine.low %v2010_v59, %v2013_v5  ;;  %v2017_v22 = vsel %vm7368_vm8, %v6103_v1, %v2016_v2  ;;  %v2018_v23 = vrot.slane %v2016_v2, 4  ;;  %v518_v24 = vshll.u32 %v7386_v4, 16  ;;  %v7401_v29 = vld [vmem:[#allocation2 + $0x10] sm:$0xf]  ;;  %v498_v33 = vld [vmem:[#allocation2 + $0x14] sm:$0x1] }
  0x32   : > { %v7398_v25 = vrot.slane %v1819_v16, 4  ;;  %v511_v26 = vrot.slane %v509_v18, 4  ;;  %v514_v27 = vrot.slane %v512_v19, 5  ;;  %v522_v28 = vshrl.u32 %v7386_v4, 16  ;;  %v7408_v39 = vld [vmem:[#allocation2 + $0x1c] sm:$0xf] }
  0x33   : > { %6575 = vmatprep.mubr.msk.bf16.mxu1 %vm726_vm5, %v6111_v21  ;;  %v2020_v30 = vsel %vm7368_vm8, %v2018_v23, %v2019_v3  ;;  %v520_v31 = vrot.slane %v518_v24, 5  ;;  %v528_v32 = vshll.u32 %v497_v17, 16  ;;  %v533_v34 = vshrl.u32 %v7393_v20, 16  ;;  %v1974_v40 = vld [vmem:[#allocation2 + $0x18] sm:$0xe]  ;;  %s6027_s21 = sshll.u32 %s8933_s22, 3 }
  0x34   : > { %v6112_v35 = vcombine.low %v2017_v22, %v2020_v30  ;;  %v515_v36 = vor.u32 %v514_v27, %v511_v26  ;;  %v524_v37 = vrot.slane %v522_v28, 4  ;;  %v536_v38 = vshll.u32 %v7393_v20, 16  ;;  %v7418_v47 = vld [vmem:[#allocation2 + $0x20] sm:$0x1]  ;;  %v7421_v52 = vld [vmem:[#allocation2 + $0x28] sm:$0xf]  ;;  %s8612_s20 = sadd.s32 %s6027_s21, %s8939_s19 }
  0x35   : > { %v530_v42 = vrot.slane %v528_v32, 5  ;;  %v535_v43 = vrot.slane %v533_v34, 4  ;;  %v542_v44 = vshll.u32 %v7401_v29, 16  ;;  %v546_v45 = vshrl.u32 %v7401_v29, 16  ;;  %v1975_v60 = vld [vmem:[#allocation2 + $0x24] sm:$0xe]  ;;  %s8620_s30 = scalar_lea.vmem %s8902_s5, %s8612_s20  ;;  %s8668_s8 = scalar_lea.vmem %s8903_s6, %s8612_s20 }
  0x36   : > { %6576 = vmatmul.mubr.msk.bf16.vlgmr.msra.gmra.mrb[0].mxu1 %vm726_vm5, %v6112_v35  ;;  %v516_v48 = vrot.slane %v515_v36, 4  ;;  %v525_v49 = vor.u32 %v524_v37, %v520_v31  ;;  %v538_v50 = vrot.slane %v536_v38, 5  ;;  %v552_v51 = vshll.u32 %v498_v33, 16  ;;  %v7427_v5 = vld [vmem:[#allocation2 + $0x2c] sm:$0x1]  ;;  %s6028_s10 = sshll.u32 %s8612_s20, 2 }
  0x37   : > { %v544_v53 = vrot.slane %v542_v44, 5  ;;  %v548_v57 = vrot.slane %v546_v45, 4  ;;  %6592 = vmatpush3.bf16.msra.mxu1 %v7293_v11  ;;  %v6104_v58 = vrot.slane %v1974_v40, 9  ;;  %v2023_v59 = vrot.slane %v7408_v39, 5  ;;  %v7434_v19 = vld [vmem:[#allocation2 + $0x18] sm:$0xf]  ;;  %s8743_s13 = scalar_lea.vmem %s8901_s4, %s6028_s10 }
  0x38   : > { %v521_v62 = vsel %vm7412_vm9, %v516_v48, %v520_v31  ;;  %v526_v1 = vrot.slane %v525_v49, 4  ;;  %v539_v2 = vor.u32 %v538_v50, %v535_v43  ;;  %v554_v3 = vrot.slane %v552_v51, 5  ;;  %6987 = vmatprep.subr.msk.bf16.mxu1 %vm751_vm0, %v7277_v7  ;;  %v7439_v26 = vld [vmem:[#allocation2 + $0x1c] sm:$0xf]  ;;  %v499_v31 = vld [vmem:[#allocation2 + $0x20] sm:$0x1] }
  0x39   : > { %v549_v16 = vor.u32 %v548_v57, %v544_v53  ;;  %v2024_v17 = vsel %vm7368_vm8, %v6104_v58, %v2023_v59  ;;  %v2025_v11 = vrot.slane %v2023_v59, 4  ;;  %v2026_v18 = vrot.slane %v7418_v47, 5  ;;  %v7460_v49 = vld [vmem:[#allocation2 + $0x28] sm:$0xf]  ;;  %v500_v50 = vld [vmem:[#allocation2 + $0x2c] sm:$0x1] }
  0x3a   : > { %v531_v21 = vsel %vm7412_vm9, %v526_v1, %v530_v42  ;;  %v540_v22 = vrot.slane %v539_v2, 4  ;;  %v6105_v23 = vrot.slane %v1975_v60, 9  ;;  %v2030_v24 = vrot.slane %v7421_v52, 5  ;;  %v7454_v42 = vld [vmem:[#allocation2 + $0x24] sm:$0xf] }
  0x3b   : > { %v6034_v27 = vcombine.low %v521_v62, %v531_v21  ;;  %v550_v7 = vrot.slane %v549_v16, 4  ;;  %v2027_v28 = vsel %vm7368_vm8, %v2025_v11, %v2026_v18  ;;  %v2033_v30 = vrot.slane %v7427_v5, 5  ;;  %v7462_v59 = vld [vmem:[#allocation2 + $0x34] sm:$0xf]  ;;  %v1976_v60 = vld [vmem:[#allocation2 + $0x30] sm:$0xe] }
  0x3c   : > { %v545_v32 = vsel %vm7412_vm9, %v540_v22, %v544_v53  ;;  %v6113_v33 = vcombine.low %v2024_v17, %v2027_v28  ;;  %v2031_v34 = vsel %vm7368_vm8, %v6105_v23, %v2030_v24  ;;  %v2032_v35 = vrot.slane %v2030_v24, 4  ;;  %v7467_v16 = vld [vmem:[#allocation2 + $0x38] sm:$0x1]  ;;  %v7473_v22 = vld [vmem:[#allocation2 + $0x40] sm:$0xf] }
  0x3d   : > { %6503 = vmatprep.mubr.msk.bf16.mxu0 %vm726_vm5, %v6034_v27  ;;  %v555_v36 = vsel %vm7412_vm9, %v550_v7, %v554_v3  ;;  %v557_v37 = vshrl.u32 %v7434_v19, 16  ;;  %v560_v38 = vshll.u32 %v7434_v19, 16  ;;  %v566_v40 = vshll.u32 %v7439_v26, 16  ;;  %v1977_v28 = vld [vmem:[#allocation2 + $0x3c] sm:$0xe] }
  0x3e   : > { %v6035_v43 = vcombine.low %v545_v32, %v555_v36  ;;  %6579 = vmatprep.mubr.msk.bf16.mxu1 %vm726_vm5, %v6113_v33  ;;  %v2034_v44 = vsel %vm7368_vm8, %v2032_v35, %v2033_v30  ;;  %v570_v45 = vshrl.u32 %v7439_v26, 16  ;;  %v576_v48 = vshll.u32 %v499_v31, 16 }
  0x3f   : > { %v6114_v51 = vcombine.low %v2031_v34, %v2034_v44  ;;  %v559_v53 = vrot.slane %v557_v37, 4  ;;  %v562_v57 = vrot.slane %v560_v38, 5  ;;  %v568_v58 = vrot.slane %v566_v40, 5  ;;  %v7481_v40 = vld [vmem:[#allocation2 + $0x44] sm:$0x1] }
  0x40   : > { %6504 = vmatmul.mubr.msk.bf16.vlgmr.msra.gmra.mrb[0].mxu0 %vm726_vm5, %v6035_v43  ;;  %v572_v62 = vrot.slane %v570_v45, 4  ;;  %v578_v1 = vrot.slane %v576_v48, 5  ;;  %v581_v2 = vshrl.u32 %v7454_v42, 16  ;;  %v584_v3 = vshll.u32 %v7454_v42, 16 }
  0x41   : > { %6520 = vmatpush3.bf16.msra.mxu0 %v7290_v10  ;;  %6580 = vmatmul.mubr.msk.bf16.gmra.mrb[4].mxu1 %vm726_vm5, %v6114_v51  ;;  %v563_v17 = vor.u32 %v562_v57, %v559_v53  ;;  %v590_v11 = vshll.u32 %v7460_v49, 16  ;;  %v594_v18 = vshrl.u32 %v7460_v49, 16  ;;  %v600_v21 = vshll.u32 %v500_v50, 16  ;;  %v7490_v53 = vld [vmem:[#allocation2 + $0x34] sm:$0xf] }
  0x42   : > { %v573_v23 = vor.u32 %v572_v62, %v568_v58  ;;  %v583_v24 = vrot.slane %v581_v2, 4  ;;  %v586_v27 = vrot.slane %v584_v3, 5  ;;  %v6106_v7 = vrot.slane %v1976_v60, 9  ;;  %6983 = vmatprep.subr.msk.bf16.mxu0 %vm751_vm0, %v7272_v6  ;;  %v7484_v6 = vld [vmem:[#allocation2 + $0x30] sm:$0xf] }
  0x43   : > { %v564_v30 = vrot.slane %v563_v17, 4  ;;  %v592_v10 = vrot.slane %v590_v11, 5  ;;  %v596_v31 = vrot.slane %v594_v18, 4  ;;  %v602_v32 = vrot.slane %v600_v21, 5  ;;  %v501_v17 = vld [vmem:[#allocation2 + $0x38] sm:$0x1] }
  0x44   : > { %v574_v33 = vrot.slane %v573_v23, 4  ;;  %v587_v34 = vor.u32 %v586_v27, %v583_v24  ;;  %v2037_v35 = vrot.slane %v7462_v59, 5  ;;  %v2040_v36 = vrot.slane %v7467_v16, 5  ;;  %v7505_v27 = vld [vmem:[#allocation2 + $0x3c] sm:$0xf] }
  0x45   : > { %v569_v37 = vsel %vm7412_vm9, %v564_v30, %v568_v58  ;;  %v597_v38 = vor.u32 %v596_v31, %v592_v10  ;;  %v6107_v43 = vrot.slane %v1977_v28, 9  ;;  %v2044_v44 = vrot.slane %v7473_v22, 5 }
  0x46   : > { %v579_v45 = vsel %vm7412_vm9, %v574_v33, %v578_v1  ;;  %v588_v48 = vrot.slane %v587_v34, 4  ;;  %v2038_v50 = vsel %vm7368_vm8, %v6106_v7, %v2037_v35  ;;  %v2039_v51 = vrot.slane %v2037_v35, 4  ;;  %v7507_v7 = vld [vmem:[#allocation2 + $0x40] sm:$0xf]  ;;  %v502_v33 = vld [vmem:[#allocation2 + $0x44] sm:$0x1] }
  0x47   : > { %v6036_v57 = vcombine.low %v569_v37, %v579_v45  ;;  %v598_v58 = vrot.slane %v597_v38, 4  ;;  %v2045_v60 = vsel %vm7368_vm8, %v6107_v43, %v2044_v44  ;;  %v2046_v62 = vrot.slane %v2044_v44, 4  ;;  %v7513_v37 = vld [vmem:[#allocation2 + $0x4c] sm:$0xf]  ;;  %v7515_v38 = vld [vmem:[#allocation2 + $0x50] sm:$0x1] }
  0x48   : > { %v593_v2 = vsel %vm7412_vm9, %v588_v48, %v592_v10  ;;  %v2041_v3 = vsel %vm7368_vm8, %v2039_v51, %v2040_v36  ;;  %v2047_v1 = vrot.slane %v7481_v40, 5  ;;  %v605_v11 = vshrl.u32 %v7484_v6, 16 }
  0x49   : > { %6507 = vmatprep.mubr.msk.bf16.mxu0 %vm726_vm5, %v6036_v57  ;;  %v603_v18 = vsel %vm7412_vm9, %v598_v58, %v602_v32  ;;  %v6115_v21 = vcombine.low %v2038_v50, %v2041_v3  ;;  %v608_v23 = vshll.u32 %v7484_v6, 16  ;;  %v614_v24 = vshll.u32 %v7490_v53, 16  ;;  %v1978_v50 = vld [vmem:[#allocation2 + $0x48] sm:$0xe] }
  0x4a   : > { %v6037_v28 = vcombine.low %v593_v2, %v603_v18  ;;  %v2048_v30 = vsel %vm7368_vm8, %v2046_v62, %v2047_v1  ;;  %v607_v10 = vrot.slane %v605_v11, 4  ;;  %v618_v31 = vshrl.u32 %v7490_v53, 16  ;;  %v7523_v62 = vld [vmem:[#allocation2 + $0x58] sm:$0xf]  ;;  %v1979_v11 = vld [vmem:[#allocation2 + $0x54] sm:$0xe] }
  0x4b   : > { %6583 = vmatprep.mubr.msk.bf16.mxu1 %vm726_vm5, %v6115_v21  ;;  %v6116_v32 = vcombine.low %v2045_v60, %v2048_v30  ;;  %v610_v34 = vrot.slane %v608_v23, 5  ;;  %v616_v35 = vrot.slane %v614_v24, 5  ;;  %v624_v36 = vshll.u32 %v501_v17, 16 }
  0x4c   : > { %6508 = vmatmul.mubr.msk.bf16.gmra.mrb[4].mxu0 %vm726_vm5, %v6037_v28  ;;  %v620_v43 = vrot.slane %v618_v31, 4  ;;  %v629_v44 = vshrl.u32 %v7505_v27, 16  ;;  %v632_v45 = vshll.u32 %v7505_v27, 16  ;;  %v638_v48 = vshll.u32 %v7507_v7, 16 }
  0x4d   : > { %6584 = vmatmul.mubr.msk.bf16.gmra.mrb[8].mxu1 %vm726_vm5, %v6116_v32  ;;  %v611_v51 = vor.u32 %v610_v34, %v607_v10  ;;  %v626_v57 = vrot.slane %v624_v36, 5  ;;  %v642_v58 = vshrl.u32 %v7507_v7, 16  ;;  %v648_v60 = vshll.u32 %v502_v33, 16  ;;  %v7529_v34 = vld [vmem:[#allocation2 + $0x5c] sm:$0x1] }
  0x4e   : > { %v621_v2 = vor.u32 %v620_v43, %v616_v35  ;;  %v631_v3 = vrot.slane %v629_v44, 4  ;;  %v634_v1 = vrot.slane %v632_v45, 5  ;;  %v640_v17 = vrot.slane %v638_v48, 5  ;;  %v7532_v44 = vld [vmem:[#allocation2 + $0x48] sm:$0xf] }
  0x4f   : > { %v612_v18 = vrot.slane %v611_v51, 4  ;;  %v644_v21 = vrot.slane %v642_v58, 4  ;;  %v650_v23 = vrot.slane %v648_v60, 5  ;;  %v6108_v24 = vrot.slane %v1978_v50, 9  ;;  %8915 = vst [vmem:[#allocation6_spill] sm:$0xff] %v7532_v44 }
  0x50   : > { %v622_v28 = vrot.slane %v621_v2, 4  ;;  %v635_v30 = vor.u32 %v634_v1, %v631_v3  ;;  %v2051_v31 = vrot.slane %v7513_v37, 5  ;;  %v2054_v10 = vrot.slane %v7515_v38, 5  ;;  %v7538_v58 = vld [vmem:[#allocation2 + $0x4c] sm:$0xf] }
  0x51   : > { %v617_v33 = vsel %vm7412_vm9, %v612_v18, %v616_v35  ;;  %v645_v32 = vor.u32 %v644_v21, %v640_v17  ;;  %v6109_v36 = vrot.slane %v1979_v11, 9  ;;  %v2058_v43 = vrot.slane %v7523_v62, 5  ;;  %v503_v1 = vld [vmem:[#allocation2 + $0x50] sm:$0x1]  ;;  %v7542_v11 = vld [vmem:[#allocation2 + $0x54] sm:$0xf] }
  0x52   : > { %v627_v45 = vsel %vm7412_vm9, %v622_v28, %v626_v57  ;;  %v636_v48 = vrot.slane %v635_v30, 4  ;;  %v2052_v50 = vsel %vm7368_vm8, %v6108_v24, %v2051_v31  ;;  %v2053_v51 = vrot.slane %v2051_v31, 4  ;;  %8916 = vst [vmem:[#allocation7_spill] sm:$0xff] %v7542_v11  ;;  %v7550_v28 = vld [vmem:[#allocation2 + $0x58] sm:$0xf] }
  0x53   : > { %v6038_v60 = vcombine.low %v617_v33, %v627_v45  ;;  %v646_v35 = vrot.slane %v645_v32, 4  ;;  %v2059_v2 = vsel %vm7368_vm8, %v6109_v36, %v2058_v43  ;;  %v2060_v3 = vrot.slane %v2058_v43, 4  ;;  %v504_v45 = vld [vmem:[#allocation2 + $0x5c] sm:$0x1] }
  0x54   : > { %v641_v18 = vsel %vm7412_vm9, %v636_v48, %v640_v17  ;;  %v2055_v57 = vsel %vm7368_vm8, %v2053_v51, %v2054_v10  ;;  %v2061_v21 = vrot.slane %v7529_v34, 5  ;;  %v653_v24 = vshrl.u32 %v7532_v44, 16 }
  0x55   : > { %6511 = vmatprep.mubr.msk.bf16.mxu0 %vm726_vm5, %v6038_v60  ;;  %v651_v30 = vsel %vm7412_vm9, %v646_v35, %v650_v23  ;;  %v6117_v31 = vcombine.low %v2052_v50, %v2055_v57  ;;  %v656_v33 = vshll.u32 %v7532_v44, 16  ;;  %v662_v32 = vshll.u32 %v7538_v58, 16 }
  0x56   : > { %v6039_v17 = vcombine.low %v641_v18, %v651_v30  ;;  %v2062_v10 = vsel %vm7368_vm8, %v2060_v3, %v2061_v21  ;;  %v655_v36 = vrot.slane %v653_v24, 4  ;;  %v666_v43 = vshrl.u32 %v7538_v58, 16  ;;  %v1754_v3 = vld [vmem:[#allocation2] sm:$0xf] }
  0x57   : > { %6587 = vmatprep.mubr.msk.bf16.mxu1 %vm726_vm5, %v6117_v31  ;;  %v6118_v48 = vcombine.low %v2059_v2, %v2062_v10  ;;  %v658_v51 = vrot.slane %v656_v33, 5  ;;  %v664_v60 = vrot.slane %v662_v32, 5  ;;  %v672_v15 = vshll.u32 %v503_v1, 16  ;;  %v1757_v32 = vld [vmem:[#allocation2 + $0xc] sm:$0xf] }
  0x58   : > { %6512 = vmatmul.mubr.msk.bf16.gmra.mrb[8].mxu0 %vm726_vm5, %v6039_v17  ;;  %v668_v23 = vrot.slane %v666_v43, 4  ;;  %v677_v50 = vshrl.u32 %v7542_v11, 16  ;;  %v680_v35 = vshll.u32 %v7542_v11, 16  ;;  %v686_v18 = vshll.u32 %v7550_v28, 16 }
  0x59   : > { %6588 = vmatmul.mubr.msk.bf16.gmra.mrb[12].mxu1 %vm726_vm5, %v6118_v48  ;;  %v659_v57 = vor.u32 %v658_v51, %v655_v36  ;;  %v674_v21 = vrot.slane %v672_v15, 5  ;;  %v690_v24 = vshrl.u32 %v7550_v28, 16  ;;  %v696_v2 = vshll.u32 %v504_v45, 16 }
  0x5a   : > { %v669_v30 = vor.u32 %v668_v23, %v664_v60  ;;  %v679_v31 = vrot.slane %v677_v50, 4  ;;  %v682_v1 = vrot.slane %v680_v35, 5  ;;  %v688_v33 = vrot.slane %v686_v18, 5 }
  0x5b   : > { %v660_v17 = vrot.slane %v659_v57, 4  ;;  %v692_v10 = vrot.slane %v690_v24, 4  ;;  %v698_v43 = vrot.slane %v696_v2, 5  ;;  %v1779_v46 = vshrl.u32 %v1754_v3, 16 }
  0x5c   : > { %v670_v14 = vrot.slane %v669_v30, 4  ;;  %v683_v11 = vor.u32 %v682_v1, %v679_v31  ;;  %v1782_v44 = vshll.u32 %v1754_v3, 16  ;;  %v1795_v48 = vor.u32 %v7374_v55, %v7372_v54  ;;  %v1760_v30 = vld [vmem:[#allocation2 + $0x18] sm:$0xf]  ;;  %v1763_v1 = vld [vmem:[#allocation2 + $0x24] sm:$0xf] }
  0x5d   : > { %v665_v15 = vsel %vm7412_vm9, %v660_v17, %v664_v60  ;;  %v693_v36 = vor.u32 %v692_v10, %v688_v33  ;;  %v1781_v45 = vrot.slane %v1779_v46, 4  ;;  %v1803_v51 = vshrl.u32 %v1757_v32, 16 }
  0x5e   : > { %v675_v23 = vsel %vm7412_vm9, %v670_v14, %v674_v21  ;;  %v684_v50 = vrot.slane %v683_v11, 4  ;;  %v1784_v35 = vrot.slane %v1782_v44, 5  ;;  %v1796_v18 = vrot.slane %v1795_v48, 4 }
  0x5f   : > { %v6040_v57 = vcombine.low %v665_v15, %v675_v23  ;;  %v694_v24 = vrot.slane %v693_v36, 4  ;;  %v1805_v2 = vrot.slane %v1803_v51, 4  ;;  %v1806_v3 = vshll.u32 %v1757_v32, 16 }
  0x60   : > { %v689_v55 = vsel %vm7412_vm9, %v684_v50, %v688_v33  ;;  %v1785_v31 = vor.u32 %v1784_v35, %v1781_v45  ;;  %v1801_v46 = vsel %vm7412_vm9, %v1796_v18, %v7376_v56  ;;  %v1825_v14 = vsel %vm7412_vm9, %v7398_v25, %v7384_v0 }
  0x61   : > { %6515 = vmatprep.mubr.msk.bf16.mxu0 %vm726_vm5, %v6040_v57  ;;  %v699_v44 = vsel %vm7412_vm9, %v694_v24, %v698_v43  ;;  %v1808_v11 = vrot.slane %v1806_v3, 5  ;;  %v6050_v60 = vcombine.low %v7382_v63, %v7386_v4  ;;  %v6051_v21 = vcombine.low %v7393_v20, %v7401_v29  ;;  %v1766_v57 = vld [vmem:[#allocation2 + $0x30] sm:$0xf]  ;;  %v466_v24 = vld [vmem:[%s7600_s17] sm:$0xf] }
  0x62   : > { %v6041_v56 = vcombine.low %v689_v55, %v699_v44  ;;  %v1786_v33 = vrot.slane %v1785_v31, 4  ;;  %v1827_v32 = vshrl.u32 %v1760_v30, 16  ;;  %v1830_v17 = vshll.u32 %v1760_v30, 16  ;;  %v467_v31 = vld [vmem:[%s7600_s17 + $0x4] sm:$0xf] }
  0x63   : > { %v1809_v10 = vor.u32 %v1808_v11, %v1805_v2  ;;  %v1836_v0 = vshll.u32 %v7408_v39, 16  ;;  %v1840_v25 = vshrl.u32 %v7408_v39, 16  ;;  %v1846_v43 = vshll.u32 %v7418_v47, 16  ;;  %473 = vst.msk [vmem:[#allocation2 + $0x60] sm:$0xf] %vm440_vm1, %v466_v24 }
  0x64   : > { %6516 = vmatmul.mubr.msk.bf16.gmra.mrb[12].mxu0 %vm726_vm5, %v6041_v56  ;;  %v1791_v63 = vsel %vm7412_vm9, %v1786_v33, %v7372_v54  ;;  %v1829_v4 = vrot.slane %v1827_v32, 4  ;;  %v1832_v20 = vrot.slane %v1830_v17, 5  ;;  %v1851_v29 = vshrl.u32 %v1763_v1, 16  ;;  %474 = vst.msk [vmem:[#allocation2 + $0x64] sm:$0xf] %vm440_vm1, %v467_v31 }
  0x65   : > { %v6127_v48 = vcombine.low %v1791_v63, %v1801_v46  ;;  %v1810_v15 = vrot.slane %v1809_v10, 4  ;;  %6521 = vmatprep.mubr.msk.bf16.mxu0 %vm726_vm5, %v6050_v60  ;;  %v1838_v39 = vrot.slane %v1836_v0, 5  ;;  %v1842_v47 = vrot.slane %v1840_v25, 4  ;;  %v468_v60 = vld [vmem:[%s7600_s17 + $0x8] sm:$0x1] }
  0x66   : > { %v1833_v36 = vor.u32 %v1832_v20, %v1829_v4  ;;  %v1848_v45 = vrot.slane %v1846_v43, 5  ;;  %v1853_v51 = vrot.slane %v1851_v29, 4  ;;  %v1854_v54 = vshll.u32 %v1763_v1, 16  ;;  %475 = vst.msk [vmem:[#allocation2 + $0x68] sm:$0x1] %vm443_vm2, %v468_v60 }
  0x67   : > { %6593 = vmatprep.mubr.msk.bf16.mxu1 %vm726_vm5, %v6127_v48  ;;  %v1815_v23 = vsel %vm7412_vm9, %v1810_v15, %v7380_v61  ;;  %v1843_v50 = vor.u32 %v1842_v47, %v1838_v39  ;;  %v1860_v35 = vshll.u32 %v7421_v52, 16  ;;  %v1864_v18 = vshrl.u32 %v7421_v52, 16  ;;  %v1769_v32 = vld [vmem:[#allocation2 + $0x3c] sm:$0xf] }
  0x68   : > { %v6128_v2 = vcombine.low %v1815_v23, %v1825_v14  ;;  %v1834_v3 = vrot.slane %v1833_v36, 4  ;;  %v1856_v30 = vrot.slane %v1854_v54, 5  ;;  %v1870_v55 = vshll.u32 %v7427_v5, 16  ;;  %v1772_v54 = vld [vmem:[#allocation2 + $0x48] sm:$0xf] }
  0x69   : > { %v1844_v46 = vrot.slane %v1843_v50, 4  ;;  %v1862_v44 = vrot.slane %v1860_v35, 5  ;;  %v1866_v11 = vrot.slane %v1864_v18, 4  ;;  %v6052_v61 = vcombine.low %v7434_v19, %v7439_v26 }
  0x6a   : > { %6594 = vmatmul.mubr.msk.bf16.vlgmr.msra.gmra.mrb[0].mxu1 %vm726_vm5, %v6128_v2  ;;  %v1839_v52 = vsel %vm7412_vm9, %v1834_v3, %v1838_v39  ;;  %v1857_v14 = vor.u32 %v1856_v30, %v1853_v51  ;;  %v1872_v1 = vrot.slane %v1870_v55, 5  ;;  %v6053_v5 = vcombine.low %v7454_v42, %v7460_v49  ;;  %v1775_v55 = vld [vmem:[#allocation2 + $0x54] sm:$0xf] }
  0x6b   : > { %6610 = vmatpush3.bf16.msra.mxu1 %v7306_v13  ;;  %v1849_v19 = vsel %vm7412_vm9, %v1844_v46, %v1848_v45  ;;  %v1867_v26 = vor.u32 %v1866_v11, %v1862_v44  ;;  %v1875_v56 = vshrl.u32 %v1766_v57, 16  ;;  %v1878_v33 = vshll.u32 %v1766_v57, 16 }
  0x6c   : > { %6522 = vmatmul.mubr.msk.bf16.vlgmr.msra.gmra.mrb[0].mxu0 %vm726_vm5, %v6051_v21  ;;  %v6129_v17 = vcombine.low %v1839_v52, %v1849_v19  ;;  %v1858_v10 = vrot.slane %v1857_v14, 4  ;;  %v1884_v0 = vshll.u32 %v7462_v59, 16  ;;  %v1888_v25 = vshrl.u32 %v7462_v59, 16  ;;  %6988 = vmatprep.subr.msk.bf16.mxu1 %vm751_vm0, %v7287_v9 }
  0x6d   : > { %6538 = vmatpush3.bf16.msra.mxu0 %v7302_v12  ;;  %v1868_v13 = vrot.slane %v1867_v26, 4  ;;  %6525 = vmatprep.mubr.msk.bf16.mxu0 %vm726_vm5, %v6052_v61  ;;  %v1877_v42 = vrot.slane %v1875_v56, 4  ;;  %v1880_v49 = vrot.slane %v1878_v33, 5  ;;  %v1894_v43 = vshll.u32 %v7467_v16, 16 }
  0x6e   : > { %6597 = vmatprep.mubr.msk.bf16.mxu1 %vm726_vm5, %v6129_v17  ;;  %v1863_v21 = vsel %vm7412_vm9, %v1858_v10, %v1862_v44  ;;  %v1886_v63 = vrot.slane %v1884_v0, 5  ;;  %v1890_v4 = vrot.slane %v1888_v25, 4  ;;  %v1899_v59 = vshrl.u32 %v1769_v32, 16  ;;  %6984 = vmatprep.subr.msk.bf16.mxu0 %vm751_vm0, %v7282_v8 }
  0x6f   : > { %v1873_v9 = vsel %vm7412_vm9, %v1868_v13, %v1872_v1  ;;  %v1881_v12 = vor.u32 %v1880_v49, %v1877_v42  ;;  %v1896_v20 = vrot.slane %v1894_v43, 5  ;;  %v1902_v29 = vshll.u32 %v1769_v32, 16  ;;  %v2361_v32 = vld [vmem:[#allocation2 + $0xc] sm:$0xf]  ;;  %v8917_v43 = vld [vmem:[#allocation6_spill] sm:$0xff] }
  0x70   : > { %v6130_v48 = vcombine.low %v1863_v21, %v1873_v9  ;;  %v1891_v15 = vor.u32 %v1890_v4, %v1886_v63  ;;  %v1901_v16 = vrot.slane %v1899_v59, 4  ;;  %v1908_v39 = vshll.u32 %v7473_v22, 16  ;;  %v8918_v59 = vld [vmem:[#allocation7_spill] sm:$0xff] }
  0x71   : > { %v1882_v47 = vrot.slane %v1881_v12, 4  ;;  %v1904_v36 = vrot.slane %v1902_v29, 5  ;;  %v1912_v45 = vshrl.u32 %v7473_v22, 16  ;;  %v1918_v51 = vshll.u32 %v7481_v40, 16  ;;  %v7676_v12 = vld [vmem:[#allocation2 + $0x14] sm:$0x1] }
  0x72   : > { %6598 = vmatmul.mubr.msk.bf16.gmra.mrb[4].mxu1 %vm726_vm5, %v6130_v48  ;;  %v1892_v8 = vrot.slane %v1891_v15, 4  ;;  %v1910_v23 = vrot.slane %v1908_v39, 5  ;;  %v6054_v50 = vcombine.low %v7484_v6, %v7490_v53  ;;  %v6055_v35 = vcombine.low %v7505_v27, %v7507_v7  ;;  %v2364_v15 = vld [vmem:[#allocation2 + $0x18] sm:$0xf] }
  0x73   : > { %v1887_v18 = vsel %vm7412_vm9, %v1882_v47, %v1886_v63  ;;  %v1905_v57 = vor.u32 %v1904_v36, %v1901_v16  ;;  %v1914_v24 = vrot.slane %v1912_v45, 4  ;;  %v1920_v2 = vrot.slane %v1918_v51, 5  ;;  %v7668_v63 = vld [vmem:[#allocation2 + $0x10] sm:$0xf] }
  0x74   : > { %6526 = vmatmul.mubr.msk.bf16.gmra.mrb[4].mxu0 %vm726_vm5, %v6053_v5  ;;  %v1897_v22 = vsel %vm7412_vm9, %v1892_v8, %v1896_v20  ;;  %v1923_v40 = vshrl.u32 %v1772_v54, 16  ;;  %v1926_v3 = vshll.u32 %v1772_v54, 16  ;;  %v1932_v30 = vshll.u32 %v7513_v37, 16  ;;  %v7684_v8 = vld [vmem:[#allocation2 + $0x1c] sm:$0xf] }
  0x75   : > { %v6131_v6 = vcombine.low %v1887_v18, %v1897_v22  ;;  %v1906_v53 = vrot.slane %v1905_v57, 4  ;;  %v1915_v31 = vor.u32 %v1914_v24, %v1910_v23  ;;  %6529 = vmatprep.mubr.msk.bf16.mxu0 %vm726_vm5, %v6054_v50  ;;  %v1936_v27 = vshrl.u32 %v7513_v37, 16 }
  0x76   : > { %v1925_v7 = vrot.slane %v1923_v40, 4  ;;  %v1928_v46 = vrot.slane %v1926_v3, 5  ;;  %v1934_v44 = vrot.slane %v1932_v30, 5  ;;  %v1942_v11 = vshll.u32 %v7515_v38, 16  ;;  %v7116_v3 = vld [vmem:[#allocation2 + $0xc] sm:$0xff]  }
  0x77   : > { %6601 = vmatprep.mubr.msk.bf16.mxu1 %vm726_vm5, %v6131_v6  ;;  %v1911_v61 = vsel %vm7412_vm9, %v1906_v53, %v1910_v23  ;;  %v1916_v60 = vrot.slane %v1915_v31, 4  ;;  %v1938_v52 = vrot.slane %v1936_v27, 4  ;;  %v1947_v14 = vshrl.u32 %v1775_v55, 16  ;;  %v2367_v30 = vld [vmem:[#allocation2 + $0x24] sm:$0xf] }
  0x78   : > { %v1929_v1 = vor.u32 %v1928_v46, %v1925_v7  ;;  %v1944_v5 = vrot.slane %v1942_v11, 5  ;;  %v1950_v19 = vshll.u32 %v1775_v55, 16  ;;  %v1956_v26 = vshll.u32 %v7523_v62, 16  ;;  %v7696_v11 = vld [vmem:[#allocation2 + $0x28] sm:$0xf] }
  0x79   : > { %v1921_v37 = vsel %vm7412_vm9, %v1916_v60, %v1920_v2  ;;  %v1939_v56 = vor.u32 %v1938_v52, %v1934_v44  ;;  %v1949_v33 = vrot.slane %v1947_v14, 4  ;;  %v1960_v38 = vshrl.u32 %v7523_v62, 16  ;;  %v7700_v52 = vld [vmem:[#allocation2 + $0x2c] sm:$0x1] }
  0x7a   : > { %v6132_v17 = vcombine.low %v1911_v61, %v1921_v37  ;;  %v1930_v10 = vrot.slane %v1929_v1, 4  ;;  %v1952_v0 = vrot.slane %v1950_v19, 5  ;;  %v1958_v25 = vrot.slane %v1956_v26, 5 }
  0x7b   : > { %v1940_v13 = vrot.slane %v1939_v56, 4  ;;  %v1962_v42 = vrot.slane %v1960_v38, 4  ;;  %v1966_v49 = vshll.u32 %v7529_v34, 16  ;;  %v6056_v21 = vcombine.low %v8917_v43, %v7538_v58 }
  0x7c   : > { %6602 = vmatmul.mubr.msk.bf16.gmra.mrb[8].mxu1 %vm726_vm5, %v6132_v17  ;;  %6530 = vmatmul.mubr.msk.bf16.gmra.mrb[8].mxu0 %vm726_vm5, %v6055_v35  ;;  %v1935_v62 = vsel %vm7412_vm9, %v1930_v10, %v1934_v44  ;;  %v1953_v4 = vor.u32 %v1952_v0, %v1949_v33  ;;  %v6057_v9 = vcombine.low %v8918_v59, %v7550_v28  ;;  %v2386_v20 = vshrl.u32 %v2361_v32, 16  ;;  %v7689_v35 = vld [vmem:[#allocation2 + $0x20] sm:$0x1]  ;;  %v2370_v17 = vld [vmem:[#allocation2 + $0x30] sm:$0xf] }
  0x7d   : > { %v1945_v34 = vsel %vm7412_vm9, %v1940_v13, %v1944_v5  ;;  %v1963_v58 = vor.u32 %v1962_v42, %v1958_v25  ;;  %v1968_v29 = vrot.slane %v1966_v49, 5  ;;  %6533 = vmatprep.mubr.msk.bf16.mxu0 %vm726_vm5, %v6056_v21  ;;  %v2389_v48 = vshll.u32 %v2361_v32, 16  ;;  %v7710_v42 = vld [vmem:[#allocation2 + $0x34] sm:$0xf]  ;;  %v7117_v21 = vld [vmem:[#allocation2 + $0x18] sm:$0xff]  }
  0x7e   : > { %v6133_v16 = vcombine.low %v1935_v62, %v1945_v34  ;;  %v1954_v39 = vrot.slane %v1953_v4, 4  ;;  %v2388_v47 = vrot.slane %v2386_v20, 4  ;;  %v2395_v36 = vshll.u32 %v7668_v63, 16  ;;  %v7714_v59 = vld [vmem:[#allocation2 + $0x38] sm:$0x1] }
  0x7f   : > { %v1964_v45 = vrot.slane %v1963_v58, 4  ;;  %v2391_v51 = vrot.slane %v2389_v48, 5  ;;  %v2399_v28 = vshrl.u32 %v7668_v63, 16  ;;  %v2405_v54 = vshll.u32 %v7676_v12, 16 }
  0x80   : > { %6605 = vmatprep.mubr.msk.bf16.mxu1 %vm726_vm5, %v6133_v16  ;;  %v1959_v23 = vsel %vm7412_vm9, %v1954_v39, %v1958_v25  ;;  %v2397_v50 = vrot.slane %v2395_v36, 5  ;;  %v2410_v18 = vshrl.u32 %v2364_v15, 16  ;;  %v2413_v57 = vshll.u32 %v2364_v15, 16 }
  0x81   : > { %v1969_v24 = vsel %vm7412_vm9, %v1964_v45, %v1968_v29  ;;  %v2392_v2 = vor.u32 %v2391_v51, %v2388_v47  ;;  %v2401_v22 = vrot.slane %v2399_v28, 4  ;;  %v2407_v40 = vrot.slane %v2405_v54, 5  ;;  %v7118_v29 = vld [vmem:[#allocation2 + $0x24] sm:$0xff]   ;;  %v2373_v47 = vld [vmem:[#allocation2 + $0x3c] sm:$0xf] }
  0x82   : > { %v6134_v55 = vcombine.low %v1959_v23, %v1969_v24  ;;  %v2412_v6 = vrot.slane %v2410_v18, 4  ;;  %v2415_v53 = vrot.slane %v2413_v57, 5  ;;  %v2419_v31 = vshll.u32 %v7684_v8, 16  ;;  %v7722_v54 = vld [vmem:[#allocation2 + $0x40] sm:$0xf] }
  0x83   : > { %v2393_v27 = vrot.slane %v2392_v2, 4  ;;  %v2402_v7 = vor.u32 %v2401_v22, %v2397_v50  ;;  %v2423_v46 = vshrl.u32 %v7684_v8, 16  ;;  %v2429_v44 = vshll.u32 %v7689_v35, 16  ;;  %v7727_v23 = vld [vmem:[%s8899_s2 + $0x12] sm:$0x3]  ;;  %v8919_v22 = vld [vmem:[#allocation3_spill] sm:$0xff] }
  0x84   : > { %6606 = vmatmul.mubr.msk.bf16.gmra.mrb[12].mxu1 %vm726_vm5, %v6134_v55  ;;  %6534 = vmatmul.mubr.msk.bf16.gmra.mrb[12].mxu0 %vm726_vm5, %v6057_v9  ;;  %v2416_v61 = vor.u32 %v2415_v53, %v2412_v6  ;;  %v2421_v60 = vrot.slane %v2419_v31, 5  ;;  %v2434_v14 = vshrl.u32 %v2367_v30, 16  ;;  %v2437_v1 = vshll.u32 %v2367_v30, 16  ;;  %v7732_v2 = vld [vmem:[#allocation2 + $0x44] sm:$0x1] }
  0x85   : > { %v2398_v5 = vsel %vm7412_vm9, %v2393_v27, %v2397_v50  ;;  %v2403_v19 = vrot.slane %v2402_v7, 4  ;;  %v2425_v26 = vrot.slane %v2423_v46, 4  ;;  %v2431_v37 = vrot.slane %v2429_v44, 5  ;;  %6539 = vmatprep.mubr.msk.bf16.mxu0 %vm726_vm5, %v7116_v3  ;;  %v7739_v6 = vld [vmem:[%s8899_s2 + $0x1a] sm:$0x3]  ;;  %v8920_v44 = vld [vmem:[#allocation4_spill] sm:$0xff] }
  0x86   : > { %v2417_v56 = vrot.slane %v2416_v61, 4  ;;  %v2436_v33 = vrot.slane %v2434_v14, 4  ;;  %v2439_v38 = vrot.slane %v2437_v1, 5  ;;  %v2443_v32 = vshll.u32 %v7696_v11, 16  ;;  %v2376_v46 = vld [vmem:[#allocation2 + $0x48] sm:$0xf] }
  0x87   : > { %v2408_v10 = vsel %vm7412_vm9, %v2403_v19, %v2407_v40  ;;  %v2426_v0 = vor.u32 %v2425_v26, %v2421_v60  ;;  %v2447_v25 = vshrl.u32 %v7696_v11, 16  ;;  %v2453_v13 = vshll.u32 %v7700_v52, 16 }
  0x88   : > { %v6144_v49 = vcombine.low %v2398_v5, %v2408_v10  ;;  %v2422_v43 = vsel %vm7412_vm9, %v2417_v56, %v2421_v60  ;;  %v2440_v62 = vor.u32 %v2439_v38, %v2436_v33  ;;  %v2445_v4 = vrot.slane %v2443_v32, 5  ;;  %v7750_v5 = vld [vmem:[#allocation2 + $0x4c] sm:$0xf] }
  0x89   : > { %v2427_v9 = vrot.slane %v2426_v0, 4  ;;  %v2449_v20 = vrot.slane %v2447_v25, 4  ;;  %v2455_v34 = vrot.slane %v2453_v13, 5  ;;  %v2458_v58 = vshrl.u32 %v2370_v17, 16  ;;  %v7120_v0 = vld [vmem:[#allocation2 + $0x3c] sm:$0xff]  }
  0x8a   : > { %6611 = vmatprep.mubr.msk.bf16.mxu1 %vm726_vm5, %v6144_v49  ;;  %v2441_v48 = vrot.slane %v2440_v62, 4  ;;  %v2461_v15 = vshll.u32 %v2370_v17, 16  ;;  %v2467_v16 = vshll.u32 %v7710_v42, 16  ;;  %v2471_v39 = vshrl.u32 %v7710_v42, 16  ;;  %v7757_v49 = vld [vmem:[#allocation2 + $0x50] sm:$0x1] }
  0x8b   : > { %v2432_v36 = vsel %vm7412_vm9, %v2427_v9, %v2431_v37  ;;  %v2450_v45 = vor.u32 %v2449_v20, %v2445_v4  ;;  %v2460_v51 = vrot.slane %v2458_v58, 4  ;;  %v2477_v28 = vshll.u32 %v7714_v59, 16  ;;  %v7119_v37 = vld [vmem:[#allocation2 + $0x30] sm:$0xff]   ;;  %v7763_v58 = vld [vmem:[#allocation2 + $0x58] sm:$0xf] }
  0x8c   : > { %v6145_v50 = vcombine.low %v2422_v43, %v2432_v36  ;;  %6540 = vmatmul.mubr.msk.bf16.vlgmr.msra.gmra.mrb[0].mxu0 %vm726_vm5, %v7117_v21  ;;  %v2446_v18 = vsel %vm7412_vm9, %v2441_v48, %v2445_v4  ;;  %v2463_v57 = vrot.slane %v2461_v15, 5  ;;  %v2469_v24 = vrot.slane %v2467_v16, 5  ;;  %v2379_v62 = vld [vmem:[#allocation2 + $0x54] sm:$0xf] }
  0x8d   : > { %6556 = vmatpush3.bf16.msra.mxu0 %v8919_v22  ;;  %v2451_v40 = vrot.slane %v2450_v45, 4  ;;  %v2473_v3 = vrot.slane %v2471_v39, 4  ;;  %v2479_v30 = vrot.slane %v2477_v28, 5  ;;  %6543 = vmatprep.mubr.msk.bf16.mxu0 %vm726_vm5, %v7118_v29  ;;  %v2482_v55 = vshrl.u32 %v2373_v47, 16 }
  0x8e   : > { %6612 = vmatmul.mubr.msk.bf16.vlgmr.msra.gmra.mrb[0].mxu1 %vm726_vm5, %v6145_v50  ;;  %v2464_v53 = vor.u32 %v2463_v57, %v2460_v51  ;;  %v2485_v31 = vshll.u32 %v2373_v47, 16  ;;  %v2491_v27 = vshll.u32 %v7722_v54, 16  ;;  %v2495_v7 = vshrl.u32 %v7722_v54, 16  ;;  %6989 = vmatprep.subr.msk.bf16.mxu0 %vm751_vm0, %v7727_v23  ;;  %v7771_v50 = vld [vmem:[#allocation2 + $0x5c] sm:$0x1] }
  0x8f   : > { %6628 = vmatpush3.bf16.msra.mxu1 %v8920_v44  ;;  %v2456_v61 = vsel %vm7412_vm9, %v2451_v40, %v2455_v34  ;;  %v2474_v60 = vor.u32 %v2473_v3, %v2469_v24  ;;  %v2484_v14 = vrot.slane %v2482_v55, 4  ;;  %v2501_v1 = vshll.u32 %v7732_v2, 16  ;;  %v7776_v55 = vld [vmem:[#allocation2 + $0x64] sm:$0xf] }
  0x90   : > { %v6146_v19 = vcombine.low %v2446_v18, %v2456_v61  ;;  %v2465_v26 = vrot.slane %v2464_v53, 4  ;;  %v2487_v56 = vrot.slane %v2485_v31, 5  ;;  %v2493_v33 = vrot.slane %v2491_v27, 5  ;;  %6993 = vmatprep.subr.msk.bf16.mxu1 %vm751_vm0, %v7739_v6  ;;  %v7121_v27 = vld [vmem:[#allocation2 + $0x48] sm:$0xff]  }
  0x91   : > { %v2475_v38 = vrot.slane %v2474_v60, 4  ;;  %v2497_v32 = vrot.slane %v2495_v7, 4  ;;  %v2503_v17 = vrot.slane %v2501_v1, 5  ;;  %v2506_v10 = vshrl.u32 %v2376_v46, 16  ;;  %v7122_v1 = vld [vmem:[#allocation2 + $0x54] sm:$0xff]  }
  0x92   : > { %6615 = vmatprep.mubr.msk.bf16.mxu1 %vm726_vm5, %v6146_v19  ;;  %v2470_v25 = vsel %vm7412_vm9, %v2465_v26, %v2469_v24  ;;  %v2488_v13 = vor.u32 %v2487_v56, %v2484_v14  ;;  %v2509_v43 = vshll.u32 %v2376_v46, 16  ;;  %v2515_v21 = vshll.u32 %v7750_v5, 16  ;;  %v2382_v24 = vld [vmem:[#allocation2 + $0x60] sm:$0xf] }
  0x93   : > { %v2480_v4 = vsel %vm7412_vm9, %v2475_v38, %v2479_v30  ;;  %v2498_v9 = vor.u32 %v2497_v32, %v2493_v33  ;;  %v2508_v20 = vrot.slane %v2506_v10, 4  ;;  %v2519_v34 = vshrl.u32 %v7750_v5, 16  ;;  %v2743_v38 = vld [vmem:[#allocation2 + $0xc] sm:$0xe] }
  0x94   : > { %v6147_v29 = vcombine.low %v2470_v25, %v2480_v4  ;;  %6544 = vmatmul.mubr.msk.bf16.gmra.mrb[4].mxu0 %vm726_vm5, %v7119_v37  ;;  %v2489_v48 = vrot.slane %v2488_v13, 4  ;;  %v2511_v15 = vrot.slane %v2509_v43, 5  ;;  %v2517_v16 = vrot.slane %v2515_v21, 5  ;;  %v7783_v37 = vld [vmem:[#allocation2 + $0x68] sm:$0x1] }
  0x95   : > { %v2499_v39 = vrot.slane %v2498_v9, 4  ;;  %v2521_v47 = vrot.slane %v2519_v34, 4  ;;  %v2525_v36 = vshll.u32 %v7757_v49, 16  ;;  %6547 = vmatprep.mubr.msk.bf16.mxu0 %vm726_vm5, %v7120_v0  ;;  %v2530_v45 = vshrl.u32 %v2379_v62, 16 }
  0x96   : > { %6616 = vmatmul.mubr.msk.bf16.gmra.mrb[4].mxu1 %vm726_vm5, %v6147_v29  ;;  %v2494_v51 = vsel %vm7412_vm9, %v2489_v48, %v2493_v33  ;;  %v2512_v28 = vor.u32 %v2511_v15, %v2508_v20  ;;  %v2533_v18 = vshll.u32 %v2379_v62, 16  ;;  %v2539_v57 = vshll.u32 %v7763_v58, 16  ;;  %v2744_v62 = vld [vmem:[#allocation2 + $0x18] sm:$0xe] }
  0x97   : > { %v2504_v22 = vsel %vm7412_vm9, %v2499_v39, %v2503_v17  ;;  %v2522_v40 = vor.u32 %v2521_v47, %v2517_v16  ;;  %v2527_v3 = vrot.slane %v2525_v36, 5  ;;  %v2532_v30 = vrot.slane %v2530_v45, 4  ;;  %v1215_v39 = vld [vmem:[#allocation2 + $0xc] sm:$0xf] }
  0x98   : > { %v6148_v53 = vcombine.low %v2494_v51, %v2504_v22  ;;  %v2513_v31 = vrot.slane %v2512_v28, 4  ;;  %v2535_v7 = vrot.slane %v2533_v18, 5  ;;  %v2541_v46 = vrot.slane %v2539_v57, 5  ;;  %v7123_v18 = vld [vmem:[#allocation2 + $0x60] sm:$0xff]  }
  0x99   : > { %v2523_v44 = vrot.slane %v2522_v40, 4  ;;  %v2543_v61 = vshrl.u32 %v7763_v58, 16  ;;  %v2549_v60 = vshll.u32 %v7771_v50, 16  ;;  %v2554_v14 = vshrl.u32 %v2382_v24, 16 }
  0x9a   : > { %6619 = vmatprep.mubr.msk.bf16.mxu1 %vm726_vm5, %v6148_v53  ;;  %v2518_v19 = vsel %vm7412_vm9, %v2513_v31, %v2517_v16  ;;  %v2536_v26 = vor.u32 %v2535_v7, %v2532_v30  ;;  %v2557_v56 = vshll.u32 %v2382_v24, 16  ;;  %v2563_v33 = vshll.u32 %v7776_v55, 16  ;;  %v1217_v53 = vld [vmem:[#allocation2 + $0x14] sm:$0x1] }
  0x9b   : > { %v2528_v32 = vsel %vm7412_vm9, %v2523_v44, %v2527_v3  ;;  %v2545_v17 = vrot.slane %v2543_v61, 4  ;;  %v2551_v10 = vrot.slane %v2549_v60, 5  ;;  %v2556_v0 = vrot.slane %v2554_v14, 4 }
  0x9c   : > { %v6149_v25 = vcombine.low %v2518_v19, %v2528_v32  ;;  %6548 = vmatmul.mubr.msk.bf16.gmra.mrb[8].mxu0 %vm726_vm5, %v7121_v27  ;;  %v2537_v13 = vrot.slane %v2536_v26, 4  ;;  %v2559_v43 = vrot.slane %v2557_v56, 5  ;;  %v2565_v21 = vrot.slane %v2563_v33, 5  ;;  %v1219_v32 = vld [vmem:[#allocation2 + $0x1c] sm:$0xf] }
  0x9d   : > { %v2546_v4 = vor.u32 %v2545_v17, %v2541_v46  ;;  %v2567_v9 = vshrl.u32 %v7776_v55, 16  ;;  %v2573_v20 = vshll.u32 %v7783_v37, 16  ;;  %6551 = vmatprep.mubr.msk.bf16.mxu0 %vm726_vm5, %v7122_v1  ;;  %v6160_v34 = vrot.slane %v2743_v38, 9  ;;  %v1220_v17 = vld [vmem:[#allocation2 + $0x20] sm:$0x1] }
  0x9e   : > { %6620 = vmatmul.mubr.msk.bf16.gmra.mrb[8].mxu1 %vm726_vm5, %v6149_v25  ;;  %v2542_v29 = vsel %vm7412_vm9, %v2537_v13, %v2541_v46  ;;  %v2560_v48 = vor.u32 %v2559_v43, %v2556_v0  ;;  %v2777_v15 = vrot.slane %v7668_v63, 5  ;;  %v2780_v16 = vrot.slane %v7676_v12, 5  ;;  %v1216_v12 = vld [vmem:[#allocation2 + $0x10] sm:$0xf] }
  0x9f   : > { %v2547_v47 = vrot.slane %v2546_v4, 4  ;;  %v2569_v36 = vrot.slane %v2567_v9, 4  ;;  %v2575_v45 = vrot.slane %v2573_v20, 5  ;;  %v6161_v51 = vrot.slane %v2744_v62, 9 }
  0xa0   : > { %v2561_v28 = vrot.slane %v2560_v48, 4  ;;  %v2778_v24 = vsel %vm7368_vm8, %v6160_v34, %v2777_v15  ;;  %v2779_v22 = vrot.slane %v2777_v15, 4  ;;  %v2784_v40 = vrot.slane %v7684_v8, 5  ;;  %v1218_v8 = vld [vmem:[#allocation2 + $0x18] sm:$0xf] }
  0xa1   : > { %v2552_v3 = vsel %vm7412_vm9, %v2547_v47, %v2551_v10  ;;  %v2570_v30 = vor.u32 %v2569_v36, %v2565_v21  ;;  %v2787_v63 = vrot.slane %v7689_v35, 5  ;;  %v1240_v31 = vshrl.u32 %v1215_v39, 16 }
  0xa2   : > { %v6150_v27 = vcombine.low %v2542_v29, %v2552_v3  ;;  %v2566_v7 = vsel %vm7412_vm9, %v2561_v28, %v2565_v21  ;;  %v2781_v46 = vsel %vm7368_vm8, %v2779_v22, %v2780_v16  ;;  %v7809_v44 = vsel %vm7368_vm8, %v6161_v51, %v2784_v40  ;;  %v2745_v16 = vld [vmem:[#allocation2 + $0x24] sm:$0xe]  ;;  %v2746_v51 = vld [vmem:[#allocation2 + $0x30] sm:$0xe] }
  0xa3   : > { %v2571_v61 = vrot.slane %v2570_v30, 4  ;;  %v6169_v60 = vcombine.low %v2778_v24, %v2781_v46  ;;  %v2786_v14 = vrot.slane %v2784_v40, 4  ;;  %v1242_v1 = vrot.slane %v1240_v31, 4 }
  0xa4   : > { %6623 = vmatprep.mubr.msk.bf16.mxu1 %vm726_vm5, %v6150_v27  ;;  %6552 = vmatmul.mubr.msk.bf16.gmra.mrb[12].mxu0 %vm726_vm5, %v7123_v18  ;;  %v1243_v35 = vshll.u32 %v1215_v39, 16  ;;  %v1249_v19 = vshll.u32 %v1216_v12, 16  ;;  %v1253_v26 = vshrl.u32 %v1216_v12, 16  ;;  %v1259_v56 = vshll.u32 %v1217_v53, 16  ;;  %v1221_v27 = vld [vmem:[#allocation2 + $0x24] sm:$0xf] }
  0xa5   : > { %v2576_v33 = vsel %vm7412_vm9, %v2571_v61, %v2575_v45  ;;  %v2788_v38 = vsel %vm7368_vm8, %v2786_v14, %v2787_v63  ;;  %v1264_v10 = vshrl.u32 %v1218_v8, 16  ;;  %v1267_v0 = vshll.u32 %v1218_v8, 16 }
  0xa6   : > { %v6151_v25 = vcombine.low %v2566_v7, %v2576_v33  ;;  %v6170_v13 = vcombine.low %v7809_v44, %v2788_v38  ;;  %v1245_v43 = vrot.slane %v1243_v35, 5  ;;  %v1251_v21 = vrot.slane %v1249_v19, 5  ;;  %v1222_v7 = vld [vmem:[#allocation2 + $0x28] sm:$0xf]  ;;  %v7841_v33 = vld [vmem:[%s8899_s2 + $0x18] sm:$0x3] }
  0xa7   : > { %v1255_v62 = vrot.slane %v1253_v26, 4  ;;  %v1261_v4 = vrot.slane %v1259_v56, 5  ;;  %v1266_v9 = vrot.slane %v1264_v10, 4  ;;  %v1269_v20 = vrot.slane %v1267_v0, 5 }
  0xa8   : > { %6624 = vmatmul.mubr.msk.bf16.gmra.mrb[12].mxu1 %vm726_vm5, %v6151_v25  ;;  %v1246_v34 = vor.u32 %v1245_v43, %v1242_v1  ;;  %v1273_v29 = vshll.u32 %v1219_v32, 16  ;;  %v1277_v48 = vshrl.u32 %v1219_v32, 16  ;;  %v1283_v15 = vshll.u32 %v1220_v17, 16  ;;  %v1224_v1 = vld [vmem:[#allocation2 + $0x30] sm:$0xf] }
  0xa9   : > { %6629 = vmatprep.mubr.msk.bf16.mxu1 %vm726_vm5, %v6169_v60  ;;  %v1256_v39 = vor.u32 %v1255_v62, %v1251_v21  ;;  %v1270_v47 = vor.u32 %v1269_v20, %v1266_v9  ;;  %v3420_v36 = vsel %vm751_vm0, %v7727_v23, 0  ;;  %v4775_v45 = vsel %vm751_vm0, %v7739_v6, 0  ;;  %v1225_v17 = vld [vmem:[#allocation2 + $0x34] sm:$0xf]  ;;  %v7855_v20 = vld [vmem:[%s8899_s2 + $0x10] sm:$0x3] }
  0xaa   : > { %v1247_v28 = vrot.slane %v1246_v34, 4  ;;  %v1275_v18 = vrot.slane %v1273_v29, 5  ;;  %v1279_v24 = vrot.slane %v1277_v48, 4  ;;  %v1285_v22 = vrot.slane %v1283_v15, 5 }
  0xab   : > { %v1257_v40 = vrot.slane %v1256_v39, 4  ;;  %v1271_v3 = vrot.slane %v1270_v47, 4  ;;  %v6162_v30 = vrot.slane %v2745_v16, 9  ;;  %v2791_v63 = vrot.slane %v7696_v11, 5  ;;  %v1223_v11 = vld [vmem:[#allocation2 + $0x2c] sm:$0x1] }
  0xac   : > { %v1252_v12 = vsel %vm7412_vm9, %v1247_v28, %v1251_v21  ;;  %v1280_v53 = vor.u32 %v1279_v24, %v1275_v18  ;;  %v2794_v31 = vrot.slane %v7700_v52, 5  ;;  %v6163_v23 = vrot.slane %v2746_v51, 9  ;;  %v1226_v21 = vld [vmem:[#allocation2 + $0x38] sm:$0x1]  ;;  %v2747_v16 = vld [vmem:[#allocation2 + $0x3c] sm:$0xe] }
  0xad   : > { %v1262_v6 = vsel %vm7412_vm9, %v1257_v40, %v1261_v4  ;;  %v1276_v46 = vsel %vm7412_vm9, %v1271_v3, %v1275_v18  ;;  %v2792_v44 = vsel %vm7368_vm8, %v6162_v30, %v2791_v63  ;;  %v2793_v8 = vrot.slane %v2791_v63, 4  ;;  %v2748_v40 = vld [vmem:[#allocation2 + $0x48] sm:$0xe] }
  0xae   : > { %v6084_v61 = vcombine.low %v1252_v12, %v1262_v6  ;;  %v1281_v60 = vrot.slane %v1280_v53, 4  ;;  %v2798_v14 = vrot.slane %v7710_v42, 5  ;;  %v2801_v52 = vrot.slane %v7714_v59, 5 }
  0xaf   : > { %v2795_v35 = vsel %vm7368_vm8, %v2793_v8, %v2794_v31  ;;  %v1288_v19 = vshrl.u32 %v1221_v27, 16  ;;  %v1291_v26 = vshll.u32 %v1221_v27, 16  ;;  %v1297_v56 = vshll.u32 %v1222_v7, 16  ;;  %v1227_v27 = vld [vmem:[#allocation2 + $0x3c] sm:$0xf] }
  0xb0   : > { %6630 = vmatmul.mubr.msk.bf16.vlgmr.msra.gmra.mrb[0].mxu1 %vm726_vm5, %v6170_v13  ;;  %6557 = vmatprep.mubr.msk.bf16.mxu0 %vm726_vm5, %v6084_v61  ;;  %v1286_v42 = vsel %vm7412_vm9, %v1281_v60, %v1285_v22  ;;  %v6171_v59 = vcombine.low %v2792_v44, %v2795_v35  ;;  %v2799_v38 = vsel %vm7368_vm8, %v6163_v23, %v2798_v14  ;;  %v2800_v32 = vrot.slane %v2798_v14, 4 }
  0xb1   : > { %v6085_v10 = vcombine.low %v1276_v46, %v1286_v42  ;;  %6718 = vmatpush3.bf16.msra.mxu1 %v4775_v45  ;;  %v1290_v0 = vrot.slane %v1288_v19, 4  ;;  %v1293_v25 = vrot.slane %v1291_v26, 5  ;;  %v1299_v43 = vrot.slane %v1297_v56, 5  ;;  %v1230_v42 = vld [vmem:[#allocation2 + $0x48] sm:$0xf] }
  0xb2   : > { %6633 = vmatprep.mubr.msk.bf16.mxu1 %vm726_vm5, %v6171_v59  ;;  %v2802_v13 = vsel %vm7368_vm8, %v2800_v32, %v2801_v52  ;;  %v1301_v62 = vshrl.u32 %v1222_v7, 16  ;;  %v1307_v4 = vshll.u32 %v1223_v11, 16  ;;  %v1312_v9 = vshrl.u32 %v1224_v1, 16  ;;  %6994 = vmatprep.subr.msk.bf16.mxu1 %vm751_vm0, %v7841_v33  ;;  %v1228_v52 = vld [vmem:[#allocation2 + $0x40] sm:$0xf] }
  0xb3   : > { %6558 = vmatmul.mubr.msk.bf16.vlgmr.msra.gmra.mrb[0].mxu0 %vm726_vm5, %v6085_v10  ;;  %v6172_v34 = vcombine.low %v2799_v38, %v2802_v13  ;;  %v1294_v29 = vor.u32 %v1293_v25, %v1290_v0  ;;  %v1315_v48 = vshll.u32 %v1224_v1, 16  ;;  %v1321_v15 = vshll.u32 %v1225_v17, 16  ;;  %v1229_v1 = vld [vmem:[#allocation2 + $0x44] sm:$0x1]  ;;  %v1232_v10 = vld [vmem:[#allocation2 + $0x50] sm:$0x1] }
  0xb4   : > { %6646 = vmatpush3.bf16.msra.mxu0 %v3420_v36  ;;  %v1303_v39 = vrot.slane %v1301_v62, 4  ;;  %v1309_v47 = vrot.slane %v1307_v4, 5  ;;  %v1314_v45 = vrot.slane %v1312_v9, 4  ;;  %v1325_v51 = vshrl.u32 %v1225_v17, 16  ;;  %v2749_v13 = vld [vmem:[#allocation2 + $0x54] sm:$0xe] }
  0xb5   : > { %v1295_v28 = vrot.slane %v1294_v29, 4  ;;  %v1317_v18 = vrot.slane %v1315_v48, 5  ;;  %v1323_v24 = vrot.slane %v1321_v15, 5  ;;  %v1331_v22 = vshll.u32 %v1226_v21, 16  ;;  %6990 = vmatprep.subr.msk.bf16.mxu0 %vm751_vm0, %v7855_v20 }
  0xb6   : > { %v1304_v3 = vor.u32 %v1303_v39, %v1299_v43  ;;  %v1327_v30 = vrot.slane %v1325_v51, 4  ;;  %v6164_v63 = vrot.slane %v2747_v16, 9  ;;  %v2805_v12 = vrot.slane %v7722_v54, 5 }
  0xb7   : > { %v1300_v36 = vsel %vm7412_vm9, %v1295_v28, %v1299_v43  ;;  %v1318_v53 = vor.u32 %v1317_v18, %v1314_v45  ;;  %v1333_v31 = vrot.slane %v1331_v22, 5  ;;  %v2808_v23 = vrot.slane %v7732_v2, 5 }
  0xb8   : > { %6634 = vmatmul.mubr.msk.bf16.gmra.mrb[4].mxu1 %vm726_vm5, %v6172_v34  ;;  %v1305_v7 = vrot.slane %v1304_v3, 4  ;;  %v1328_v6 = vor.u32 %v1327_v30, %v1323_v24  ;;  %v2806_v46 = vsel %vm7368_vm8, %v6164_v63, %v2805_v12  ;;  %v2807_v44 = vrot.slane %v2805_v12, 4  ;;  %v2750_v12 = vld [vmem:[#allocation2 + $0x60] sm:$0xe] }
  0xb9   : > { %v1319_v8 = vrot.slane %v1318_v53, 4  ;;  %v6165_v11 = vrot.slane %v2748_v40, 9  ;;  %v2812_v54 = vrot.slane %v7750_v5, 5  ;;  %v2815_v61 = vrot.slane %v7757_v49, 5  ;;  %v1231_v49 = vld [vmem:[#allocation2 + $0x4c] sm:$0xf] }
  0xba   : > { %v1310_v60 = vsel %vm7412_vm9, %v1305_v7, %v1309_v47  ;;  %v1329_v14 = vrot.slane %v1328_v6, 4  ;;  %v2809_v2 = vsel %vm7368_vm8, %v2807_v44, %v2808_v23  ;;  %v1336_v35 = vshrl.u32 %v1227_v27, 16  ;;  %v1233_v44 = vld [vmem:[#allocation2 + $0x54] sm:$0xf] }
  0xbb   : > { %v6086_v19 = vcombine.low %v1300_v36, %v1310_v60  ;;  %v1324_v26 = vsel %vm7412_vm9, %v1319_v8, %v1323_v24  ;;  %v6173_v56 = vcombine.low %v2806_v46, %v2809_v2  ;;  %v2813_v5 = vsel %vm7368_vm8, %v6165_v11, %v2812_v54  ;;  %v1234_v8 = vld [vmem:[#allocation2 + $0x58] sm:$0xf]  ;;  %v1235_v60 = vld [vmem:[#allocation2 + $0x5c] sm:$0x1] }
  0xbc   : > { %v1334_v59 = vsel %vm7412_vm9, %v1329_v14, %v1333_v31  ;;  %v2814_v38 = vrot.slane %v2812_v54, 4  ;;  %v1338_v32 = vrot.slane %v1336_v35, 4  ;;  %v1339_v17 = vshll.u32 %v1227_v27, 16  ;;  %v1236_v14 = vld [vmem:[#allocation2 + $0x60] sm:$0xf] }
  0xbd   : > { %6561 = vmatprep.mubr.msk.bf16.mxu0 %vm726_vm5, %v6086_v19  ;;  %v6087_v0 = vcombine.low %v1324_v26, %v1334_v59  ;;  %6637 = vmatprep.mubr.msk.bf16.mxu1 %vm726_vm5, %v6173_v56  ;;  %v1345_v25 = vshll.u32 %v1228_v52, 16  ;;  %v1349_v43 = vshrl.u32 %v1228_v52, 16  ;;  %v1355_v21 = vshll.u32 %v1229_v1, 16 }
  0xbe   : > { %v2816_v62 = vsel %vm7368_vm8, %v2814_v38, %v2815_v61  ;;  %v1341_v4 = vrot.slane %v1339_v17, 5  ;;  %v1360_v9 = vshrl.u32 %v1230_v42, 16  ;;  %v1363_v34 = vshll.u32 %v1230_v42, 16  ;;  %v1238_v17 = vld [vmem:[#allocation2 + $0x68] sm:$0x1] }
  0xbf   : > { %6562 = vmatmul.mubr.msk.bf16.gmra.mrb[4].mxu0 %vm726_vm5, %v6087_v0  ;;  %v6174_v29 = vcombine.low %v2813_v5, %v2816_v62  ;;  %v1347_v48 = vrot.slane %v1345_v25, 5  ;;  %v1351_v15 = vrot.slane %v1349_v43, 4  ;;  %v1357_v16 = vrot.slane %v1355_v21, 5  ;;  %v1237_v5 = vld [vmem:[#allocation2 + $0x64] sm:$0xf] }
  0xc0   : > { %v1342_v39 = vor.u32 %v1341_v4, %v1338_v32  ;;  %v1362_v47 = vrot.slane %v1360_v9, 4  ;;  %v1365_v45 = vrot.slane %v1363_v34, 5  ;;  %v1369_v51 = vshll.u32 %v1231_v49, 16  ;;  %v7909_v0 = vld [vmem:[#allocation2 + $0x10] sm:$0xf] }
  0xc1   : > { %6638 = vmatmul.mubr.msk.bf16.gmra.mrb[8].mxu1 %vm726_vm5, %v6174_v29  ;;  %v1352_v28 = vor.u32 %v1351_v15, %v1347_v48  ;;  %v1373_v18 = vshrl.u32 %v1231_v49, 16  ;;  %v1379_v24 = vshll.u32 %v1232_v10, 16  ;;  %v6166_v22 = vrot.slane %v2749_v13, 9  ;;  %v4636_v62 = vld [vmem:[#allocation2 + $0xc] sm:$0xe] }
  0xc2   : > { %v1343_v40 = vrot.slane %v1342_v39, 4  ;;  %v1366_v3 = vor.u32 %v1365_v45, %v1362_v47  ;;  %v1371_v30 = vrot.slane %v1369_v51, 5  ;;  %v2819_v63 = vrot.slane %v7763_v58, 5  ;;  %v469_v4 = vld [vmem:[%s7600_s17 + $0xc] sm:$0xf] }
  0xc3   : > { %v1353_v36 = vrot.slane %v1352_v28, 4  ;;  %v1375_v53 = vrot.slane %v1373_v18, 4  ;;  %v1381_v31 = vrot.slane %v1379_v24, 5  ;;  %v2822_v23 = vrot.slane %v7771_v50, 5  ;;  %v7912_v15 = vld [vmem:[#allocation2 + $0x14] sm:$0x1] }
  0xc4   : > { %v1348_v27 = vsel %vm7412_vm9, %v1343_v40, %v1347_v48  ;;  %v1367_v7 = vrot.slane %v1366_v3, 4  ;;  %v2820_v6 = vsel %vm7368_vm8, %v6166_v22, %v2819_v63  ;;  %v2821_v46 = vrot.slane %v2819_v63, 4  ;;  %476 = vst.msk [vmem:[#allocation2 + $0x6c] sm:$0xf] %vm440_vm1, %v469_v4  ;;  %v7918_v28 = vld [vmem:[#allocation2 + $0x1c] sm:$0xf] }
  0xc5   : > { %v1358_v11 = vsel %vm7412_vm9, %v1353_v36, %v1357_v16  ;;  %v1376_v58 = vor.u32 %v1375_v53, %v1371_v30  ;;  %v6167_v54 = vrot.slane %v2750_v12, 9  ;;  %v2826_v61 = vrot.slane %v7776_v55, 5  ;;  %v470_v16 = vld [vmem:[%s7600_s17 + $0x10] sm:$0xf]  ;;  %v7920_v18 = vld [vmem:[#allocation2 + $0x20] sm:$0x1] }
  0xc6   : > { %v6088_v50 = vcombine.low %v1348_v27, %v1358_v11  ;;  %v1372_v2 = vsel %vm7412_vm9, %v1367_v7, %v1371_v30  ;;  %v2823_v52 = vsel %vm7368_vm8, %v2821_v46, %v2822_v23  ;;  %v2829_v1 = vrot.slane %v7783_v37, 5  ;;  %v4637_v24 = vld [vmem:[#allocation2 + $0x18] sm:$0xe]  ;;  %v471_v22 = vld [vmem:[%s7600_s17 + $0x14] sm:$0x1] }
  0xc7   : > { %v1377_v35 = vrot.slane %v1376_v58, 4  ;;  %v6175_v19 = vcombine.low %v2820_v6, %v2823_v52  ;;  %v2827_v26 = vsel %vm7368_vm8, %v6167_v54, %v2826_v61  ;;  %v2828_v56 = vrot.slane %v2826_v61, 4  ;;  %477 = vst.msk [vmem:[#allocation2 + $0x70] sm:$0xf] %vm440_vm1, %v470_v16  ;;  %v7931_v58 = vld [vmem:[#allocation2 + $0xc] sm:$0xf] }
  0xc8   : > { %6565 = vmatprep.mubr.msk.bf16.mxu0 %vm726_vm5, %v6088_v50  ;;  %v1384_v55 = vshrl.u32 %v1233_v44, 16  ;;  %v1387_v42 = vshll.u32 %v1233_v44, 16  ;;  %v1393_v49 = vshll.u32 %v1234_v8, 16  ;;  %v1397_v59 = vshrl.u32 %v1234_v8, 16  ;;  %478 = vst.msk [vmem:[#allocation2 + $0x74] sm:$0x1] %vm443_vm2, %v471_v22 }
  0xc9   : > { %v1382_v38 = vsel %vm7412_vm9, %v1377_v35, %v1381_v31  ;;  %6641 = vmatprep.mubr.msk.bf16.mxu1 %vm726_vm5, %v6175_v19  ;;  %v2830_v37 = vsel %vm7368_vm8, %v2828_v56, %v2829_v1  ;;  %v1403_v32 = vshll.u32 %v1235_v60, 16  ;;  %v1408_v10 = vshrl.u32 %v1236_v14, 16  ;;  %v7937_v50 = vld [vmem:[#allocation2 + $0x10] sm:$0xf] }
  0xca   : > { %v6089_v25 = vcombine.low %v1372_v2, %v1382_v38  ;;  %v6176_v43 = vcombine.low %v2827_v26, %v2830_v37  ;;  %v1386_v21 = vrot.slane %v1384_v55, 4  ;;  %v1389_v13 = vrot.slane %v1387_v42, 5  ;;  %v7951_v37 = vld [vmem:[#allocation2 + $0x18] sm:$0xf] }
  0xcb   : > { %v1395_v9 = vrot.slane %v1393_v49, 5  ;;  %v1399_v34 = vrot.slane %v1397_v59, 4  ;;  %v1405_v29 = vrot.slane %v1403_v32, 5  ;;  %v1410_v48 = vrot.slane %v1408_v10, 4  ;;  %v7953_v32 = vld [vmem:[#allocation2 + $0x1c] sm:$0xf] }
  0xcc   : > { %6566 = vmatmul.mubr.msk.bf16.gmra.mrb[8].mxu0 %vm726_vm5, %v6089_v25  ;;  %6642 = vmatmul.mubr.msk.bf16.gmra.mrb[12].mxu1 %vm726_vm5, %v6176_v43  ;;  %v1390_v39 = vor.u32 %v1389_v13, %v1386_v21  ;;  %v1411_v47 = vshll.u32 %v1236_v14, 16  ;;  %v1417_v45 = vshll.u32 %v1237_v5, 16  ;;  %v1421_v51 = vshrl.u32 %v1237_v5, 16  ;;  %v3169_v5 = vld [vmem:[#allocation2 + $0x14] sm:$0x1] }
  0xcd   : > { %v1400_v40 = vor.u32 %v1399_v34, %v1395_v9  ;;  %v1427_v3 = vshll.u32 %v1238_v17, 16  ;;  %v6260_v30 = vrot.slane %v4636_v62, 9  ;;  %v4670_v63 = vrot.slane %v7909_v0, 5  ;;  %v3170_v21 = vld [vmem:[#allocation2 + $0x20] sm:$0x1] }
  0xce   : > { %v1391_v12 = vrot.slane %v1390_v39, 4  ;;  %v1413_v36 = vrot.slane %v1411_v47, 5  ;;  %v1419_v53 = vrot.slane %v1417_v45, 5  ;;  %v1423_v31 = vrot.slane %v1421_v51, 4  ;;  %v7963_v39 = vld [vmem:[#allocation2 + $0x28] sm:$0xf] }
  0xcf   : > { %v1401_v23 = vrot.slane %v1400_v40, 4  ;;  %v1429_v27 = vrot.slane %v1427_v3, 5  ;;  %v4671_v7 = vsel %vm7368_vm8, %v6260_v30, %v4670_v63  ;;  %v4672_v6 = vrot.slane %v4670_v63, 4  ;;  %v7965_v47 = vld [vmem:[#allocation2 + $0x2c] sm:$0x1] }
  0xd0   : > { %v1396_v46 = vsel %vm7412_vm9, %v1391_v12, %v1395_v9  ;;  %v1414_v44 = vor.u32 %v1413_v36, %v1410_v48  ;;  %v1424_v8 = vor.u32 %v1423_v31, %v1419_v53  ;;  %v4673_v11 = vrot.slane %v7912_v15, 5  ;;  %v4638_v45 = vld [vmem:[#allocation2 + $0x24] sm:$0xe]  ;;  %v7969_v3 = vld [vmem:[#allocation2 + $0x34] sm:$0xf] }
  0xd1   : > { %v1406_v54 = vsel %vm7412_vm9, %v1401_v23, %v1405_v29  ;;  %v6261_v61 = vrot.slane %v4637_v24, 9  ;;  %v4677_v60 = vrot.slane %v7918_v28, 5  ;;  %v4680_v14 = vrot.slane %v7920_v18, 5 }
  0xd2   : > { %v6090_v2 = vcombine.low %v1396_v46, %v1406_v54  ;;  %v1415_v52 = vrot.slane %v1414_v44, 4  ;;  %v1425_v1 = vrot.slane %v1424_v8, 4  ;;  %v4674_v35 = vsel %vm7368_vm8, %v4672_v6, %v4673_v11  ;;  %v7976_v6 = vld [vmem:[%s8899_s2 + $0x1c] sm:$0x3] }
  0xd3   : > { %v6269_v19 = vcombine.low %v4671_v7, %v4674_v35  ;;  %v4678_v26 = vsel %vm7368_vm8, %v6261_v61, %v4677_v60  ;;  %v4679_v56 = vrot.slane %v4677_v60, 4  ;;  %v3178_v55 = vshrl.u32 %v7931_v58, 16 }
  0xd4   : > { %6569 = vmatprep.mubr.msk.bf16.mxu0 %vm726_vm5, %v6090_v2  ;;  %v1420_v42 = vsel %vm7412_vm9, %v1415_v52, %v1419_v53  ;;  %v1430_v49 = vsel %vm7412_vm9, %v1425_v1, %v1429_v27  ;;  %v3181_v59 = vshll.u32 %v7931_v58, 16  ;;  %v3187_v38 = vshll.u32 %v7937_v50, 16  ;;  %v4639_v53 = vld [vmem:[#allocation2 + $0x30] sm:$0xe] }
  0xd5   : > { %v6091_v17 = vcombine.low %v1420_v42, %v1430_v49  ;;  %6719 = vmatprep.mubr.msk.bf16.mxu1 %vm726_vm5, %v6269_v19  ;;  %v4681_v10 = vsel %vm7368_vm8, %v4679_v56, %v4680_v14  ;;  %v3180_v25 = vrot.slane %v3178_v55, 4  ;;  %v3191_v43 = vshrl.u32 %v7937_v50, 16  ;;  %v7984_v14 = vld [vmem:[#allocation2 + $0x38] sm:$0x1]  ;;  %v7995_v55 = vld [vmem:[#allocation2 + $0x28] sm:$0xf] }
  0xd6   : > { %v6270_v13 = vcombine.low %v4678_v26, %v4681_v10  ;;  %v3183_v62 = vrot.slane %v3181_v59, 5  ;;  %v3189_v4 = vrot.slane %v3187_v38, 5  ;;  %v3197_v9 = vshll.u32 %v3169_v5, 16 }
  0xd7   : > { %6570 = vmatmul.mubr.msk.bf16.gmra.mrb[12].mxu0 %vm726_vm5, %v6091_v17  ;;  %v3193_v34 = vrot.slane %v3191_v43, 4  ;;  %v3202_v29 = vshrl.u32 %v7951_v37, 16  ;;  %v3205_v48 = vshll.u32 %v7951_v37, 16  ;;  %v3211_v16 = vshll.u32 %v7953_v32, 16 }
  0xd8   : > { %6720 = vmatmul.mubr.msk.bf16.vlgmr.msra.gmra.mrb[16].mxu1 %vm726_vm5, %v6270_v13  ;;  %v3184_v51 = vor.u32 %v3183_v62, %v3180_v25  ;;  %v3199_v24 = vrot.slane %v3197_v9, 5  ;;  %v3215_v22 = vshrl.u32 %v7953_v32, 16  ;;  %v3221_v40 = vshll.u32 %v3170_v21, 16  ;;  %v3171_v25 = vld [vmem:[#allocation2 + $0x2c] sm:$0x1] }
  0xd9   : > { %v3194_v30 = vor.u32 %v3193_v34, %v3189_v4  ;;  %v3204_v63 = vrot.slane %v3202_v29, 4  ;;  %v3207_v12 = vrot.slane %v3205_v48, 5  ;;  %v3213_v36 = vrot.slane %v3211_v16, 5  ;;  %v8009_v13 = vld [vmem:[#allocation2 + $0x30] sm:$0xf] }
  0xda   : > { %v3185_v31 = vrot.slane %v3184_v51, 4  ;;  %v3217_v23 = vrot.slane %v3215_v22, 4  ;;  %v3223_v27 = vrot.slane %v3221_v40, 5  ;;  %v3584_v7 = vsel %vm751_vm0, %v7855_v20, 0  ;;  %v8014_v29 = vld [vmem:[#allocation2 + $0x34] sm:$0xf] }
  0xdb   : > { %v3195_v46 = vrot.slane %v3194_v30, 4  ;;  %v3208_v44 = vor.u32 %v3207_v12, %v3204_v63  ;;  %v4923_v8 = vsel %vm751_vm0, %v7841_v33, 0  ;;  %v6262_v11 = vrot.slane %v4638_v45, 9  ;;  %v7989_v33 = vld [vmem:[#allocation2 + $0x24] sm:$0xf] }
  0xdc   : > { %v3190_v54 = vsel %vm7412_vm9, %v3185_v31, %v3189_v4  ;;  %v3218_v61 = vor.u32 %v3217_v23, %v3213_v36  ;;  %6736 = vmatpush3.bf16.msra.mxu1 %v4923_v8  ;;  %v4684_v60 = vrot.slane %v7963_v39, 5  ;;  %v4687_v20 = vrot.slane %v7965_v47, 5  ;;  %v3172_v48 = vld [vmem:[#allocation2 + $0x38] sm:$0x1]  ;;  %v8017_v22 = vld [vmem:[#allocation2 + $0x40] sm:$0xf] }
  0xdd   : > { %v3200_v2 = vsel %vm7412_vm9, %v3195_v46, %v3199_v24  ;;  %v3209_v52 = vrot.slane %v3208_v44, 4  ;;  %v6263_v1 = vrot.slane %v4639_v53, 9  ;;  %v4691_v35 = vrot.slane %v7969_v3, 5  ;;  %6995 = vmatprep.subr.msk.bf16.mxu1 %vm751_vm0, %v7976_v6  ;;  %v8022_v40 = vld [vmem:[%s8899_s2 + $0x14] sm:$0x3] }
  0xde   : > { %v6190_v19 = vcombine.low %v3190_v54, %v3200_v2  ;;  %v3219_v26 = vrot.slane %v3218_v61, 4  ;;  %v4685_v56 = vsel %vm7368_vm8, %v6262_v11, %v4684_v60  ;;  %v4686_v5 = vrot.slane %v4684_v60, 4  ;;  %v8028_v53 = vld [vmem:[#allocation2 + $0x44] sm:$0x1]  ;;  %v4640_v44 = vld [vmem:[#allocation2 + $0x3c] sm:$0xe] }
  0xdf   : > { %v3214_v42 = vsel %vm7412_vm9, %v3209_v52, %v3213_v36  ;;  %v4692_v49 = vsel %vm7368_vm8, %v6263_v1, %v4691_v35  ;;  %v4693_v59 = vrot.slane %v4691_v35, 4  ;;  %v4694_v38 = vrot.slane %v7984_v14, 5  ;;  %v8033_v60 = vld [vmem:[#allocation2 + $0x4c] sm:$0xf]  ;;  %v4641_v1 = vld [vmem:[#allocation2 + $0x48] sm:$0xe] }
  0xe0   : > { %6647 = vmatprep.mubr.msk.bf16.mxu0 %vm726_vm5, %v6190_v19  ;;  %v3224_v17 = vsel %vm7412_vm9, %v3219_v26, %v3223_v27  ;;  %v4688_v10 = vsel %vm7368_vm8, %v4686_v5, %v4687_v20  ;;  %v3226_v43 = vshrl.u32 %v7989_v33, 16  ;;  %v3229_v21 = vshll.u32 %v7989_v33, 16  ;;  %v8038_v5 = vld [vmem:[#allocation2 + $0x50] sm:$0x1] }
  0xe1   : > { %v6191_v62 = vcombine.low %v3214_v42, %v3224_v17  ;;  %v6271_v4 = vcombine.low %v4685_v56, %v4688_v10  ;;  %v4695_v9 = vsel %vm7368_vm8, %v4693_v59, %v4694_v38  ;;  %v3235_v34 = vshll.u32 %v7995_v55, 16  ;;  %v8043_v17 = vld [vmem:[#allocation2 + $0x3c] sm:$0xf] }
  0xe2   : > { %v6272_v16 = vcombine.low %v4692_v49, %v4695_v9  ;;  %v3228_v45 = vrot.slane %v3226_v43, 4  ;;  %v3231_v51 = vrot.slane %v3229_v21, 5  ;;  %v3239_v24 = vshrl.u32 %v7995_v55, 16 }
  0xe3   : > { %6648 = vmatmul.mubr.msk.bf16.vlgmr.msra.gmra.mrb[16].mxu0 %vm726_vm5, %v6191_v62  ;;  %6723 = vmatprep.mubr.msk.bf16.mxu1 %vm726_vm5, %v6271_v4  ;;  %v3237_v30 = vrot.slane %v3235_v34, 5  ;;  %v3245_v63 = vshll.u32 %v3171_v25, 16  ;;  %v3250_v12 = vshrl.u32 %v8009_v13, 16  ;;  %v3253_v36 = vshll.u32 %v8009_v13, 16 }
  0xe4   : > { %6664 = vmatpush3.bf16.msra.mxu0 %v3584_v7  ;;  %6724 = vmatmul.mubr.msk.bf16.gmra.mrb[20].mxu1 %vm726_vm5, %v6272_v16  ;;  %v3232_v31 = vor.u32 %v3231_v51, %v3228_v45  ;;  %v3241_v23 = vrot.slane %v3239_v24, 4  ;;  %v3259_v27 = vshll.u32 %v8014_v29, 16  ;;  %v3263_v46 = vshrl.u32 %v8014_v29, 16  ;;  %v3173_v24 = vld [vmem:[#allocation2 + $0x44] sm:$0x1] }
  0xe5   : > { %v3247_v8 = vrot.slane %v3245_v63, 5  ;;  %v3252_v11 = vrot.slane %v3250_v12, 4  ;;  %v3255_v54 = vrot.slane %v3253_v36, 5  ;;  %v3269_v61 = vshll.u32 %v3172_v48, 16  ;;  %6991 = vmatprep.subr.msk.bf16.mxu0 %vm751_vm0, %v8022_v40  ;;  %v8051_v48 = vld [vmem:[#allocation2 + $0x40] sm:$0xf] }
  0xe6   : > { %v3233_v20 = vrot.slane %v3232_v31, 4  ;;  %v3242_v7 = vor.u32 %v3241_v23, %v3237_v30  ;;  %v3261_v2 = vrot.slane %v3259_v27, 5  ;;  %v3265_v52 = vrot.slane %v3263_v46, 4  ;;  %v8058_v63 = vld [vmem:[#allocation2 + $0x48] sm:$0xf] }
  0xe7   : > { %v3256_v35 = vor.u32 %v3255_v54, %v3252_v11  ;;  %v3271_v19 = vrot.slane %v3269_v61, 5  ;;  %v6264_v26 = vrot.slane %v4640_v44, 9  ;;  %v4698_v56 = vrot.slane %v8017_v22, 5  ;;  %v8064_v27 = vld [vmem:[#allocation2 + $0x4c] sm:$0xf] }
  0xe8   : > { %v3238_v42 = vsel %vm7412_vm9, %v3233_v20, %v3237_v30  ;;  %v3243_v49 = vrot.slane %v3242_v7, 4  ;;  %v3266_v59 = vor.u32 %v3265_v52, %v3261_v2  ;;  %v4701_v38 = vrot.slane %v8028_v53, 5  ;;  %v3174_v54 = vld [vmem:[#allocation2 + $0x50] sm:$0x1]  ;;  %v8074_v52 = vld [vmem:[#allocation2 + $0x58] sm:$0xf] }
  0xe9   : > { %v3257_v10 = vrot.slane %v3256_v35, 4  ;;  %v4699_v25 = vsel %vm7368_vm8, %v6264_v26, %v4698_v56  ;;  %v4700_v43 = vrot.slane %v4698_v56, 4  ;;  %v6265_v21 = vrot.slane %v4641_v1, 9  ;;  %v4642_v56 = vld [vmem:[#allocation2 + $0x54] sm:$0xe] }
  0xea   : > { %v3248_v62 = vsel %vm7412_vm9, %v3243_v49, %v3247_v8  ;;  %v3267_v4 = vrot.slane %v3266_v59, 4  ;;  %v4705_v9 = vrot.slane %v8033_v60, 5  ;;  %v4708_v34 = vrot.slane %v8038_v5, 5 }
  0xeb   : > { %v6192_v16 = vcombine.low %v3238_v42, %v3248_v62  ;;  %v3262_v45 = vsel %vm7412_vm9, %v3257_v10, %v3261_v2  ;;  %v4702_v51 = vsel %vm7368_vm8, %v4700_v43, %v4701_v38  ;;  %v3274_v30 = vshrl.u32 %v8043_v17, 16  ;;  %v8079_v10 = vld [vmem:[#allocation2 + $0x5c] sm:$0x1] }
  0xec   : > { %v3272_v12 = vsel %vm7412_vm9, %v3267_v4, %v3271_v19  ;;  %v6273_v36 = vcombine.low %v4699_v25, %v4702_v51  ;;  %v4706_v31 = vsel %vm7368_vm8, %v6265_v21, %v4705_v9  ;;  %v4707_v23 = vrot.slane %v4705_v9, 4  ;;  %v8083_v4 = vld [vmem:[#allocation2 + $0x64] sm:$0xf]  ;;  %v4643_v51 = vld [vmem:[#allocation2 + $0x60] sm:$0xe] }
  0xed   : > { %6651 = vmatprep.mubr.msk.bf16.mxu0 %vm726_vm5, %v6192_v16  ;;  %v6193_v46 = vcombine.low %v3262_v45, %v3272_v12  ;;  %v3276_v44 = vrot.slane %v3274_v30, 4  ;;  %v3277_v8 = vshll.u32 %v8043_v17, 16  ;;  %v3283_v11 = vshll.u32 %v8051_v48, 16 }
  0xee   : > { %6727 = vmatprep.mubr.msk.bf16.mxu1 %vm726_vm5, %v6273_v36  ;;  %v4709_v61 = vsel %vm7368_vm8, %v4707_v23, %v4708_v34  ;;  %v3287_v20 = vshrl.u32 %v8051_v48, 16  ;;  %v3293_v7 = vshll.u32 %v3173_v24, 16  ;;  %v3298_v2 = vshrl.u32 %v8058_v63, 16 }
  0xef   : > { %6652 = vmatmul.mubr.msk.bf16.gmra.mrb[20].mxu0 %vm726_vm5, %v6193_v46  ;;  %v6274_v1 = vcombine.low %v4706_v31, %v4709_v61  ;;  %v3279_v35 = vrot.slane %v3277_v8, 5  ;;  %v3285_v19 = vrot.slane %v3283_v11, 5  ;;  %v3301_v26 = vshll.u32 %v8058_v63, 16  ;;  %v8086_v31 = vld [vmem:[#allocation2 + $0x68] sm:$0x1] }
  0xf0   : > { %v3289_v42 = vrot.slane %v3287_v20, 4  ;;  %v3295_v49 = vrot.slane %v3293_v7, 5  ;;  %v3300_v59 = vrot.slane %v3298_v2, 4  ;;  %v3307_v38 = vshll.u32 %v8064_v27, 16  ;;  %v8093_v7 = vld [vmem:[#allocation2 + $0x54] sm:$0xf] }
  0xf1   : > { %6728 = vmatmul.mubr.msk.bf16.gmra.mrb[24].mxu1 %vm726_vm5, %v6274_v1  ;;  %v3280_v25 = vor.u32 %v3279_v35, %v3276_v44  ;;  %v3303_v43 = vrot.slane %v3301_v26, 5  ;;  %v3311_v21 = vshrl.u32 %v8064_v27, 16  ;;  %v3317_v62 = vshll.u32 %v3174_v54, 16 }
  0xf2   : > { %v3290_v9 = vor.u32 %v3289_v42, %v3285_v19  ;;  %v3309_v34 = vrot.slane %v3307_v38, 5  ;;  %v6266_v16 = vrot.slane %v4642_v56, 9  ;;  %v4712_v45 = vrot.slane %v8074_v52, 5  ;;  %v8101_v56 = vld [vmem:[#allocation2 + $0x58] sm:$0xf] }
  0xf3   : > { %v3281_v24 = vrot.slane %v3280_v25, 4  ;;  %v3304_v30 = vor.u32 %v3303_v43, %v3300_v59  ;;  %v3313_v12 = vrot.slane %v3311_v21, 4  ;;  %v3319_v36 = vrot.slane %v3317_v62, 5  ;;  %v3175_v42 = vld [vmem:[#allocation2 + $0x5c] sm:$0x1] }
  0xf4   : > { %v3291_v23 = vrot.slane %v3290_v9, 4  ;;  %v4713_v46 = vsel %vm7368_vm8, %v6266_v16, %v4712_v45  ;;  %v4714_v44 = vrot.slane %v4712_v45, 4  ;;  %v4715_v8 = vrot.slane %v8079_v10, 5  ;;  %v8109_v9 = vld [vmem:[#allocation2 + $0x60] sm:$0xf] }
  0xf5   : > { %v3286_v11 = vsel %vm7412_vm9, %v3281_v24, %v3285_v19  ;;  %v3305_v54 = vrot.slane %v3304_v30, 4  ;;  %v3314_v61 = vor.u32 %v3313_v12, %v3309_v34  ;;  %v6267_v20 = vrot.slane %v4643_v51, 9  ;;  %v8117_v24 = vld [vmem:[#allocation2 + $0x64] sm:$0xf] }
  0xf6   : > { %v3296_v2 = vsel %vm7412_vm9, %v3291_v23, %v3295_v49  ;;  %v4716_v1 = vsel %vm7368_vm8, %v4714_v44, %v4715_v8  ;;  %v4719_v35 = vrot.slane %v8083_v4, 5  ;;  %v4722_v26 = vrot.slane %v8086_v31, 5  ;;  %v3176_v44 = vld [vmem:[#allocation2 + $0x68] sm:$0x1]  ;;  %v4418_v8 = vld [vmem:[#allocation2 + $0xc] sm:$0xf] }
  0xf7   : > { %v6194_v59 = vcombine.low %v3286_v11, %v3296_v2  ;;  %v3310_v19 = vsel %vm7412_vm9, %v3305_v54, %v3309_v34  ;;  %v3315_v38 = vrot.slane %v3314_v61, 4  ;;  %v6275_v25 = vcombine.low %v4713_v46, %v4716_v1 }
  0xf8   : > { %v4720_v43 = vsel %vm7368_vm8, %v6267_v20, %v4719_v35  ;;  %v4721_v49 = vrot.slane %v4719_v35, 4  ;;  %v3322_v21 = vshrl.u32 %v8093_v7, 16  ;;  %v3325_v62 = vshll.u32 %v8093_v7, 16 }
  0xf9   : > { %6655 = vmatprep.mubr.msk.bf16.mxu0 %vm726_vm5, %v6194_v59  ;;  %v3320_v16 = vsel %vm7412_vm9, %v3315_v38, %v3319_v36  ;;  %6731 = vmatprep.mubr.msk.bf16.mxu1 %vm726_vm5, %v6275_v25  ;;  %v3331_v34 = vshll.u32 %v8101_v56, 16  ;;  %v3335_v45 = vshrl.u32 %v8101_v56, 16  ;;  %v3341_v51 = vshll.u32 %v3175_v42, 16 }
  0xfa   : > { %v6195_v30 = vcombine.low %v3310_v19, %v3320_v16  ;;  %v4723_v12 = vsel %vm7368_vm8, %v4721_v49, %v4722_v26  ;;  %v3324_v23 = vrot.slane %v3322_v21, 4  ;;  %v3327_v46 = vrot.slane %v3325_v62, 5 }
  0xfb   : > { %v6276_v11 = vcombine.low %v4720_v43, %v4723_v12  ;;  %v3333_v54 = vrot.slane %v3331_v34, 5  ;;  %v3337_v36 = vrot.slane %v3335_v45, 4  ;;  %v3343_v61 = vrot.slane %v3341_v51, 5 }
  0xfc   : > { %6656 = vmatmul.mubr.msk.bf16.gmra.mrb[24].mxu0 %vm726_vm5, %v6195_v30  ;;  %v3328_v20 = vor.u32 %v3327_v46, %v3324_v23  ;;  %v3346_v2 = vshrl.u32 %v8109_v9, 16  ;;  %v3349_v1 = vshll.u32 %v8109_v9, 16  ;;  %v3355_v35 = vshll.u32 %v8117_v24, 16  ;;  %v4421_v23 = vld [vmem:[#allocation2 + $0x18] sm:$0xf] }
  0xfd   : > { %6732 = vmatmul.mubr.msk.bf16.gmra.mrb[28].mxu1 %vm726_vm5, %v6276_v11  ;;  %v3338_v26 = vor.u32 %v3337_v36, %v3333_v54  ;;  %v3359_v42 = vshrl.u32 %v8117_v24, 16  ;;  %v3365_v59 = vshll.u32 %v3176_v44, 16  ;;  %v4443_v19 = vshrl.u32 %v4418_v8, 16 }
  0xfe   : > { %v3329_v38 = vrot.slane %v3328_v20, 4  ;;  %v3348_v25 = vrot.slane %v3346_v2, 4  ;;  %v3351_v43 = vrot.slane %v3349_v1, 5  ;;  %v3357_v49 = vrot.slane %v3355_v35, 5 }
  0xff   : > { %v3339_v21 = vrot.slane %v3338_v26, 4  ;;  %v3361_v62 = vrot.slane %v3359_v42, 4  ;;  %v3367_v16 = vrot.slane %v3365_v59, 5  ;;  %v4445_v34 = vrot.slane %v4443_v19, 4 }
 0x100   : > { %v3334_v45 = vsel %vm7412_vm9, %v3329_v38, %v3333_v54  ;;  %v3352_v51 = vor.u32 %v3351_v43, %v3348_v25  ;;  %v4446_v30 = vshll.u32 %v4418_v8, 16  ;;  %v4452_v12 = vshll.u32 %v7909_v0, 16 }
 0x101   : > { %v3344_v46 = vsel %vm7412_vm9, %v3339_v21, %v3343_v61  ;;  %v3362_v44 = vor.u32 %v3361_v62, %v3357_v49  ;;  %v4456_v11 = vshrl.u32 %v7909_v0, 16  ;;  %v4462_v36 = vshll.u32 %v7912_v15, 16 }
 0x102   : > { %v6196_v20 = vcombine.low %v3334_v45, %v3344_v46  ;;  %v3353_v2 = vrot.slane %v3352_v51, 4  ;;  %v4448_v1 = vrot.slane %v4446_v30, 5  ;;  %v4454_v35 = vrot.slane %v4452_v12, 5 }
 0x103   : > { %v3363_v26 = vrot.slane %v3362_v44, 4  ;;  %v4458_v42 = vrot.slane %v4456_v11, 4  ;;  %v4464_v54 = vrot.slane %v4462_v36, 5  ;;  %v4467_v59 = vshrl.u32 %v4421_v23, 16 }
 0x104   : > { %6659 = vmatprep.mubr.msk.bf16.mxu0 %vm726_vm5, %v6196_v20  ;;  %v3358_v8 = vsel %vm7412_vm9, %v3353_v2, %v3357_v49  ;;  %v4449_v19 = vor.u32 %v4448_v1, %v4445_v34  ;;  %v4470_v61 = vshll.u32 %v4421_v23, 16  ;;  %v4476_v38 = vshll.u32 %v7918_v28, 16  ;;  %v4424_v34 = vld [vmem:[#allocation2 + $0x24] sm:$0xf] }
 0x105   : > { %v3368_v0 = vsel %vm7412_vm9, %v3363_v26, %v3367_v16  ;;  %v4459_v15 = vor.u32 %v4458_v42, %v4454_v35  ;;  %v4469_v25 = vrot.slane %v4467_v59, 4  ;;  %v4480_v43 = vshrl.u32 %v7918_v28, 16 }
 0x106   : > { %v6197_v21 = vcombine.low %v3358_v8, %v3368_v0  ;;  %v4450_v62 = vrot.slane %v4449_v19, 4  ;;  %v4472_v45 = vrot.slane %v4470_v61, 5  ;;  %v4478_v51 = vrot.slane %v4476_v38, 5 }
 0x107   : > { %v4460_v30 = vrot.slane %v4459_v15, 4  ;;  %v4482_v12 = vrot.slane %v4480_v43, 4  ;;  %v4486_v46 = vshll.u32 %v7920_v18, 16  ;;  %v6206_v49 = vcombine.low %v7931_v58, %v7937_v50  ;;  %v4427_v50 = vld [vmem:[#allocation2 + $0x30] sm:$0xf] }
 0x108   : > { %6660 = vmatmul.mubr.msk.bf16.gmra.mrb[28].mxu0 %vm726_vm5, %v6197_v21  ;;  %v4455_v16 = vsel %vm7412_vm9, %v4450_v62, %v4454_v35  ;;  %v4473_v23 = vor.u32 %v4472_v45, %v4469_v25  ;;  %v6207_v28 = vcombine.low %v7951_v37, %v7953_v32  ;;  %v3767_v44 = vsel %vm751_vm0, %v8022_v40, 0  ;;  %v4430_v43 = vld [vmem:[#allocation2 + $0x3c] sm:$0xf] }
 0x109   : > { %v4465_v11 = vsel %vm7412_vm9, %v4460_v30, %v4464_v54  ;;  %v4483_v18 = vor.u32 %v4482_v12, %v4478_v51  ;;  %v4488_v36 = vrot.slane %v4486_v46, 5  ;;  %6665 = vmatprep.mubr.msk.bf16.mxu0 %vm726_vm5, %v6206_v49  ;;  %v5289_v58 = vsel %vm751_vm0, %v7976_v6, 0 }
 0x10a   : > { %v6285_v20 = vcombine.low %v4455_v16, %v4465_v11  ;;  %v4474_v2 = vrot.slane %v4473_v23, 4  ;;  %v4491_v1 = vshrl.u32 %v4424_v34, 16  ;;  %v4494_v35 = vshll.u32 %v4424_v34, 16 }
 0x10b   : > { %v4484_v26 = vrot.slane %v4483_v18, 4  ;;  %v4500_v37 = vshll.u32 %v7963_v39, 16  ;;  %v4504_v32 = vshrl.u32 %v7963_v39, 16  ;;  %v4510_v40 = vshll.u32 %v7965_v47, 16 }
 0x10c   : > { %6737 = vmatprep.mubr.msk.bf16.mxu1 %vm726_vm5, %v6285_v20  ;;  %v4479_v42 = vsel %vm7412_vm9, %v4474_v2, %v4478_v51  ;;  %v4493_v54 = vrot.slane %v4491_v1, 4  ;;  %v4496_v59 = vrot.slane %v4494_v35, 5  ;;  %v4515_v6 = vshrl.u32 %v4427_v50, 16  ;;  %v8170_v51 = vld [vmem:[%s8899_s2 + $0x16] sm:$0x3] }
 0x10d   : > { %v4489_v8 = vsel %vm7412_vm9, %v4484_v26, %v4488_v36  ;;  %v4502_v19 = vrot.slane %v4500_v37, 5  ;;  %v4506_v61 = vrot.slane %v4504_v32, 4  ;;  %v4512_v38 = vrot.slane %v4510_v40, 5  ;;  %v4433_v36 = vld [vmem:[#allocation2 + $0x48] sm:$0xf] }
 0x10e   : > { %v6286_v0 = vcombine.low %v4479_v42, %v4489_v8  ;;  %v4497_v15 = vor.u32 %v4496_v59, %v4493_v54  ;;  %v4517_v25 = vrot.slane %v4515_v6, 4  ;;  %v4518_v39 = vshll.u32 %v4427_v50, 16 }
 0x10f   : > { %v4507_v47 = vor.u32 %v4506_v61, %v4502_v19  ;;  %v4524_v21 = vshll.u32 %v7969_v3, 16  ;;  %v4528_v62 = vshrl.u32 %v7969_v3, 16  ;;  %v4534_v45 = vshll.u32 %v7984_v14, 16  ;;  %v8181_v3 = vld [vmem:[%s8899_s2 + $0x1e] sm:$0x3] }
 0x110   : > { %6738 = vmatmul.mubr.msk.bf16.vlgmr.msra.gmra.mrb[16].mxu1 %vm726_vm5, %v6286_v0  ;;  %6666 = vmatmul.mubr.msk.bf16.vlgmr.msra.gmra.mrb[16].mxu0 %vm726_vm5, %v6207_v28  ;;  %v4498_v30 = vrot.slane %v4497_v15, 4  ;;  %v4520_v12 = vrot.slane %v4518_v39, 5  ;;  %v6208_v46 = vcombine.low %v7989_v33, %v7995_v55  ;;  %v6209_v49 = vcombine.low %v8009_v13, %v8014_v29  ;;  %v4436_v0 = vld [vmem:[#allocation2 + $0x54] sm:$0xf] }
 0x111   : > { %6682 = vmatpush3.bf16.msra.mxu0 %v3767_v44  ;;  %6754 = vmatpush3.bf16.msra.mxu1 %v5289_v58  ;;  %v4508_v14 = vrot.slane %v4507_v47, 4  ;;  %v4526_v34 = vrot.slane %v4524_v21, 5  ;;  %v4530_v16 = vrot.slane %v4528_v62, 4  ;;  %v4536_v23 = vrot.slane %v4534_v45, 5 }
 0x112   : > { %v4503_v28 = vsel %vm7412_vm9, %v4498_v30, %v4502_v19  ;;  %v4521_v11 = vor.u32 %v4520_v12, %v4517_v25  ;;  %6669 = vmatprep.mubr.msk.bf16.mxu0 %vm726_vm5, %v6208_v46  ;;  %v4539_v33 = vshrl.u32 %v4430_v43, 16  ;;  %v4542_v55 = vshll.u32 %v4430_v43, 16  ;;  %6992 = vmatprep.subr.msk.bf16.mxu0 %vm751_vm0, %v8170_v51 }
 0x113   : > { %v4513_v13 = vsel %vm7412_vm9, %v4508_v14, %v4512_v38  ;;  %v4531_v29 = vor.u32 %v4530_v16, %v4526_v34  ;;  %v4548_v44 = vshll.u32 %v8017_v22, 16  ;;  %v4552_v18 = vshrl.u32 %v8017_v22, 16  ;;  %6996 = vmatprep.subr.msk.bf16.mxu1 %vm751_vm0, %v8181_v3 }
 0x114   : > { %v6287_v58 = vcombine.low %v4503_v28, %v4513_v13  ;;  %v4522_v50 = vrot.slane %v4521_v11, 4  ;;  %v4541_v20 = vrot.slane %v4539_v33, 4  ;;  %v4544_v2 = vrot.slane %v4542_v55, 5 }
 0x115   : > { %v4532_v1 = vrot.slane %v4531_v29, 4  ;;  %v4550_v35 = vrot.slane %v4548_v44, 5  ;;  %v4554_v26 = vrot.slane %v4552_v18, 4  ;;  %v4558_v37 = vshll.u32 %v8028_v53, 16 }
 0x116   : > { %6741 = vmatprep.mubr.msk.bf16.mxu1 %vm726_vm5, %v6287_v58  ;;  %v4527_v32 = vsel %vm7412_vm9, %v4522_v50, %v4526_v34  ;;  %v4545_v40 = vor.u32 %v4544_v2, %v4541_v20  ;;  %v4563_v22 = vshrl.u32 %v4433_v36, 16  ;;  %v4566_v42 = vshll.u32 %v4433_v36, 16 }
 0x117   : > { %v4537_v54 = vsel %vm7412_vm9, %v4532_v1, %v4536_v23  ;;  %v4555_v59 = vor.u32 %v4554_v26, %v4550_v35  ;;  %v4560_v6 = vrot.slane %v4558_v37, 5  ;;  %v4572_v8 = vshll.u32 %v8033_v60, 16  ;;  %v5022_v1 = vld [vmem:[#allocation2 + $0x18] sm:$0xf] }
 0x118   : > { %v6288_v19 = vcombine.low %v4527_v32, %v4537_v54  ;;  %6670 = vmatmul.mubr.msk.bf16.gmra.mrb[20].mxu0 %vm726_vm5, %v6209_v49  ;;  %v4546_v61 = vrot.slane %v4545_v40, 4  ;;  %v4565_v53 = vrot.slane %v4563_v22, 4  ;;  %v4568_v38 = vrot.slane %v4566_v42, 5  ;;  %v4439_v49 = vld [vmem:[#allocation2 + $0x60] sm:$0xf] }
 0x119   : > { %v4556_v15 = vrot.slane %v4555_v59, 4  ;;  %v4574_v25 = vrot.slane %v4572_v8, 5  ;;  %v4576_v39 = vshrl.u32 %v8033_v60, 16  ;;  %v4582_v43 = vshll.u32 %v8038_v5, 16  ;;  %v8226_v40 = vld [vmem:[#allocation2 + $0x1c] sm:$0xf] }
 0x11a   : > { %6742 = vmatmul.mubr.msk.bf16.gmra.mrb[20].mxu1 %vm726_vm5, %v6288_v19  ;;  %v4551_v47 = vsel %vm7412_vm9, %v4546_v61, %v4550_v35  ;;  %v4569_v21 = vor.u32 %v4568_v38, %v4565_v53  ;;  %v6210_v62 = vcombine.low %v8043_v17, %v8051_v48  ;;  %v6211_v45 = vcombine.low %v8058_v63, %v8064_v27  ;;  %v8235_v8 = vld [vmem:[#allocation2 + $0x20] sm:$0x1] }
 0x11b   : > { %v4561_v30 = vsel %vm7412_vm9, %v4556_v15, %v4560_v6  ;;  %v4578_v12 = vrot.slane %v4576_v39, 4  ;;  %v4584_v46 = vrot.slane %v4582_v43, 5  ;;  %v4587_v60 = vshrl.u32 %v4436_v0, 16 }
 0x11c   : > { %v6289_v5 = vcombine.low %v4551_v47, %v4561_v30  ;;  %v4570_v14 = vrot.slane %v4569_v21, 4  ;;  %6673 = vmatprep.mubr.msk.bf16.mxu0 %vm726_vm5, %v6210_v62  ;;  %v4590_v34 = vshll.u32 %v4436_v0, 16  ;;  %v4596_v16 = vshll.u32 %v8074_v52, 16  ;;  %v7132_v0 = vld [vmem:[#allocation2 + $0x18] sm:$0xff]  }
 0x11d   : > { %v4579_v23 = vor.u32 %v4578_v12, %v4574_v25  ;;  %v4589_v28 = vrot.slane %v4587_v60, 4  ;;  %v4600_v17 = vshrl.u32 %v8074_v52, 16  ;;  %v4606_v48 = vshll.u32 %v8079_v10, 16  ;;  %v8251_v12 = vld [vmem:[#allocation2 + $0x2c] sm:$0x1] }
 0x11e   : > { %6745 = vmatprep.mubr.msk.bf16.mxu1 %vm726_vm5, %v6289_v5  ;;  %v4575_v63 = vsel %vm7412_vm9, %v4570_v14, %v4574_v25  ;;  %v4592_v27 = vrot.slane %v4590_v34, 5  ;;  %v4598_v11 = vrot.slane %v4596_v16, 5  ;;  %v4611_v33 = vshrl.u32 %v4439_v49, 16 }
 0x11f   : > { %v4580_v55 = vrot.slane %v4579_v23, 4  ;;  %v4602_v13 = vrot.slane %v4600_v17, 4  ;;  %v4608_v29 = vrot.slane %v4606_v48, 5  ;;  %v4614_v44 = vshll.u32 %v4439_v49, 16  ;;  %v5028_v48 = vld [vmem:[#allocation2 + $0x30] sm:$0xf] }
 0x120   : > { %6674 = vmatmul.mubr.msk.bf16.gmra.mrb[24].mxu0 %vm726_vm5, %v6211_v45  ;;  %v4593_v18 = vor.u32 %v4592_v27, %v4589_v28  ;;  %v4613_v36 = vrot.slane %v4611_v33, 4  ;;  %v4620_v52 = vshll.u32 %v8083_v4, 16  ;;  %v4624_v10 = vshrl.u32 %v8083_v4, 16 }
 0x121   : > { %v4585_v58 = vsel %vm7412_vm9, %v4580_v55, %v4584_v46  ;;  %v4603_v50 = vor.u32 %v4602_v13, %v4598_v11  ;;  %v4616_v20 = vrot.slane %v4614_v44, 5  ;;  %v4630_v2 = vshll.u32 %v8086_v31, 16  ;;  %v8259_v55 = vld [vmem:[#allocation2 + $0x34] sm:$0xf] }
 0x122   : > { %v6290_v35 = vcombine.low %v4575_v63, %v4585_v58  ;;  %v4594_v26 = vrot.slane %v4593_v18, 4  ;;  %v4622_v37 = vrot.slane %v4620_v52, 5  ;;  %v4626_v32 = vrot.slane %v4624_v10, 4  ;;  %v7133_v18 = vld [vmem:[#allocation2 + $0x24] sm:$0xff]   ;;  %v8266_v58 = vld [vmem:[#allocation2 + $0x38] sm:$0x1] }
 0x123   : > { %v4604_v22 = vrot.slane %v4603_v50, 4  ;;  %v4617_v42 = vor.u32 %v4616_v20, %v4613_v36  ;;  %v4632_v54 = vrot.slane %v4630_v2, 5  ;;  %v6212_v4 = vcombine.low %v8093_v7, %v8101_v56  ;;  %v5025_v56 = vld [vmem:[#allocation2 + $0x24] sm:$0xf] }
 0x124   : > { %6746 = vmatmul.mubr.msk.bf16.gmra.mrb[24].mxu1 %vm726_vm5, %v6290_v35  ;;  %v4599_v59 = vsel %vm7412_vm9, %v4594_v26, %v4598_v11  ;;  %v4627_v6 = vor.u32 %v4626_v32, %v4622_v37  ;;  %v6213_v31 = vcombine.low %v8109_v9, %v8117_v24  ;;  %v5047_v19 = vshrl.u32 %v5022_v1, 16  ;;  %v8242_v9 = vld [vmem:[#allocation2 + $0x28] sm:$0xf]  ;;  %v5031_v26 = vld [vmem:[#allocation2 + $0x3c] sm:$0xf] }
 0x125   : > { %v4609_v61 = vsel %vm7412_vm9, %v4604_v22, %v4608_v29  ;;  %v4618_v53 = vrot.slane %v4617_v42, 4  ;;  %6677 = vmatprep.mubr.msk.bf16.mxu0 %vm726_vm5, %v6212_v4  ;;  %v5050_v38 = vshll.u32 %v5022_v1, 16  ;;  %v5056_v7 = vshll.u32 %v8226_v40, 16 }
 0x126   : > { %v6291_v15 = vcombine.low %v4599_v59, %v4609_v61  ;;  %v4628_v25 = vrot.slane %v4627_v6, 4  ;;  %v5049_v39 = vrot.slane %v5047_v19, 4  ;;  %v5060_v43 = vshrl.u32 %v8226_v40, 16 }
 0x127   : > { %v4623_v24 = vsel %vm7412_vm9, %v4618_v53, %v4622_v37  ;;  %v5052_v47 = vrot.slane %v5050_v38, 5  ;;  %v5058_v21 = vrot.slane %v5056_v7, 5  ;;  %v5066_v62 = vshll.u32 %v8235_v8, 16  ;;  %v7134_v37 = vld [vmem:[#allocation2 + $0x30] sm:$0xff]   ;;  %v8279_v53 = vld [vmem:[#allocation2 + $0x44] sm:$0x1] }
 0x128   : > { %6749 = vmatprep.mubr.msk.bf16.mxu1 %vm726_vm5, %v6291_v15  ;;  %v4633_v45 = vsel %vm7412_vm9, %v4628_v25, %v4632_v54  ;;  %6678 = vmatmul.mubr.msk.bf16.gmra.mrb[28].mxu0 %vm726_vm5, %v6213_v31  ;;  %v5062_v30 = vrot.slane %v5060_v43, 4  ;;  %v5071_v46 = vshrl.u32 %v5025_v56, 16  ;;  %v5074_v60 = vshll.u32 %v5025_v56, 16  ;;  %v8272_v54 = vld [vmem:[#allocation2 + $0x40] sm:$0xf] }
 0x129   : > { %v6292_v49 = vcombine.low %v4623_v24, %v4633_v45  ;;  %v5053_v5 = vor.u32 %v5052_v47, %v5049_v39  ;;  %v5068_v14 = vrot.slane %v5066_v62, 5  ;;  %v5080_v34 = vshll.u32 %v8242_v9, 16  ;;  %6683 = vmatprep.mubr.msk.bf16.mxu0 %vm726_vm5, %v7132_v0  ;;  %v5034_v39 = vld [vmem:[#allocation2 + $0x48] sm:$0xf]  ;;  %v8286_v62 = vld [vmem:[#allocation2 + $0x4c] sm:$0xf] }
 0x12a   : > { %v5063_v16 = vor.u32 %v5062_v30, %v5058_v21  ;;  %v5073_v23 = vrot.slane %v5071_v46, 4  ;;  %v5076_v28 = vrot.slane %v5074_v60, 5  ;;  %v5084_v17 = vshrl.u32 %v8242_v9, 16 }
 0x12b   : > { %v5054_v63 = vrot.slane %v5053_v5, 4  ;;  %v5082_v27 = vrot.slane %v5080_v34, 5  ;;  %v5090_v11 = vshll.u32 %v8251_v12, 16  ;;  %v4149_v33 = vsel %vm751_vm0, %v8170_v51, 0 }
 0x12c   : > { %6750 = vmatmul.mubr.msk.bf16.gmra.mrb[28].mxu1 %vm726_vm5, %v6292_v49  ;;  %v5064_v13 = vrot.slane %v5063_v16, 4  ;;  %v5077_v29 = vor.u32 %v5076_v28, %v5073_v23  ;;  %v5086_v44 = vrot.slane %v5084_v17, 4  ;;  %v5543_v36 = vsel %vm751_vm0, %v8181_v3, 0  ;;  %v7135_v49 = vld [vmem:[#allocation2 + $0x3c] sm:$0xff]   ;;  %v7136_v23 = vld [vmem:[#allocation2 + $0x48] sm:$0xff]  }
 0x12d   : > { %v5059_v52 = vsel %vm7412_vm9, %v5054_v63, %v5058_v21  ;;  %v5092_v10 = vrot.slane %v5090_v11, 5  ;;  %v5095_v50 = vshrl.u32 %v5028_v48, 16  ;;  %v5098_v20 = vshll.u32 %v5028_v48, 16  ;;  %v8292_v63 = vld [vmem:[#allocation2 + $0x50] sm:$0x1] }
 0x12e   : > { %v5069_v51 = vsel %vm7412_vm9, %v5064_v13, %v5068_v14  ;;  %v5078_v2 = vrot.slane %v5077_v29, 4  ;;  %v5087_v1 = vor.u32 %v5086_v44, %v5082_v27  ;;  %v5104_v35 = vshll.u32 %v8259_v55, 16  ;;  %v5037_v11 = vld [vmem:[#allocation2 + $0x54] sm:$0xf] }
 0x12f   : > { %v6302_v32 = vcombine.low %v5059_v52, %v5069_v51  ;;  %v5097_v22 = vrot.slane %v5095_v50, 4  ;;  %v5100_v3 = vrot.slane %v5098_v20, 5  ;;  %v5108_v42 = vshrl.u32 %v8259_v55, 16 }
 0x130   : > { %v5083_v4 = vsel %vm7412_vm9, %v5078_v2, %v5082_v27  ;;  %v5088_v59 = vrot.slane %v5087_v1, 4  ;;  %6684 = vmatmul.mubr.msk.bf16.vlgmr.msra.gmra.mrb[16].mxu0 %vm726_vm5, %v7133_v18  ;;  %v5106_v6 = vrot.slane %v5104_v35, 5  ;;  %v5114_v31 = vshll.u32 %v8266_v58, 16  ;;  %v8298_v18 = vld [vmem:[#allocation2 + $0x58] sm:$0xf] }
 0x131   : > { %6755 = vmatprep.mubr.msk.bf16.mxu1 %vm726_vm5, %v6302_v32  ;;  %6700 = vmatpush3.bf16.msra.mxu0 %v4149_v33  ;;  %v5101_v19 = vor.u32 %v5100_v3, %v5097_v22  ;;  %v5110_v61 = vrot.slane %v5108_v42, 4  ;;  %v5119_v38 = vshrl.u32 %v5031_v26, 16  ;;  %v5122_v7 = vshll.u32 %v5031_v26, 16  ;;  %v5040_v3 = vld [vmem:[#allocation2 + $0x60] sm:$0xf] }
 0x132   : > { %v5093_v56 = vsel %vm7412_vm9, %v5088_v59, %v5092_v10  ;;  %v5116_v0 = vrot.slane %v5114_v31, 5  ;;  %v5128_v15 = vshll.u32 %v8272_v54, 16  ;;  %v5132_v25 = vshrl.u32 %v8272_v54, 16  ;;  %6687 = vmatprep.mubr.msk.bf16.mxu0 %vm726_vm5, %v7134_v37  ;;  %v8308_v37 = vld [vmem:[#allocation2 + $0x5c] sm:$0x1] }
 0x133   : > { %v6303_v43 = vcombine.low %v5083_v4, %v5093_v56  ;;  %v5102_v24 = vrot.slane %v5101_v19, 4  ;;  %v5111_v47 = vor.u32 %v5110_v61, %v5106_v6  ;;  %v5121_v21 = vrot.slane %v5119_v38, 4  ;;  %v8311_v31 = vld [vmem:[#allocation2 + $0x64] sm:$0xf]  ;;  %v7137_v56 = vld [vmem:[#allocation2 + $0x54] sm:$0xff]  }
 0x134   : > { %v5124_v45 = vrot.slane %v5122_v7, 5  ;;  %v5130_v30 = vrot.slane %v5128_v15, 5  ;;  %v5134_v46 = vrot.slane %v5132_v25, 4  ;;  %v5138_v60 = vshll.u32 %v8279_v53, 16 }
 0x135   : > { %6756 = vmatmul.mubr.msk.bf16.vlgmr.msra.gmra.mrb[16].mxu1 %vm726_vm5, %v6303_v43  ;;  %v5107_v5 = vsel %vm7412_vm9, %v5102_v24, %v5106_v6  ;;  %v5112_v14 = vrot.slane %v5111_v47, 4  ;;  %v5143_v34 = vshrl.u32 %v5034_v39, 16  ;;  %v5146_v16 = vshll.u32 %v5034_v39, 16  ;;  %v8318_v39 = vld [vmem:[#allocation2 + $0x68] sm:$0x1]  ;;  %v7138_v24 = vld [vmem:[#allocation2 + $0x60] sm:$0xff]  }
 0x136   : > { %6772 = vmatpush3.bf16.msra.mxu1 %v5543_v36  ;;  %v5125_v28 = vor.u32 %v5124_v45, %v5121_v21  ;;  %v5135_v17 = vor.u32 %v5134_v46, %v5130_v30  ;;  %v5140_v48 = vrot.slane %v5138_v60, 5  ;;  %v5152_v27 = vshll.u32 %v8286_v62, 16  ;;  %v5043_v46 = vld [vmem:[#allocation2 + $0x6c] sm:$0xf] }
 0x137   : > { %v5117_v33 = vsel %vm7412_vm9, %v5112_v14, %v5116_v0  ;;  %v5145_v13 = vrot.slane %v5143_v34, 4  ;;  %v5148_v29 = vrot.slane %v5146_v16, 5  ;;  %v5156_v44 = vshrl.u32 %v8286_v62, 16 }
 0x138   : > { %v6304_v52 = vcombine.low %v5107_v5, %v5117_v33  ;;  %v5126_v10 = vrot.slane %v5125_v28, 4  ;;  %v5136_v36 = vrot.slane %v5135_v17, 4  ;;  %6688 = vmatmul.mubr.msk.bf16.gmra.mrb[20].mxu0 %vm726_vm5, %v7135_v49  ;;  %v5154_v50 = vrot.slane %v5152_v27, 5  ;;  %v8325_v17 = vld [vmem:[#allocation2 + $0x70] sm:$0xf] }
 0x139   : > { %v5149_v20 = vor.u32 %v5148_v29, %v5145_v13  ;;  %v5158_v51 = vrot.slane %v5156_v44, 4  ;;  %v5162_v2 = vshll.u32 %v8292_v63, 16  ;;  %v5167_v1 = vshrl.u32 %v5037_v11, 16  ;;  %6691 = vmatprep.mubr.msk.bf16.mxu0 %vm726_vm5, %v7136_v23 }
 0x13a   : > { %6759 = vmatprep.mubr.msk.bf16.mxu1 %vm726_vm5, %v6304_v52  ;;  %v5131_v35 = vsel %vm7412_vm9, %v5126_v10, %v5130_v30  ;;  %v5141_v26 = vsel %vm7412_vm9, %v5136_v36, %v5140_v48  ;;  %v5170_v32 = vshll.u32 %v5037_v11, 16  ;;  %v5176_v22 = vshll.u32 %v8298_v18, 16  ;;  %v8332_v52 = vld [vmem:[#allocation2 + $0x74] sm:$0x1] }
 0x13b   : > { %v6305_v42 = vcombine.low %v5131_v35, %v5141_v26  ;;  %v5150_v4 = vrot.slane %v5149_v20, 4  ;;  %v5159_v59 = vor.u32 %v5158_v51, %v5154_v50  ;;  %v5164_v6 = vrot.slane %v5162_v2, 5  ;;  %v5404_v2 = vld [vmem:[#allocation2 + $0x18] sm:$0xe] }
 0x13c   : > { %v5169_v19 = vrot.slane %v5167_v1, 4  ;;  %v5172_v61 = vrot.slane %v5170_v32, 5  ;;  %v5178_v38 = vrot.slane %v5176_v22, 5  ;;  %v5180_v7 = vshrl.u32 %v8298_v18, 16  ;;  %v7139_v22 = vld [vmem:[#allocation2 + $0x6c] sm:$0xff]  }
 0x13d   : > { %6760 = vmatmul.mubr.msk.bf16.gmra.mrb[20].mxu1 %vm726_vm5, %v6305_v42  ;;  %v5155_v0 = vsel %vm7412_vm9, %v5150_v4, %v5154_v50  ;;  %v5160_v15 = vrot.slane %v5159_v59, 4  ;;  %v5186_v25 = vshll.u32 %v8308_v37, 16  ;;  %v5191_v43 = vshrl.u32 %v5040_v3, 16 }
 0x13e   : > { %v5173_v47 = vor.u32 %v5172_v61, %v5169_v19  ;;  %v5182_v21 = vrot.slane %v5180_v7, 4  ;;  %v5194_v45 = vshll.u32 %v5040_v3, 16  ;;  %v5200_v30 = vshll.u32 %v8311_v31, 16 }
 0x13f   : > { %v5165_v60 = vsel %vm7412_vm9, %v5160_v15, %v5164_v6  ;;  %v5188_v49 = vrot.slane %v5186_v25, 5  ;;  %v5193_v5 = vrot.slane %v5191_v43, 4  ;;  %v5204_v14 = vshrl.u32 %v8311_v31, 16  ;;  %v5405_v6 = vld [vmem:[#allocation2 + $0x24] sm:$0xe] }
 0x140   : > { %v6306_v34 = vcombine.low %v5155_v0, %v5165_v60  ;;  %v5174_v16 = vrot.slane %v5173_v47, 4  ;;  %v5183_v23 = vor.u32 %v5182_v21, %v5178_v38  ;;  %6692 = vmatmul.mubr.msk.bf16.gmra.mrb[24].mxu0 %vm726_vm5, %v7137_v56  ;;  %v5196_v28 = vrot.slane %v5194_v45, 5  ;;  %v3882_v43 = vld [vmem:[#allocation2 + $0x18] sm:$0xf] }
 0x141   : > { %v5202_v48 = vrot.slane %v5200_v30, 5  ;;  %v5206_v27 = vrot.slane %v5204_v14, 4  ;;  %v5210_v11 = vshll.u32 %v8318_v39, 16  ;;  %v5215_v33 = vshrl.u32 %v5043_v46, 16  ;;  %6695 = vmatprep.mubr.msk.bf16.mxu0 %vm726_vm5, %v7138_v24  ;;  %v3883_v30 = vld [vmem:[#allocation2 + $0x1c] sm:$0xf] }
 0x142   : > { %6763 = vmatprep.mubr.msk.bf16.mxu1 %vm726_vm5, %v6306_v34  ;;  %v5179_v13 = vsel %vm7412_vm9, %v5174_v16, %v5178_v38  ;;  %v5184_v29 = vrot.slane %v5183_v23, 4  ;;  %v5197_v44 = vor.u32 %v5196_v28, %v5193_v5  ;;  %v5218_v10 = vshll.u32 %v5043_v46, 16 }
 0x143   : > { %v5207_v36 = vor.u32 %v5206_v27, %v5202_v48  ;;  %v5212_v50 = vrot.slane %v5210_v11, 5  ;;  %v5217_v20 = vrot.slane %v5215_v33, 4  ;;  %v5224_v51 = vshll.u32 %v8325_v17, 16 }
 0x144   : > { %v5189_v1 = vsel %vm7412_vm9, %v5184_v29, %v5188_v49  ;;  %v5198_v35 = vrot.slane %v5197_v44, 4  ;;  %v5220_v26 = vrot.slane %v5218_v10, 5  ;;  %v5228_v32 = vshrl.u32 %v8325_v17, 16  ;;  %v3886_v29 = vld [vmem:[#allocation2 + $0x28] sm:$0xf] }
 0x145   : > { %v6307_v3 = vcombine.low %v5179_v13, %v5189_v1  ;;  %v5208_v42 = vrot.slane %v5207_v36, 4  ;;  %v5226_v4 = vrot.slane %v5224_v51, 5  ;;  %v5234_v59 = vshll.u32 %v8332_v52, 16 }
 0x146   : > { %v5203_v19 = vsel %vm7412_vm9, %v5198_v35, %v5202_v48  ;;  %v5221_v61 = vor.u32 %v5220_v26, %v5217_v20  ;;  %v5230_v38 = vrot.slane %v5228_v32, 4  ;;  %v6318_v7 = vrot.slane %v5404_v2, 9  ;;  %v3884_v48 = vld [vmem:[#allocation2 + $0x20] sm:$0x1]  ;;  %v3887_v20 = vld [vmem:[#allocation2 + $0x2c] sm:$0x1] }
 0x147   : > { %6764 = vmatmul.mubr.msk.bf16.gmra.mrb[24].mxu1 %vm726_vm5, %v6307_v3  ;;  %v5213_v56 = vsel %vm7412_vm9, %v5208_v42, %v5212_v50  ;;  %v5236_v0 = vrot.slane %v5234_v59, 5  ;;  %v5438_v15 = vrot.slane %v8226_v40, 5  ;;  %v5441_v25 = vrot.slane %v8235_v8, 5  ;;  %v5406_v42 = vld [vmem:[#allocation2 + $0x30] sm:$0xe] }
 0x148   : > { %v6308_v24 = vcombine.low %v5203_v19, %v5213_v56  ;;  %v5222_v47 = vrot.slane %v5221_v61, 4  ;;  %v5231_v21 = vor.u32 %v5230_v38, %v5226_v4  ;;  %6696 = vmatmul.mubr.msk.bf16.gmra.mrb[28].mxu0 %vm726_vm5, %v7139_v22  ;;  %v6319_v45 = vrot.slane %v5405_v6, 9 }
 0x149   : > { %v5439_v46 = vsel %vm7368_vm8, %v6318_v7, %v5438_v15  ;;  %v5440_v60 = vrot.slane %v5438_v15, 4  ;;  %v5445_v49 = vrot.slane %v8242_v9, 5  ;;  %v5448_v5 = vrot.slane %v8251_v12, 5  ;;  %v3885_v9 = vld [vmem:[#allocation2 + $0x24] sm:$0xf] }
 0x14a   : > { %6767 = vmatprep.mubr.msk.bf16.mxu1 %vm726_vm5, %v6308_v24  ;;  %v5227_v40 = vsel %vm7412_vm9, %v5222_v47, %v5226_v4  ;;  %v5232_v8 = vrot.slane %v5231_v21, 4  ;;  %v3907_v14 = vshrl.u32 %v3882_v43, 16  ;;  %v3910_v34 = vshll.u32 %v3882_v43, 16 }
 0x14b   : > { %v5442_v16 = vsel %vm7368_vm8, %v5440_v60, %v5441_v25  ;;  %v5446_v23 = vsel %vm7368_vm8, %v6319_v45, %v5445_v49  ;;  %v5447_v28 = vrot.slane %v5445_v49, 4  ;;  %v3916_v27 = vshll.u32 %v3883_v30, 16 }
 0x14c   : > { %v5237_v12 = vsel %vm7412_vm9, %v5232_v8, %v5236_v0  ;;  %v6327_v11 = vcombine.low %v5439_v46, %v5442_v16  ;;  %v3909_v33 = vrot.slane %v3907_v14, 4  ;;  %v3912_v13 = vrot.slane %v3910_v34, 5  ;;  %v5407_v0 = vld [vmem:[#allocation2 + $0x3c] sm:$0xe]  ;;  %v3889_v16 = vld [vmem:[#allocation2 + $0x34] sm:$0xf] }
 0x14d   : > { %v6309_v44 = vcombine.low %v5227_v40, %v5237_v12  ;;  %v5449_v10 = vsel %vm7368_vm8, %v5447_v28, %v5448_v5  ;;  %v3918_v36 = vrot.slane %v3916_v27, 5  ;;  %v3920_v50 = vshrl.u32 %v3883_v30, 16  ;;  %v3888_v40 = vld [vmem:[#allocation2 + $0x30] sm:$0xf]  ;;  %v3890_v27 = vld [vmem:[#allocation2 + $0x38] sm:$0x1] }
 0x14e   : > { %v6328_v51 = vcombine.low %v5446_v23, %v5449_v10  ;;  %v3913_v2 = vor.u32 %v3912_v13, %v3909_v33  ;;  %v3926_v1 = vshll.u32 %v3884_v48, 16  ;;  %v3931_v35 = vshrl.u32 %v3885_v9, 16  ;;  %v3892_v10 = vld [vmem:[#allocation2 + $0x40] sm:$0xf] }
 0x14f   : > { %6768 = vmatmul.mubr.msk.bf16.gmra.mrb[28].mxu1 %vm726_vm5, %v6309_v44  ;;  %v3922_v26 = vrot.slane %v3920_v50, 4  ;;  %v3934_v32 = vshll.u32 %v3885_v9, 16  ;;  %v3940_v22 = vshll.u32 %v3886_v29, 16  ;;  %v3944_v3 = vshrl.u32 %v3886_v29, 16 }
 0x150   : > { %6773 = vmatprep.mubr.msk.bf16.mxu1 %vm726_vm5, %v6327_v11  ;;  %v3914_v4 = vrot.slane %v3913_v2, 4  ;;  %v3928_v59 = vrot.slane %v3926_v1, 5  ;;  %v3933_v6 = vrot.slane %v3931_v35, 4  ;;  %v3950_v19 = vshll.u32 %v3887_v20, 16  ;;  %v3891_v11 = vld [vmem:[#allocation2 + $0x3c] sm:$0xf] }
 0x151   : > { %v3923_v61 = vor.u32 %v3922_v26, %v3918_v36  ;;  %v3936_v38 = vrot.slane %v3934_v32, 5  ;;  %v3942_v7 = vrot.slane %v3940_v22, 5  ;;  %v3946_v56 = vrot.slane %v3944_v3, 4  ;;  %v3893_v2 = vld [vmem:[#allocation2 + $0x44] sm:$0x1] }
 0x152   : > { %v3919_v15 = vsel %vm7412_vm9, %v3914_v4, %v3918_v36  ;;  %v3952_v25 = vrot.slane %v3950_v19, 5  ;;  %v6320_v43 = vrot.slane %v5406_v42, 9  ;;  %v5452_v24 = vrot.slane %v8259_v55, 5  ;;  %v5408_v22 = vld [vmem:[#allocation2 + $0x48] sm:$0xe] }
 0x153   : > { %v3924_v47 = vrot.slane %v3923_v61, 4  ;;  %v3937_v21 = vor.u32 %v3936_v38, %v3933_v6  ;;  %v3947_v45 = vor.u32 %v3946_v56, %v3942_v7  ;;  %v5455_v30 = vrot.slane %v8266_v58, 5 }
 0x154   : > { %v5453_v46 = vsel %vm7368_vm8, %v6320_v43, %v5452_v24  ;;  %v5454_v60 = vrot.slane %v5452_v24, 4  ;;  %v6321_v49 = vrot.slane %v5407_v0, 9  ;;  %v5459_v5 = vrot.slane %v8272_v54, 5 }
 0x155   : > { %v3929_v8 = vsel %vm7412_vm9, %v3924_v47, %v3928_v59  ;;  %v3938_v14 = vrot.slane %v3937_v21, 4  ;;  %v3948_v34 = vrot.slane %v3947_v45, 4  ;;  %v5462_v55 = vrot.slane %v8279_v53, 5 }
 0x156   : > { %v6240_v23 = vcombine.low %v3919_v15, %v3929_v8  ;;  %v5456_v58 = vsel %vm7368_vm8, %v5454_v60, %v5455_v30  ;;  %v5460_v28 = vsel %vm7368_vm8, %v6321_v49, %v5459_v5  ;;  %v5461_v48 = vrot.slane %v5459_v5, 4  ;;  %v3894_v49 = vld [vmem:[#allocation2 + $0x48] sm:$0xf] }
 0x157   : > { %6774 = vmatmul.mubr.msk.bf16.vlgmr.msra.gmra.mrb[16].mxu1 %vm726_vm5, %v6328_v51  ;;  %v3943_v54 = vsel %vm7412_vm9, %v3938_v14, %v3942_v7  ;;  %v3953_v9 = vsel %vm7412_vm9, %v3948_v34, %v3952_v25  ;;  %v6329_v12 = vcombine.low %v5453_v46, %v5456_v58  ;;  %v3955_v53 = vshrl.u32 %v3888_v40, 16  ;;  %v5409_v7 = vld [vmem:[#allocation2 + $0x54] sm:$0xe] }
 0x158   : > { %6701 = vmatprep.mubr.msk.bf16.mxu0 %vm726_vm5, %v6240_v23  ;;  %v6241_v33 = vcombine.low %v3943_v54, %v3953_v9  ;;  %v5463_v13 = vsel %vm7368_vm8, %v5461_v48, %v5462_v55  ;;  %v3958_v29 = vshll.u32 %v3888_v40, 16  ;;  %v3964_v44 = vshll.u32 %v3889_v16, 16  ;;  %v3895_v23 = vld [vmem:[#allocation2 + $0x4c] sm:$0xf]  ;;  %v3896_v48 = vld [vmem:[#allocation2 + $0x50] sm:$0x1] }
 0x159   : > { %6777 = vmatprep.mubr.msk.bf16.mxu1 %vm726_vm5, %v6329_v12  ;;  %v6330_v36 = vcombine.low %v5460_v28, %v5463_v13  ;;  %v3957_v50 = vrot.slane %v3955_v53, 4  ;;  %v3968_v20 = vshrl.u32 %v3889_v16, 16  ;;  %v3974_v51 = vshll.u32 %v3890_v27, 16  ;;  %v3897_v54 = vld [vmem:[#allocation2 + $0x54] sm:$0xf] }
 0x15a   : > { %6702 = vmatmul.mubr.msk.bf16.vlgmr.msra.gmra.mrb[16].mxu0 %vm726_vm5, %v6241_v33  ;;  %v3960_v1 = vrot.slane %v3958_v29, 5  ;;  %v3966_v35 = vrot.slane %v3964_v44, 5  ;;  %v3979_v26 = vshrl.u32 %v3891_v11, 16  ;;  %v3982_v32 = vshll.u32 %v3891_v11, 16  ;;  %v3898_v29 = vld [vmem:[#allocation2 + $0x58] sm:$0xf] }
 0x15b   : > { %v3970_v3 = vrot.slane %v3968_v20, 4  ;;  %v3976_v42 = vrot.slane %v3974_v51, 5  ;;  %v3988_v4 = vshll.u32 %v3892_v10, 16  ;;  %v3992_v59 = vshrl.u32 %v3892_v10, 16 }
 0x15c   : > { %v3961_v6 = vor.u32 %v3960_v1, %v3957_v50  ;;  %v3981_v19 = vrot.slane %v3979_v26, 4  ;;  %v3984_v61 = vrot.slane %v3982_v32, 5  ;;  %v3998_v38 = vshll.u32 %v3893_v2, 16  ;;  %v3899_v50 = vld [vmem:[#allocation2 + $0x5c] sm:$0x1] }
 0x15d   : > { %v3971_v56 = vor.u32 %v3970_v3, %v3966_v35  ;;  %v3990_v0 = vrot.slane %v3988_v4, 5  ;;  %v3994_v15 = vrot.slane %v3992_v59, 4  ;;  %v6322_v25 = vrot.slane %v5408_v22, 9  ;;  %v5410_v26 = vld [vmem:[#allocation2 + $0x60] sm:$0xe] }
 0x15e   : > { %v3962_v43 = vrot.slane %v3961_v6, 4  ;;  %v3985_v24 = vor.u32 %v3984_v61, %v3981_v19  ;;  %v4000_v47 = vrot.slane %v3998_v38, 5  ;;  %v5466_v21 = vrot.slane %v8286_v62, 5 }
 0x15f   : > { %6778 = vmatmul.mubr.msk.bf16.gmra.mrb[20].mxu1 %vm726_vm5, %v6330_v36  ;;  %v3972_v45 = vrot.slane %v3971_v56, 4  ;;  %v3995_v30 = vor.u32 %v3994_v15, %v3990_v0  ;;  %v5469_v46 = vrot.slane %v8292_v63, 5  ;;  %v6323_v60 = vrot.slane %v5409_v7, 9 }
 0x160   : > { %v3967_v5 = vsel %vm7412_vm9, %v3962_v43, %v3966_v35  ;;  %v3986_v40 = vrot.slane %v3985_v24, 4  ;;  %v5467_v8 = vsel %vm7368_vm8, %v6322_v25, %v5466_v21  ;;  %v5468_v14 = vrot.slane %v5466_v21, 4 }
 0x161   : > { %v3977_v34 = vsel %vm7412_vm9, %v3972_v45, %v3976_v42  ;;  %v3996_v62 = vrot.slane %v3995_v30, 4  ;;  %v5473_v55 = vrot.slane %v8298_v18, 5  ;;  %v5476_v16 = vrot.slane %v8308_v37, 5 }
 0x162   : > { %v6242_v63 = vcombine.low %v3967_v5, %v3977_v34  ;;  %v3991_v58 = vsel %vm7412_vm9, %v3986_v40, %v3990_v0  ;;  %v5470_v28 = vsel %vm7368_vm8, %v5468_v14, %v5469_v46  ;;  %v4003_v27 = vshrl.u32 %v3894_v49, 16  ;;  %v5411_v0 = vld [vmem:[#allocation2 + $0x6c] sm:$0xe]  ;;  %v3900_v40 = vld [vmem:[#allocation2 + $0x60] sm:$0xf] }
 0x163   : > { %v4001_v9 = vsel %vm7412_vm9, %v3996_v62, %v4000_v47  ;;  %v6331_v12 = vcombine.low %v5467_v8, %v5470_v28  ;;  %v5474_v18 = vsel %vm7368_vm8, %v6323_v60, %v5473_v55  ;;  %v5475_v53 = vrot.slane %v5473_v55, 4  ;;  %v3901_v62 = vld [vmem:[#allocation2 + $0x64] sm:$0xf]  ;;  %v3902_v55 = vld [vmem:[#allocation2 + $0x68] sm:$0x1] }
 0x164   : > { %6705 = vmatprep.mubr.msk.bf16.mxu0 %vm726_vm5, %v6242_v63  ;;  %v6243_v37 = vcombine.low %v3991_v58, %v4001_v9  ;;  %v4005_v11 = vrot.slane %v4003_v27, 4  ;;  %v4006_v33 = vshll.u32 %v3894_v49, 16  ;;  %v4012_v13 = vshll.u32 %v3895_v23, 16 }
 0x165   : > { %6781 = vmatprep.mubr.msk.bf16.mxu1 %vm726_vm5, %v6331_v12  ;;  %v5477_v44 = vsel %vm7368_vm8, %v5475_v53, %v5476_v16  ;;  %v4016_v10 = vshrl.u32 %v3895_v23, 16  ;;  %v4022_v36 = vshll.u32 %v3896_v48, 16  ;;  %v4027_v20 = vshrl.u32 %v3897_v54, 16 }
 0x166   : > { %6706 = vmatmul.mubr.msk.bf16.gmra.mrb[20].mxu0 %vm726_vm5, %v6243_v37  ;;  %v6332_v51 = vcombine.low %v5474_v18, %v5477_v44  ;;  %v4008_v2 = vrot.slane %v4006_v33, 5  ;;  %v4014_v1 = vrot.slane %v4012_v13, 5  ;;  %v4030_v35 = vshll.u32 %v3897_v54, 16  ;;  %v3903_v54 = vld [vmem:[#allocation2 + $0x6c] sm:$0xf] }
 0x167   : > { %v4018_v32 = vrot.slane %v4016_v10, 4  ;;  %v4024_v22 = vrot.slane %v4022_v36, 5  ;;  %v4029_v3 = vrot.slane %v4027_v20, 4  ;;  %v4036_v42 = vshll.u32 %v3898_v29, 16  ;;  %v3904_v18 = vld [vmem:[#allocation2 + $0x70] sm:$0xf] }
 0x168   : > { %6782 = vmatmul.mubr.msk.bf16.gmra.mrb[24].mxu1 %vm726_vm5, %v6332_v51  ;;  %v4009_v4 = vor.u32 %v4008_v2, %v4005_v11  ;;  %v4032_v59 = vrot.slane %v4030_v35, 5  ;;  %v4040_v6 = vshrl.u32 %v3898_v29, 16  ;;  %v4046_v19 = vshll.u32 %v3899_v50, 16  ;;  %v3905_v13 = vld [vmem:[#allocation2 + $0x74] sm:$0x1] }
 0x169   : > { %v4019_v61 = vor.u32 %v4018_v32, %v4014_v1  ;;  %v4038_v38 = vrot.slane %v4036_v42, 5  ;;  %v6324_v7 = vrot.slane %v5410_v26, 9  ;;  %v5480_v56 = vrot.slane %v8311_v31, 5 }
 0x16a   : > { %v4010_v15 = vrot.slane %v4009_v4, 4  ;;  %v4033_v25 = vor.u32 %v4032_v59, %v4029_v3  ;;  %v4042_v43 = vrot.slane %v4040_v6, 4  ;;  %v4048_v24 = vrot.slane %v4046_v19, 5 }
 0x16b   : > { %v4020_v47 = vrot.slane %v4019_v61, 4  ;;  %v5481_v21 = vsel %vm7368_vm8, %v6324_v7, %v5480_v56  ;;  %v5482_v45 = vrot.slane %v5480_v56, 4  ;;  %v5483_v30 = vrot.slane %v8318_v39, 5 }
 0x16c   : > { %v4015_v46 = vsel %vm7412_vm9, %v4010_v15, %v4014_v1  ;;  %v4034_v60 = vrot.slane %v4033_v25, 4  ;;  %v4043_v49 = vor.u32 %v4042_v43, %v4038_v38  ;;  %v6325_v5 = vrot.slane %v5411_v0, 9 }
 0x16d   : > { %v4025_v31 = vsel %vm7412_vm9, %v4020_v47, %v4024_v22  ;;  %v5484_v8 = vsel %vm7368_vm8, %v5482_v45, %v5483_v30  ;;  %v5487_v14 = vrot.slane %v8325_v17, 5  ;;  %v5490_v34 = vrot.slane %v8332_v52, 5 }
 0x16e   : > { %v6244_v39 = vcombine.low %v4015_v46, %v4025_v31  ;;  %v4039_v16 = vsel %vm7412_vm9, %v4034_v60, %v4038_v38  ;;  %v4044_v23 = vrot.slane %v4043_v49, 4  ;;  %v6333_v63 = vcombine.low %v5481_v21, %v5484_v8 }
 0x16f   : > { %v5488_v58 = vsel %vm7368_vm8, %v6325_v5, %v5487_v14  ;;  %v5489_v28 = vrot.slane %v5487_v14, 4  ;;  %v4051_v48 = vshrl.u32 %v3900_v40, 16  ;;  %v4054_v27 = vshll.u32 %v3900_v40, 16 }
 0x170   : > { %6709 = vmatprep.mubr.msk.bf16.mxu0 %vm726_vm5, %v6244_v39  ;;  %v4049_v17 = vsel %vm7412_vm9, %v4044_v23, %v4048_v24  ;;  %6785 = vmatprep.mubr.msk.bf16.mxu1 %vm726_vm5, %v6333_v63  ;;  %v4060_v52 = vshll.u32 %v3901_v62, 16  ;;  %v4064_v9 = vshrl.u32 %v3901_v62, 16  ;;  %v4070_v12 = vshll.u32 %v3902_v55, 16  ;;  %v8450_v24 = vld [vmem:[%s8900_s3] ss:$0 sm:$0xff] }
 0x171   : > { %v6245_v53 = vcombine.low %v4039_v16, %v4049_v17  ;;  %v5491_v37 = vsel %vm7368_vm8, %v5489_v28, %v5490_v34  ;;  %v4053_v11 = vrot.slane %v4051_v48, 4  ;;  %v4056_v33 = vrot.slane %v4054_v27, 5 }
 0x172   : > { %v6334_v29 = vcombine.low %v5488_v58, %v5491_v37  ;;  %v4062_v44 = vrot.slane %v4060_v52, 5  ;;  %v4066_v10 = vrot.slane %v4064_v9, 4  ;;  %v4075_v50 = vshrl.u32 %v3903_v54, 16 }
 0x173   : > { %6710 = vmatmul.mubr.msk.bf16.gmra.mrb[24].mxu0 %vm726_vm5, %v6245_v53  ;;  %v4057_v36 = vor.u32 %v4056_v33, %v4053_v11  ;;  %v4078_v20 = vshll.u32 %v3903_v54, 16  ;;  %v4084_v51 = vshll.u32 %v3904_v18, 16  ;;  %v4072_v1 = vrot.slane %v4070_v12, 5 }
 0x174   : > { %6786 = vmatmul.mubr.msk.bf16.gmra.mrb[28].mxu1 %vm726_vm5, %v6334_v29  ;;  %v4067_v2 = vor.u32 %v4066_v10, %v4062_v44  ;;  %v4088_v35 = vshrl.u32 %v3904_v18, 16  ;;  %v4094_v26 = vshll.u32 %v3905_v13, 16  ;;  %v4077_v32 = vrot.slane %v4075_v50, 4 }
 0x175   : > { %v4058_v57 = vrot.slane %v4057_v36, 4  ;;  %v4080_v22 = vrot.slane %v4078_v20, 5  ;;  %v4086_v3 = vrot.slane %v4084_v51, 5 }
 0x176   : > { %v4068_v42 = vrot.slane %v4067_v2, 4  ;;  %v4090_v4 = vrot.slane %v4088_v35, 4  ;;  %v4096_v38 = vrot.slane %v4094_v26, 5 }
 0x177   : > { %v4063_v59 = vsel %vm7412_vm9, %v4058_v57, %v4062_v44  ;;  %v4081_v6 = vor.u32 %v4080_v22, %v4077_v32 }
 0x178   : > { %v4073_v19 = vsel %vm7412_vm9, %v4068_v42, %v4072_v1  ;;  %v4091_v61 = vor.u32 %v4090_v4, %v4086_v3 }
 0x179   : > { %v6246_v7 = vcombine.low %v4063_v59, %v4073_v19  ;;  %v4082_v56 = vrot.slane %v4081_v6, 4 }
 0x17a   : > { %v4092_v0 = vrot.slane %v4091_v61, 4 }
 0x17b   : > { %6713 = vmatprep.mubr.msk.bf16.mxu0 %vm726_vm5, %v6246_v7  ;;  %v4087_v15 = vsel %vm7412_vm9, %v4082_v56, %v4086_v3 }
 0x17c   : > { %v4097_v25 = vsel %vm7412_vm9, %v4092_v0, %v4096_v38 }
 0x17d   : > { %v6247_v43 = vcombine.low %v4087_v15, %v4097_v25 }
 0x17f   : > { %6714 = vmatmul.mubr.msk.bf16.gmra.mrb[28].mxu0 %vm726_vm5, %v6247_v43 }
 0x183   : > { %v6631_v47 = vpop.f32.mrb[0].mxu1 }
 0x184   : > { %v2918_v21 = vpop.f32.mrb[1].mxu1  ;;  %v2999_v30 = vadd.f32 %v6631_v47, %v8450_v24 }
 0x185   : > { %v6632_v45 = vpop.f32.mrb[2].mxu1  ;;  %v2997_v41 = vadd.f32 %v8450_v24, %v2918_v21 }
 0x186   : > { %v3000_v46 = vadd.f32 %v6632_v45, %v8450_v24  ;;  %v2921_v60 = vpop.f32.mrb[3].mxu1  ;;  %v6559_v49 = vpop.f32.mrb[0].mxu0 }
 0x187   : > { %v2998_v5 = vadd.f32 %v8450_v24, %v2921_v60  ;;  %v1518_v40 = vpop.f32.mrb[1].mxu0  ;;  %v1605_v34 = vadd.f32 %v6559_v49, %v8450_v24 }
 0x188   : > { %v3014_v31 = vpack.c.bf16 %v3000_v46, %v2999_v30  ;;  %v6560_v8 = vpop.f32.mrb[2].mxu0  ;;  %v1603_v39 = vadd.f32 %v8450_v24, %v1518_v40 }
 0x189   : > { %v3013_v14 = vpack.c.bf16 %v2998_v5, %v2997_v41  ;;  %v1606_v62 = vadd.f32 %v6560_v8, %v8450_v24  ;;  %v1521_v55 = vpop.f32.mrb[3].mxu0 }
 0x18a   : > { %v1604_v16 = vadd.f32 %v8450_v24, %v1521_v55  ;;  %v8464_v48 = vunpack.c.l.bf16 %v3014_v31  ;;  %v8466_v27 = vunpack.c.h.bf16 %v3014_v31 }
 0x18b   : > { %v8460_v23 = vunpack.c.h.bf16 %v3013_v14  ;;  %v1620_v63 = vpack.c.bf16 %v1606_v62, %v1605_v34  ;;  %v6635_v58 = vpop.f32.mrb[4].mxu1  ;;  %v8462_v28 = vunpack.c.l.bf16 %v3013_v14 }
 0x18c   : > { %v1619_v54 = vpack.c.bf16 %v1604_v16, %v1603_v39  ;;  %v2934_v17 = vpop.f32.mrb[5].mxu1  ;;  %v3003_v12 = vadd.f32 %v6635_v58, %v8450_v24 }
 0x18d   : > { %v8468_v52 = vunpack.c.l.bf16 %v1620_v63  ;;  %v8470_v9 = vunpack.c.h.bf16 %v1620_v63  ;;  %v6636_v18 = vpop.f32.mrb[6].mxu1  ;;  %v3072_v53 = vadd.f32 %v8460_v23, %v8462_v28  ;;  %v3001_v11 = vadd.f32 %v8450_v24, %v2934_v17 }
 0x18e   : > { %v8475_v37 = vunpack.c.h.bf16 %v1619_v54  ;;  %v3004_v33 = vadd.f32 %v6636_v18, %v8450_v24  ;;  %v2937_v13 = vpop.f32.mrb[7].mxu1  ;;  %v8479_v29 = vunpack.c.l.bf16 %v1619_v54 }
 0x18f   : > { %v3002_v44 = vadd.f32 %v8450_v24, %v2937_v13  ;;  %v3073_v10 = vadd.f32 %v3072_v53, %v8464_v48  ;;  %v7044_v36 = vpack.i.bf16 %v8464_v48, %v8468_v52  ;;  %v7046_v50 = vpack.i.bf16 %v8466_v27, %v8470_v9 }
 0x190   : > { %v3016_v20 = vpack.c.bf16 %v3004_v33, %v3003_v12  ;;  %v7040_v51 = vpack.i.bf16 %v8462_v28, %v8479_v29  ;;  %v1677_v26 = vadd.f32 %v8475_v37, %v8479_v29  ;;  %v7042_v42 = vpack.i.bf16 %v8460_v23, %v8475_v37 }
 0x191   : > { %v3015_v2 = vpack.c.bf16 %v3002_v44, %v3001_v11  ;;  %v3074_v1 = vadd.f32 %v3073_v10, %v8466_v27 }
 0x192   : > { %v6563_v35 = vpop.f32.mrb[4].mxu0  ;;  %7041 = vxpose.xlu0.b32.start [1/16] (narrow) %v7040_v51, 8  ;;  %v8501_v7 = vunpack.c.l.bf16 %v3016_v20  ;;  %v1678_v15 = vadd.f32 %v1677_v26, %v8468_v52  ;;  %v8509_v46 = vunpack.c.h.bf16 %v3016_v20 }
 0x193   : > { %v8492_v57 = vunpack.c.l.bf16 %v3015_v2  ;;  %v1534_v32 = vpop.f32.mrb[5].mxu0  ;;  %v8496_v4 = vunpack.c.h.bf16 %v3015_v2  ;;  %v1609_v59 = vadd.f32 %v6563_v35, %v8450_v24 }
 0x194   : > { %v6564_v22 = vpop.f32.mrb[6].mxu0  ;;  %v6639_v3 = vpop.f32.mrb[8].mxu1  ;;  %v1607_v56 = vadd.f32 %v8450_v24, %v1534_v32  ;;  %v1679_v62 = vadd.f32 %v1678_v15, %v8470_v9 }
 0x195   : > { %v1610_v6 = vadd.f32 %v6564_v22, %v8450_v24  ;;  %v1537_v19 = vpop.f32.mrb[7].mxu0  ;;  %v3075_v61 = vadd.f32 %v3074_v1, %v8492_v57  ;;  %v2950_v38 = vpop.f32.mrb[9].mxu1  ;;  %v3007_v47 = vadd.f32 %v6639_v3, %v8450_v24 }
 0x196   : > { %v1608_v0 = vadd.f32 %v8450_v24, %v1537_v19  ;;  %v6640_v25 = vpop.f32.mrb[10].mxu1  ;;  %7043 = vxpose.xlu0.b32.cont [2/16] (narrow) %v7042_v42, 8  ;;  %v3005_v49 = vadd.f32 %v8450_v24, %v2950_v38 }
 0x197   : > { %v1622_v43 = vpack.c.bf16 %v1610_v6, %v1609_v59  ;;  %v3008_v21 = vadd.f32 %v6640_v25, %v8450_v24  ;;  %v2953_v45 = vpop.f32.mrb[11].mxu1  ;;  %v3076_v30 = vadd.f32 %v3075_v61, %v8496_v4 }
 0x198   : > { %v1621_v60 = vpack.c.bf16 %v1608_v0, %v1607_v56  ;;  %v3006_v41 = vadd.f32 %v8450_v24, %v2953_v45 }
 0x199   : > { %v8513_v5 = vunpack.c.l.bf16 %v1622_v43  ;;  %v8515_v40 = vunpack.c.h.bf16 %v1622_v43  ;;  %v3018_v31 = vpack.c.bf16 %v3008_v21, %v3007_v47  ;;  %v3077_v8 = vadd.f32 %v3076_v30, %v8501_v7 }
 0x19a   : > { %v8518_v14 = vunpack.c.l.bf16 %v1621_v60  ;;  %v8520_v34 = vunpack.c.h.bf16 %v1621_v60  ;;  %v3017_v55 = vpack.c.bf16 %v3006_v41, %v3005_v49  ;;  %7045 = vxpose.xlu0.b32.cont [3/16] (narrow) %v7044_v36, 8 }
 0x19b   : > { %v3078_v39 = vadd.f32 %v3077_v8, %v8509_v46  ;;  %v7052_v16 = vpack.i.bf16 %v8501_v7, %v8513_v5  ;;  %v7054_v12 = vpack.i.bf16 %v8509_v46, %v8515_v40  ;;  %v8539_v44 = vunpack.c.l.bf16 %v3018_v31 }
 0x19c   : > { %v1680_v63 = vadd.f32 %v1679_v62, %v8518_v14  ;;  %v8527_v58 = vunpack.c.l.bf16 %v3017_v55  ;;  %v7048_v54 = vpack.i.bf16 %v8492_v57, %v8518_v14  ;;  %v7050_v17 = vpack.i.bf16 %v8496_v4, %v8520_v34 }
 0x19d   : > { %v8535_v18 = vunpack.c.h.bf16 %v3017_v55  ;;  %v8543_v2 = vunpack.c.h.bf16 %v3018_v31 }
 0x19e   : > { %v3079_v53 = vadd.f32 %v3078_v39, %v8527_v58  ;;  %v1681_v11 = vadd.f32 %v1680_v63, %v8520_v34  ;;  %7047 = vxpose.xlu0.b32.cont [4/16] (narrow) %v7046_v50, 8 }
 0x19f   : > { %v6567_v33 = vpop.f32.mrb[8].mxu0  ;;  %v6643_v13 = vpop.f32.mrb[12].mxu1 }
 0x1a0   : > { %v3080_v10 = vadd.f32 %v3079_v53, %v8535_v18  ;;  %v1550_v36 = vpop.f32.mrb[9].mxu0  ;;  %v1682_v20 = vadd.f32 %v1681_v11, %v8513_v5  ;;  %v2966_v51 = vpop.f32.mrb[13].mxu1  ;;  %v1613_v1 = vadd.f32 %v6567_v33, %v8450_v24  ;;  %v3011_v26 = vadd.f32 %v6643_v13, %v8450_v24 }
 0x1a1   : > { %v6568_v35 = vpop.f32.mrb[10].mxu0  ;;  %v6644_v32 = vpop.f32.mrb[14].mxu1  ;;  %v1611_v19 = vadd.f32 %v8450_v24, %v1550_v36  ;;  %v3009_v38 = vadd.f32 %v8450_v24, %v2966_v51 }
 0x1a2   : > { %v3081_v50 = vadd.f32 %v3080_v10, %v8539_v44  ;;  %v1614_v22 = vadd.f32 %v6568_v35, %v8450_v24  ;;  %v1553_v3 = vpop.f32.mrb[11].mxu0  ;;  %v1683_v42 = vadd.f32 %v1682_v20, %v8515_v40  ;;  %v3012_v59 = vadd.f32 %v6644_v32, %v8450_v24  ;;  %v2969_v6 = vpop.f32.mrb[15].mxu1  ;;  %7049 = vxpose.xlu0.b32.cont [5/16] (narrow) %v7048_v54, 8 }
 0x1a3   : > { %v1612_v61 = vadd.f32 %v8450_v24, %v1553_v3  ;;  %v3010_v56 = vadd.f32 %v8450_v24, %v2969_v6 }
 0x1a4   : > { %v1624_v0 = vpack.c.bf16 %v1614_v22, %v1613_v1  ;;  %v3020_v15 = vpack.c.bf16 %v3012_v59, %v3011_v26  ;;  %v3082_v25 = vadd.f32 %v3081_v50, %v8543_v2 }
 0x1a5   : > { %v1623_v43 = vpack.c.bf16 %v1612_v61, %v1611_v19  ;;  %v3019_v47 = vpack.c.bf16 %v3010_v56, %v3009_v38 }
 0x1a6   : > { %v8556_v21 = vunpack.c.l.bf16 %v1624_v0  ;;  %v8558_v45 = vunpack.c.h.bf16 %v1624_v0  ;;  %7051 = vxpose.xlu0.b32.cont [6/16] (narrow) %v7050_v17, 8  ;;  %v8579_v53 = vunpack.c.l.bf16 %v3020_v15  ;;  %v8582_v13 = vunpack.c.h.bf16 %v3020_v15 }
 0x1a7   : > { %v8560_v30 = vunpack.c.l.bf16 %v1623_v43  ;;  %v8562_v60 = vunpack.c.h.bf16 %v1623_v43  ;;  %v8564_v49 = vunpack.c.l.bf16 %v3019_v47  ;;  %v8566_v41 = vunpack.c.h.bf16 %v3019_v47 }
 0x1a8   : > { %v7060_v31 = vpack.i.bf16 %v8539_v44, %v8556_v21  ;;  %v7062_v8 = vpack.i.bf16 %v8543_v2, %v8558_v45 }
 0x1a9   : > { %v1684_v62 = vadd.f32 %v1683_v42, %v8560_v30  ;;  %v3083_v55 = vadd.f32 %v3082_v25, %v8564_v49  ;;  %v7056_v39 = vpack.i.bf16 %v8527_v58, %v8560_v30  ;;  %v7058_v63 = vpack.i.bf16 %v8535_v18, %v8562_v60 }
 0x1aa   : > { %v6571_v54 = vpop.f32.mrb[12].mxu0  ;;  %7053 = vxpose.xlu0.b32.cont [7/16] (narrow) %v7052_v16, 8 }
 0x1ab   : > { %v1685_v17 = vadd.f32 %v1684_v62, %v8562_v60  ;;  %v3084_v11 = vadd.f32 %v3083_v55, %v8566_v41  ;;  %v1566_v33 = vpop.f32.mrb[13].mxu0  ;;  %v1617_v51 = vadd.f32 %v6571_v54, %v8450_v24 }
 0x1ac   : > { %v6572_v10 = vpop.f32.mrb[14].mxu0  ;;  %v1615_v35 = vadd.f32 %v8450_v24, %v1566_v33 }
 0x1ad   : > { %v1686_v36 = vadd.f32 %v1685_v17, %v8556_v21  ;;  %v3085_v20 = vadd.f32 %v3084_v11, %v8579_v53  ;;  %v1618_v1 = vadd.f32 %v6572_v10, %v8450_v24  ;;  %v1569_v16 = vpop.f32.mrb[15].mxu0 }
 0x1ae   : > { %v1616_v26 = vadd.f32 %v8450_v24, %v1569_v16  ;;  %7055 = vxpose.xlu0.b32.cont [8/16] (narrow) %v7054_v12, 8 }
 0x1af   : > { %v3086_v32 = vadd.f32 %v3085_v20, %v8582_v13  ;;  %v1626_v50 = vpack.c.bf16 %v1618_v1, %v1617_v51  ;;  %v1687_v22 = vadd.f32 %v1686_v36, %v8558_v45 }
 0x1b0   : > { %v1625_v3 = vpack.c.bf16 %v1616_v26, %v1615_v35 }
 0x1b1   : > { %v3087_v42 = vrot.slane %v3086_v32, 4  ;;  %v8593_v59 = vunpack.c.l.bf16 %v1626_v50  ;;  %v8595_v6 = vunpack.c.h.bf16 %v1626_v50 }
 0x1b2   : > { %v8597_v19 = vunpack.c.l.bf16 %v1625_v3  ;;  %v8599_v61 = vunpack.c.h.bf16 %v1625_v3  ;;  %7057 = vxpose.xlu0.b32.cont [9/16] (narrow) %v7056_v39, 8 }
 0x1b3   : > { %v3088_v38 = vadd.f32 %v3087_v42, %v3086_v32  ;;  %v7068_v12 = vpack.i.bf16 %v8579_v53, %v8593_v59  ;;  %v7070_v56 = vpack.i.bf16 %v8582_v13, %v8595_v6 }
 0x1b4   : > { %v1688_v0 = vadd.f32 %v1687_v22, %v8597_v19  ;;  %v7064_v15 = vpack.i.bf16 %v8564_v49, %v8597_v19  ;;  %v7066_v25 = vpack.i.bf16 %v8566_v41, %v8599_v61 }
 0x1b5   : > { %v3089_v43 = vrot.slane %v3088_v38, 2 }
 0x1b6   : > { %v1689_v47 = vadd.f32 %v1688_v0, %v8599_v61  ;;  %7059 = vxpose.xlu0.b32.cont [10/16] (narrow) %v7058_v63, 8 }
 0x1b7   : > { %v3090_v62 = vadd.f32 %v3089_v43, %v3088_v38 }
 0x1b8   : > { %v1690_v55 = vadd.f32 %v1689_v47, %v8593_v59 }
 0x1b9   : > { %v3091_v39 = vrot.slane %v3090_v62, 1 }
 0x1ba   : > { %v1691_v54 = vadd.f32 %v1690_v55, %v8595_v6  ;;  %7061 = vxpose.xlu0.b32.cont [11/16] (narrow) %v7060_v31, 8 }
 0x1bb   : > { %v3092_v17 = vadd.f32 %v3091_v39, %v3090_v62 }
 0x1bc   : > { %v1692_v63 = vrot.slane %v1691_v54, 4 }
 0x1bd   : > { %v3093_v11 = vmul.f32 0.0078125, %v3092_v17  ;;  %6186 = vst [vmem:[%s8620_s30 + $0x1] sm:$0x1] %v3092_v17 }
 0x1be   : > { %7063 = vxpose.xlu0.b32.cont [12/16] (narrow) %v7062_v8, 8 }
 0x1bf   : > { %v3094_v33 = vsub.f32 %v8462_v28, %v3093_v11  ;;  %v3095_v10 = vsub.f32 %v8460_v23, %v3093_v11  ;;  %v3096_v36 = vsub.f32 %v8464_v48, %v3093_v11  ;;  %v3097_v20 = vsub.f32 %v8466_v27, %v3093_v11 }
 0x1c0   : > { %v3098_v31 = vsub.f32 %v8492_v57, %v3093_v11  ;;  %v3099_v51 = vsub.f32 %v8496_v4, %v3093_v11  ;;  %v3100_v1 = vsub.f32 %v8501_v7, %v3093_v11  ;;  %v3101_v16 = vsub.f32 %v8509_v46, %v3093_v11 }
 0x1c1   : > { %v3102_v35 = vsub.f32 %v8527_v58, %v3093_v11  ;;  %v3103_v8 = vsub.f32 %v8535_v18, %v3093_v11  ;;  %v3104_v28 = vsub.f32 %v8539_v44, %v3093_v11  ;;  %v3105_v23 = vsub.f32 %v8543_v2, %v3093_v11 }
 0x1c2   : > { %v3106_v48 = vsub.f32 %v8564_v49, %v3093_v11  ;;  %v3107_v27 = vsub.f32 %v8566_v41, %v3093_v11  ;;  %v8638_v57 = vsub.f32 %v8579_v53, %v3093_v11  ;;  %v8641_v4 = vsub.f32 %v8582_v13, %v3093_v11  ;;  %7065 = vxpose.xlu0.b32.cont [13/16] (narrow) %v7064_v15, 8 }
 0x1c3   : > { %v3112_v7 = vmul.f32 %v3094_v33, %v3094_v33  ;;  %v3113_v46 = vmul.f32 %v3095_v10, %v3095_v10  ;;  %v1693_v58 = vadd.f32 %v1692_v63, %v1691_v54  ;;  %v3114_v18 = vmul.f32 %v3096_v36, %v3096_v36 }
 0x1c4   : > { %v3115_v2 = vmul.f32 %v3097_v20, %v3097_v20  ;;  %v3116_v41 = vmul.f32 %v3098_v31, %v3098_v31  ;;  %v3117_v22 = vmul.f32 %v3099_v51, %v3099_v51  ;;  %v3118_v42 = vmul.f32 %v3100_v1, %v3100_v1 }
 0x1c5   : > { %v3128_v26 = vadd.f32 %v3113_v46, %v3112_v7  ;;  %v1694_v44 = vrot.slane %v1693_v58, 2  ;;  %v3119_v15 = vmul.f32 %v3101_v16, %v3101_v16  ;;  %v3122_v20 = vmul.f32 %v3104_v28, %v3104_v28 }
 0x1c6   : > { %7067 = vxpose.xlu0.b32.cont [14/16] (narrow) %v7066_v25, 8  ;;  %v3120_v25 = vmul.f32 %v3102_v35, %v3102_v35  ;;  %v3123_v31 = vmul.f32 %v3105_v23, %v3105_v23  ;;  %v3124_v1 = vmul.f32 %v3106_v48, %v3106_v48  ;;  %v3125_v35 = vmul.f32 %v3107_v27, %v3107_v27 }
 0x1c7   : > { %v3129_v32 = vadd.f32 %v3128_v26, %v3114_v18  ;;  %v1695_v49 = vadd.f32 %v1694_v44, %v1693_v58  ;;  %v3127_v28 = vmul.f32 %v8641_v4, %v8641_v4 }
 0x1c9   : > { %v3130_v50 = vadd.f32 %v3129_v32, %v3115_v2  ;;  %v1696_v53 = vrot.slane %v1695_v49, 1 }
 0x1ca   : > { %7069 = vxpose.xlu0.b32.cont [15/16] (narrow) %v7068_v12, 8 }
 0x1cb   : > { %v3131_v3 = vadd.f32 %v3130_v50, %v3116_v41  ;;  %v1697_v13 = vadd.f32 %v1696_v53, %v1695_v49 }
 0x1cd   : > { %v3132_v38 = vadd.f32 %v3131_v3, %v3117_v22  ;;  %v1698_v0 = vmul.f32 0.0078125, %v1697_v13  ;;  %1715 = vst [vmem:[%s8620_s30] sm:$0x1] %v1697_v13 }
 0x1ce   : > { %7071 = vxpose.xlu0.b32.end [16/16] (narrow) %v7070_v56, 8 }
 0x1cf   : > { %v3133_v43 = vadd.f32 %v3132_v38, %v3118_v42  ;;  %v1699_v47 = vsub.f32 %v8479_v29, %v1698_v0  ;;  %v1700_v62 = vsub.f32 %v8475_v37, %v1698_v0  ;;  %v1701_v12 = vsub.f32 %v8468_v52, %v1698_v0 }
 0x1d0   : > { %v1702_v55 = vsub.f32 %v8470_v9, %v1698_v0  ;;  %v1703_v39 = vsub.f32 %v8518_v14, %v1698_v0  ;;  %v1704_v54 = vsub.f32 %v8520_v34, %v1698_v0  ;;  %v1705_v56 = vsub.f32 %v8513_v5, %v1698_v0 }
 0x1d1   : > { %v3134_v17 = vadd.f32 %v3133_v43, %v3119_v15  ;;  %v1706_v11 = vsub.f32 %v8515_v40, %v1698_v0  ;;  %v1707_v63 = vsub.f32 %v8560_v30, %v1698_v0  ;;  %v1708_v33 = vsub.f32 %v8562_v60, %v1698_v0 }
 0x1d2   : > { %v1709_v29 = vsub.f32 %v8556_v21, %v1698_v0  ;;  %v1710_v37 = vsub.f32 %v8558_v45, %v1698_v0  ;;  %v1711_v52 = vsub.f32 %v8597_v19, %v1698_v0  ;;  %v1712_v9 = vsub.f32 %v8599_v61, %v1698_v0 }
 0x1d3   : > { %v3121_v14 = vmul.f32 %v3103_v8, %v3103_v8  ;;  %v3135_v10 = vadd.f32 %v3134_v17, %v3120_v25  ;;  %v1713_v34 = vsub.f32 %v8593_v59, %v1698_v0  ;;  %v1714_v5 = vsub.f32 %v8595_v6, %v1698_v0 }
 0x1d4   : > { %v1716_v36 = vmul.f32 %v1699_v47, %v1699_v47  ;;  %v1717_v40 = vmul.f32 %v1700_v62, %v1700_v62  ;;  %v1718_v51 = vmul.f32 %v1701_v12, %v1701_v12  ;;  %v1719_v16 = vmul.f32 %v1702_v55, %v1702_v55 }
 0x1d5   : > { %v3136_v30 = vadd.f32 %v3135_v10, %v3121_v14  ;;  %v1720_v8 = vmul.f32 %v1703_v39, %v1703_v39  ;;  %v3126_v59 = vmul.f32 %v8638_v57, %v8638_v57  ;;  %v1721_v46 = vmul.f32 %v1704_v54, %v1704_v54 }
 0x1d6   : > { %v1732_v21 = vadd.f32 %v1717_v40, %v1716_v36  ;;  %v1722_v18 = vmul.f32 %v1705_v56, %v1705_v56  ;;  %v1723_v44 = vmul.f32 %v1706_v11, %v1706_v11  ;;  %v1724_v32 = vmul.f32 %v1707_v63, %v1707_v63 }
 0x1d7   : > { %v3137_v60 = vadd.f32 %v3136_v30, %v3122_v20  ;;  %v1725_v50 = vmul.f32 %v1708_v33, %v1708_v33  ;;  %v1726_v22 = vmul.f32 %v1709_v29, %v1709_v29  ;;  %v1727_v42 = vmul.f32 %v1710_v37, %v1710_v37 }
 0x1d8   : > { %v1733_v19 = vadd.f32 %v1732_v21, %v1718_v51  ;;  %v1728_v0 = vmul.f32 %v1711_v52, %v1711_v52  ;;  %v1729_v43 = vmul.f32 %v1712_v9, %v1712_v9  ;;  %v1730_v62 = vmul.f32 %v1713_v34, %v1713_v34 }
 0x1d9   : > { %v3138_v45 = vadd.f32 %v3137_v60, %v3123_v31  ;;  %v1731_v55 = vmul.f32 %v1714_v5, %v1714_v5 }
 0x1da   : > { %v1734_v7 = vadd.f32 %v1733_v19, %v1719_v16 }
 0x1db   : > { %v3139_v61 = vadd.f32 %v3138_v45, %v3124_v1 }
 0x1dc   : > { %v1735_v58 = vadd.f32 %v1734_v7, %v1720_v8 }
 0x1dd   : > { %v3140_v6 = vadd.f32 %v3139_v61, %v3125_v35 }
 0x1de   : > { %v1736_v26 = vadd.f32 %v1735_v58, %v1721_v46 }
 0x1df   : > { %v3141_v23 = vadd.f32 %v3140_v6, %v3126_v59 }
 0x1e0   : > { %v1737_v2 = vadd.f32 %v1736_v26, %v1722_v18 }
 0x1e1   : > { %v3142_v48 = vadd.f32 %v3141_v23, %v3127_v28 }
 0x1e2   : > { %v1738_v49 = vadd.f32 %v1737_v2, %v1723_v44 }
 0x1e3   : > { %v3143_v27 = vrot.slane %v3142_v48, 4 }
 0x1e4   : > { %v1739_v53 = vadd.f32 %v1738_v49, %v1724_v32 }
 0x1e5   : > { %v3144_v41 = vadd.f32 %v3143_v27, %v3142_v48 }
 0x1e6   : > { %v1740_v3 = vadd.f32 %v1739_v53, %v1725_v50 }
 0x1e7   : > { %v3145_v57 = vrot.slane %v3144_v41, 2 }
 0x1e8   : > { %v1741_v38 = vadd.f32 %v1740_v3, %v1726_v22 }
 0x1e9   : > { %v3146_v13 = vadd.f32 %v3145_v57, %v3144_v41 }
 0x1ea   : > { %v1742_v15 = vadd.f32 %v1741_v38, %v1727_v42 }
 0x1eb   : > { %v3147_v4 = vrot.slane %v3146_v13, 1 }
 0x1ec   : > { %v1743_v47 = vadd.f32 %v1742_v15, %v1728_v0 }
 0x1ed   : > { %v3148_v25 = vadd.f32 %v3147_v4, %v3146_v13 }
 0x1ee   : > { %v1744_v12 = vadd.f32 %v1743_v47, %v1729_v43 }
 0x1ef   : > { %6187 = vst [vmem:[%s8668_s8 + $0x1] sm:$0x1] %v3148_v25 }
 0x1f0   : > { %v1745_v39 = vadd.f32 %v1744_v12, %v1730_v62 }
 0x1f2   : > { %v1746_v54 = vadd.f32 %v1745_v39, %v1731_v55 }
 0x1f4   : > { %v1747_v56 = vrot.slane %v1746_v54, 4 }
 0x1f6   : > { %v1748_v17 = vadd.f32 %v1747_v56, %v1746_v54 }
 0x1f8   : > { %v1749_v11 = vrot.slane %v1748_v17, 2 }
 0x1fa   : > { %v1750_v63 = vadd.f32 %v1749_v11, %v1748_v17 }
 0x1fc   : > { %v1751_v33 = vrot.slane %v1750_v63, 1 }
 0x1fe   : > { %v1752_v29 = vadd.f32 %v1751_v33, %v1750_v63 }
 0x200   : > { %1753 = vst [vmem:[%s8668_s8] sm:$0x1] %v1752_v29 }
 0x22a   : > { %v6775_v37 = vpop.f32.mrb[16].mxu1 }
 0x22b   : > { %v5579_v52 = vpop.f32.mrb[17].mxu1  ;;  %v5660_v10 = vadd.f32 %v6775_v37, %v8450_v24 }
 0x22c   : > { %v6776_v14 = vpop.f32.mrb[18].mxu1  ;;  %v5658_v5 = vadd.f32 %v8450_v24, %v5579_v52 }
 0x22d   : > { %v5661_v9 = vadd.f32 %v6776_v14, %v8450_v24  ;;  %v5582_v36 = vpop.f32.mrb[19].mxu1  ;;  %v6703_v34 = vpop.f32.mrb[16].mxu0 }
 0x22e   : > { %v5659_v40 = vadd.f32 %v8450_v24, %v5582_v36  ;;  %v4185_v20 = vpop.f32.mrb[17].mxu0  ;;  %v4266_v51 = vadd.f32 %v6703_v34, %v8450_v24 }
 0x22f   : > { %v5675_v30 = vpack.c.bf16 %v5661_v9, %v5660_v10  ;;  %v6704_v31 = vpop.f32.mrb[18].mxu0  ;;  %v4264_v45 = vadd.f32 %v8450_v24, %v4185_v20 }
 0x230   : > { %v5674_v60 = vpack.c.bf16 %v5659_v40, %v5658_v5  ;;  %v4267_v21 = vadd.f32 %v6704_v31, %v8450_v24  ;;  %v4188_v1 = vpop.f32.mrb[19].mxu0  ;;  %v7072_v5 = vpop.trf.xlu0 }
 0x231   : > { %v4265_v16 = vadd.f32 %v8450_v24, %v4188_v1  ;;  %v8684_v6 = vunpack.c.l.bf16 %v5675_v30  ;;  %v8686_v46 = vunpack.c.h.bf16 %v5675_v30  ;;  %v7076_v30 = vunpack.i.h.bf16 %v7072_v5 }
 0x232   : > { %v8680_v19 = vunpack.c.h.bf16 %v5674_v60  ;;  %v4281_v35 = vpack.c.bf16 %v4267_v21, %v4266_v51  ;;  %v6779_v61 = vpop.f32.mrb[20].mxu1  ;;  %v8682_v8 = vunpack.c.l.bf16 %v5674_v60 }
 0x233   : > { %v4280_v7 = vpack.c.bf16 %v4265_v16, %v4264_v45  ;;  %v5595_v59 = vpop.f32.mrb[21].mxu1  ;;  %v5664_v26 = vadd.f32 %v6779_v61, %v8450_v24 }
 0x234   : > { %v8688_v58 = vunpack.c.h.bf16 %v4281_v35  ;;  %v6780_v28 = vpop.f32.mrb[22].mxu1  ;;  %v5733_v23 = vadd.f32 %v8680_v19, %v8682_v8  ;;  %v5662_v27 = vadd.f32 %v8450_v24, %v5595_v59  ;;  %v8703_v50 = vunpack.c.l.bf16 %v4281_v35 }
 0x235   : > { %v8692_v18 = vunpack.c.h.bf16 %v4280_v7  ;;  %v5665_v48 = vadd.f32 %v6780_v28, %v8450_v24  ;;  %v5598_v44 = vpop.f32.mrb[23].mxu1  ;;  %v8696_v2 = vunpack.c.l.bf16 %v4280_v7  ;;  %v3069_v35 = vpack.c.bf16 %v7076_v30, %v7076_v30 }
 0x236   : > { %v5663_v32 = vadd.f32 %v8450_v24, %v5598_v44  ;;  %v5734_v49 = vadd.f32 %v5733_v23, %v8684_v6  ;;  %v7083_v41 = vpack.i.bf16 %v8686_v46, %v8688_v58  ;;  %v7081_v12 = vpack.i.bf16 %v8684_v6, %v8703_v50 }
 0x237   : > { %v5677_v53 = vpack.c.bf16 %v5665_v48, %v5664_v26  ;;  %v7077_v57 = vpack.i.bf16 %v8682_v8, %v8696_v2  ;;  %v4339_v22 = vadd.f32 %v8692_v18, %v8696_v2  ;;  %v7079_v62 = vpack.i.bf16 %v8680_v19, %v8692_v18  ;;  %6185 = vst [vmem:[%s8743_s13 + $0x4] sm:$0xf] %v3069_v35 }
 0x238   : > { %v5676_v3 = vpack.c.bf16 %v5663_v32, %v5662_v27  ;;  %v5735_v13 = vadd.f32 %v5734_v49, %v8686_v46  ;;  %v7073_v44 = vunpack.i.l.bf16 %v7072_v5 }
 0x239   : > { %v6707_v42 = vpop.f32.mrb[20].mxu0  ;;  %7078 = vxpose.xlu1.b32.start [1/16] (narrow) %v7077_v57, 8  ;;  %v4340_v38 = vadd.f32 %v4339_v22, %v8703_v50  ;;  %v8713_v15 = vunpack.c.l.bf16 %v5677_v53  ;;  %v8715_v25 = vunpack.c.h.bf16 %v5677_v53 }
 0x23a   : > { %v8711_v4 = vunpack.c.l.bf16 %v5676_v3  ;;  %v4201_v0 = vpop.f32.mrb[21].mxu0  ;;  %v8721_v55 = vunpack.c.h.bf16 %v5676_v3  ;;  %v4270_v39 = vadd.f32 %v6707_v42, %v8450_v24  ;;  %v1675_v57 = vpack.c.bf16 %v7073_v44, %v7073_v44 }
 0x23b   : > { %v6708_v43 = vpop.f32.mrb[22].mxu0  ;;  %v6783_v47 = vpop.f32.mrb[24].mxu1  ;;  %v4268_v63 = vadd.f32 %v8450_v24, %v4201_v0  ;;  %v4341_v37 = vadd.f32 %v4340_v38, %v8688_v58 }
 0x23c   : > { %v4271_v54 = vadd.f32 %v6708_v43, %v8450_v24  ;;  %v4204_v56 = vpop.f32.mrb[23].mxu0  ;;  %v5736_v17 = vadd.f32 %v5735_v13, %v8711_v4  ;;  %v5611_v11 = vpop.f32.mrb[25].mxu1  ;;  %v5668_v29 = vadd.f32 %v6783_v47, %v8450_v24  ;;  %1676 = vst [vmem:[%s8743_s13] sm:$0xf] %v1675_v57 }
 0x23d   : > { %v4269_v33 = vadd.f32 %v8450_v24, %v4204_v56  ;;  %v6784_v52 = vpop.f32.mrb[26].mxu1  ;;  %7080 = vxpose.xlu1.b32.cont [2/16] (narrow) %v7079_v62, 8  ;;  %v5666_v10 = vadd.f32 %v8450_v24, %v5611_v11 }
 0x23e   : > { %v4283_v14 = vpack.c.bf16 %v4271_v54, %v4270_v39  ;;  %v5669_v9 = vadd.f32 %v6784_v52, %v8450_v24  ;;  %v5614_v36 = vpop.f32.mrb[27].mxu1  ;;  %v5737_v34 = vadd.f32 %v5736_v17, %v8721_v55 }
 0x23f   : > { %v4282_v40 = vpack.c.bf16 %v4269_v33, %v4268_v63  ;;  %v5667_v20 = vadd.f32 %v8450_v24, %v5614_v36 }
 0x240   : > { %v8735_v31 = vunpack.c.l.bf16 %v4283_v14  ;;  %v8737_v60 = vunpack.c.h.bf16 %v4283_v14  ;;  %v5679_v51 = vpack.c.bf16 %v5669_v9, %v5668_v29  ;;  %v5738_v21 = vadd.f32 %v5737_v34, %v8713_v15 }
 0x241   : > { %v8745_v1 = vunpack.c.l.bf16 %v4282_v40  ;;  %v8747_v45 = vunpack.c.h.bf16 %v4282_v40  ;;  %v5678_v16 = vpack.c.bf16 %v5667_v20, %v5666_v10  ;;  %7082 = vxpose.xlu1.b32.cont [3/16] (narrow) %v7081_v12, 8 }
 0x242   : > { %v5739_v61 = vadd.f32 %v5738_v21, %v8715_v25  ;;  %v7089_v7 = vpack.i.bf16 %v8713_v15, %v8735_v31  ;;  %v7091_v48 = vpack.i.bf16 %v8715_v25, %v8737_v60  ;;  %v8766_v22 = vunpack.c.l.bf16 %v5679_v51 }
 0x243   : > { %v4342_v59 = vadd.f32 %v4341_v37, %v8745_v1  ;;  %v8753_v28 = vunpack.c.l.bf16 %v5678_v16  ;;  %v7085_v23 = vpack.i.bf16 %v8711_v4, %v8745_v1  ;;  %v7087_v26 = vpack.i.bf16 %v8721_v55, %v8747_v45 }
 0x244   : > { %v8762_v27 = vunpack.c.h.bf16 %v5678_v16  ;;  %v8770_v0 = vunpack.c.h.bf16 %v5679_v51 }
 0x245   : > { %v5740_v32 = vadd.f32 %v5739_v61, %v8753_v28  ;;  %v4343_v49 = vadd.f32 %v4342_v59, %v8747_v45  ;;  %7084 = vxpose.xlu1.b32.cont [4/16] (narrow) %v7083_v41, 8 }
 0x246   : > { %v6711_v53 = vpop.f32.mrb[24].mxu0 }
 0x247   : > { %v5741_v3 = vadd.f32 %v5740_v32, %v8762_v27  ;;  %v4217_v13 = vpop.f32.mrb[25].mxu0  ;;  %v4344_v42 = vadd.f32 %v4343_v49, %v8735_v31  ;;  %v6787_v38 = vpop.f32.mrb[28].mxu1  ;;  %v4274_v12 = vadd.f32 %v6711_v53, %v8450_v24 }
 0x248   : > { %v6712_v43 = vpop.f32.mrb[26].mxu0  ;;  %v5627_v47 = vpop.f32.mrb[29].mxu1  ;;  %v4272_v17 = vadd.f32 %v8450_v24, %v4217_v13  ;;  %v5672_v63 = vadd.f32 %v6787_v38, %v8450_v24 }
 0x249   : > { %v5742_v62 = vadd.f32 %v5741_v3, %v8766_v22  ;;  %v4275_v41 = vadd.f32 %v6712_v43, %v8450_v24  ;;  %v4220_v39 = vpop.f32.mrb[27].mxu0  ;;  %v4345_v54 = vadd.f32 %v4344_v42, %v8737_v60  ;;  %v6788_v56 = vpop.f32.mrb[30].mxu1  ;;  %7086 = vxpose.xlu1.b32.cont [5/16] (narrow) %v7085_v23, 8  ;;  %v5670_v52 = vadd.f32 %v8450_v24, %v5627_v47 }
 0x24a   : > { %v4273_v11 = vadd.f32 %v8450_v24, %v4220_v39  ;;  %v5673_v33 = vadd.f32 %v6788_v56, %v8450_v24  ;;  %v5630_v29 = vpop.f32.mrb[31].mxu1 }
 0x24b   : > { %v4285_v37 = vpack.c.bf16 %v4275_v41, %v4274_v12  ;;  %v5671_v14 = vadd.f32 %v8450_v24, %v5630_v29  ;;  %v5743_v10 = vadd.f32 %v5742_v62, %v8770_v0 }
 0x24c   : > { %v4284_v9 = vpack.c.bf16 %v4273_v11, %v4272_v17  ;;  %v5681_v36 = vpack.c.bf16 %v5673_v33, %v5672_v63 }
 0x24d   : > { %v8784_v34 = vunpack.c.l.bf16 %v4285_v37  ;;  %v8786_v5 = vunpack.c.h.bf16 %v4285_v37  ;;  %v5680_v40 = vpack.c.bf16 %v5671_v14, %v5670_v52  ;;  %7088 = vxpose.xlu1.b32.cont [6/16] (narrow) %v7087_v26, 8 }
 0x24e   : > { %v8788_v20 = vunpack.c.l.bf16 %v4284_v9  ;;  %v8790_v30 = vunpack.c.h.bf16 %v4284_v9  ;;  %v8807_v49 = vunpack.c.l.bf16 %v5681_v36  ;;  %v8811_v42 = vunpack.c.h.bf16 %v5681_v36 }
 0x24f   : > { %v8792_v51 = vunpack.c.l.bf16 %v5680_v40  ;;  %v7097_v21 = vpack.i.bf16 %v8766_v22, %v8784_v34  ;;  %v7099_v16 = vpack.i.bf16 %v8770_v0, %v8786_v5  ;;  %v8803_v23 = vunpack.c.h.bf16 %v5680_v40 }
 0x250   : > { %v4346_v35 = vadd.f32 %v4345_v54, %v8788_v20  ;;  %v7093_v61 = vpack.i.bf16 %v8753_v28, %v8788_v20  ;;  %v7095_v59 = vpack.i.bf16 %v8762_v27, %v8790_v30 }
 0x251   : > { %v5744_v26 = vadd.f32 %v5743_v10, %v8792_v51  ;;  %7090 = vxpose.xlu1.b32.cont [7/16] (narrow) %v7089_v7, 8 }
 0x252   : > { %v4347_v44 = vadd.f32 %v4346_v35, %v8790_v30  ;;  %v6715_v32 = vpop.f32.mrb[28].mxu0 }
 0x253   : > { %v5745_v53 = vadd.f32 %v5744_v26, %v8803_v23  ;;  %v4233_v57 = vpop.f32.mrb[29].mxu0  ;;  %v4278_v43 = vadd.f32 %v6715_v32, %v8450_v24 }
 0x254   : > { %v4348_v3 = vadd.f32 %v4347_v44, %v8784_v34  ;;  %v6716_v13 = vpop.f32.mrb[30].mxu0  ;;  %v4276_v62 = vadd.f32 %v8450_v24, %v4233_v57 }
 0x255   : > { %v5746_v38 = vadd.f32 %v5745_v53, %v8807_v49  ;;  %v4279_v47 = vadd.f32 %v6716_v13, %v8450_v24  ;;  %v4236_v7 = vpop.f32.mrb[31].mxu0  ;;  %7092 = vxpose.xlu1.b32.cont [8/16] (narrow) %v7091_v48, 8 }
 0x256   : > { %v4277_v12 = vadd.f32 %v8450_v24, %v4236_v7  ;;  %v4349_v41 = vadd.f32 %v4348_v3, %v8786_v5 }
 0x257   : > { %v5747_v39 = vadd.f32 %v5746_v38, %v8811_v42  ;;  %v4287_v54 = vpack.c.bf16 %v4279_v47, %v4278_v43 }
 0x258   : > { %v4286_v56 = vpack.c.bf16 %v4277_v12, %v4276_v62 }
 0x259   : > { %v5748_v17 = vrot.slane %v5747_v39, 4  ;;  %v8820_v11 = vunpack.c.l.bf16 %v4287_v54  ;;  %v8822_v63 = vunpack.c.h.bf16 %v4287_v54  ;;  %7094 = vxpose.xlu1.b32.cont [9/16] (narrow) %v7093_v61, 8 }
 0x25a   : > { %v8824_v33 = vunpack.c.l.bf16 %v4286_v56  ;;  %v8826_v29 = vunpack.c.h.bf16 %v4286_v56 }
 0x25b   : > { %v5749_v48 = vadd.f32 %v5748_v17, %v5747_v39  ;;  %v7105_v24 = vpack.i.bf16 %v8807_v49, %v8820_v11  ;;  %v7107_v37 = vpack.i.bf16 %v8811_v42, %v8822_v63 }
 0x25c   : > { %v4350_v52 = vadd.f32 %v4349_v41, %v8824_v33  ;;  %v7101_v14 = vpack.i.bf16 %v8792_v51, %v8824_v33  ;;  %v7103_v10 = vpack.i.bf16 %v8803_v23, %v8826_v29 }
 0x25d   : > { %v5750_v9 = vrot.slane %v5749_v48, 2  ;;  %7096 = vxpose.xlu1.b32.cont [10/16] (narrow) %v7095_v59, 8 }
 0x25e   : > { %v4351_v36 = vadd.f32 %v4350_v52, %v8826_v29 }
 0x25f   : > { %v5751_v40 = vadd.f32 %v5750_v9, %v5749_v48 }
 0x260   : > { %v4352_v35 = vadd.f32 %v4351_v36, %v8820_v11 }
 0x261   : > { %v5752_v61 = vrot.slane %v5751_v40, 1  ;;  %7098 = vxpose.xlu1.b32.cont [11/16] (narrow) %v7097_v21, 8 }
 0x262   : > { %v4353_v26 = vadd.f32 %v4352_v35, %v8822_v63 }
 0x263   : > { %v5753_v44 = vadd.f32 %v5752_v61, %v5751_v40 }
 0x264   : > { %v4354_v53 = vrot.slane %v4353_v26, 4 }
 0x265   : > { %v5754_v32 = vmul.f32 0.0078125, %v5753_v44  ;;  %7100 = vxpose.xlu1.b32.cont [12/16] (narrow) %v7099_v16, 8  ;;  %6344 = vst [vmem:[%s8620_s30 + $0x3] sm:$0x1] %v5753_v44 }
 0x266   : > { %v4355_v62 = vadd.f32 %v4354_v53, %v4353_v26 }
 0x267   : > { %v5755_v57 = vsub.f32 %v8682_v8, %v5754_v32  ;;  %v5756_v3 = vsub.f32 %v8680_v19, %v5754_v32  ;;  %v5757_v59 = vsub.f32 %v8684_v6, %v5754_v32  ;;  %v5758_v13 = vsub.f32 %v8686_v46, %v5754_v32 }
 0x268   : > { %v5759_v38 = vsub.f32 %v8711_v4, %v5754_v32  ;;  %v5760_v43 = vsub.f32 %v8721_v55, %v5754_v32  ;;  %v5761_v21 = vsub.f32 %v8713_v15, %v5754_v32  ;;  %v5762_v47 = vsub.f32 %v8715_v25, %v5754_v32 }
 0x269   : > { %v5763_v16 = vsub.f32 %v8753_v28, %v5754_v32  ;;  %v5764_v7 = vsub.f32 %v8762_v27, %v5754_v32  ;;  %v5765_v8 = vsub.f32 %v8766_v22, %v5754_v32  ;;  %v5766_v19 = vsub.f32 %v8770_v0, %v5754_v32  ;;  %7102 = vxpose.xlu1.b32.cont [13/16] (narrow) %v7101_v14, 8 }
 0x26a   : > { %v5767_v6 = vsub.f32 %v8792_v51, %v5754_v32  ;;  %v5768_v46 = vsub.f32 %v8803_v23, %v5754_v32  ;;  %v5769_v4 = vsub.f32 %v8807_v49, %v5754_v32  ;;  %v8857_v55 = vsub.f32 %v8811_v42, %v5754_v32 }
 0x26b   : > { %v5773_v15 = vmul.f32 %v5755_v57, %v5755_v57  ;;  %v5774_v25 = vmul.f32 %v5756_v3, %v5756_v3  ;;  %v5775_v28 = vmul.f32 %v5757_v59, %v5757_v59  ;;  %v4356_v22 = vrot.slane %v4355_v62, 2 }
 0x26c   : > { %v5776_v12 = vmul.f32 %v5758_v13, %v5758_v13  ;;  %v5777_v51 = vmul.f32 %v5759_v38, %v5759_v38  ;;  %v5778_v54 = vmul.f32 %v5760_v43, %v5760_v43  ;;  %v5779_v42 = vmul.f32 %v5761_v21, %v5761_v21 }
 0x26d   : > { %7104 = vxpose.xlu1.b32.cont [14/16] (narrow) %v7103_v10, 8  ;;  %v5789_v27 = vadd.f32 %v5774_v25, %v5773_v15  ;;  %v4357_v41 = vadd.f32 %v4356_v22, %v4355_v62  ;;  %v5780_v52 = vmul.f32 %v5762_v47, %v5762_v47  ;;  %v5781_v14 = vmul.f32 %v5763_v16, %v5763_v16 }
 0x26e   : > { %v5783_v59 = vmul.f32 %v5765_v8, %v5765_v8  ;;  %v5784_v13 = vmul.f32 %v5766_v19, %v5766_v19  ;;  %v5785_v43 = vmul.f32 %v5767_v6, %v5767_v6  ;;  %v5786_v47 = vmul.f32 %v5768_v46, %v5768_v46 }
 0x26f   : > { %v5790_v0 = vadd.f32 %v5789_v27, %v5775_v28  ;;  %v4358_v23 = vrot.slane %v4357_v41, 1  ;;  %v5787_v15 = vmul.f32 %v5769_v4, %v5769_v4  ;;  %v5788_v8 = vmul.f32 %v8857_v55, %v8857_v55 }
 0x271   : > { %7106 = vxpose.xlu1.b32.cont [15/16] (narrow) %v7105_v24, 8  ;;  %v5791_v39 = vadd.f32 %v5790_v0, %v5776_v12  ;;  %v4359_v56 = vadd.f32 %v4358_v23, %v4357_v41 }
 0x273   : > { %v5792_v49 = vadd.f32 %v5791_v39, %v5777_v51  ;;  %v4360_v48 = vmul.f32 0.0078125, %v4359_v56  ;;  %6257 = vst [vmem:[%s8620_s30 + $0x2] sm:$0x1] %v4359_v56 }
 0x275   : > { %7108 = vxpose.xlu1.b32.end [16/16] (narrow) %v7107_v37, 8  ;;  %v5793_v17 = vadd.f32 %v5792_v49, %v5778_v54  ;;  %v4361_v9 = vsub.f32 %v8696_v2, %v4360_v48  ;;  %v4362_v36 = vsub.f32 %v8692_v18, %v4360_v48  ;;  %v4364_v24 = vsub.f32 %v8688_v58, %v4360_v48 }
 0x276   : > { %v4365_v40 = vsub.f32 %v8745_v1, %v4360_v48  ;;  %v4366_v35 = vsub.f32 %v8747_v45, %v4360_v48  ;;  %v4367_v61 = vsub.f32 %v8735_v31, %v4360_v48  ;;  %v4368_v26 = vsub.f32 %v8737_v60, %v4360_v48 }
 0x277   : > { %v5794_v10 = vadd.f32 %v5793_v17, %v5779_v42  ;;  %v4369_v44 = vsub.f32 %v8788_v20, %v4360_v48  ;;  %v4370_v32 = vsub.f32 %v8790_v30, %v4360_v48  ;;  %v4371_v53 = vsub.f32 %v8784_v34, %v4360_v48 }
 0x278   : > { %v4372_v2 = vsub.f32 %v8786_v5, %v4360_v48  ;;  %v4373_v18 = vsub.f32 %v8824_v33, %v4360_v48  ;;  %v4374_v58 = vsub.f32 %v8826_v29, %v4360_v48  ;;  %v5782_v1 = vmul.f32 %v5764_v7, %v5764_v7 }
 0x279   : > { %v5795_v37 = vadd.f32 %v5794_v10, %v5780_v52  ;;  %v4375_v45 = vsub.f32 %v8820_v11, %v4360_v48  ;;  %v4376_v31 = vsub.f32 %v8822_v63, %v4360_v48  ;;  %v4363_v60 = vsub.f32 %v8703_v50, %v4360_v48 }
 0x27a   : > { %v4379_v3 = vmul.f32 %v4361_v9, %v4361_v9  ;;  %v4380_v20 = vmul.f32 %v4362_v36, %v4362_v36  ;;  %v4382_v21 = vmul.f32 %v4364_v24, %v4364_v24  ;;  %v4383_v7 = vmul.f32 %v4365_v40, %v4365_v40 }
 0x27b   : > { %v5796_v57 = vadd.f32 %v5795_v37, %v5781_v14  ;;  %v4381_v38 = vmul.f32 %v4363_v60, %v4363_v60  ;;  %v4384_v25 = vmul.f32 %v4366_v35, %v4366_v35  ;;  %v4385_v19 = vmul.f32 %v4367_v61, %v4367_v61 }
 0x27c   : > { %v4395_v5 = vadd.f32 %v4380_v20, %v4379_v3  ;;  %v4386_v22 = vmul.f32 %v4368_v26, %v4368_v26  ;;  %v4387_v0 = vmul.f32 %v4369_v44, %v4369_v44  ;;  %v4388_v51 = vmul.f32 %v4370_v32, %v4370_v32 }
 0x27d   : > { %v5797_v30 = vadd.f32 %v5796_v57, %v5782_v1  ;;  %v4389_v23 = vmul.f32 %v4371_v53, %v4371_v53  ;;  %v4390_v56 = vmul.f32 %v4372_v2, %v4372_v2  ;;  %v4391_v17 = vmul.f32 %v4373_v18, %v4373_v18 }
 0x27e   : > { %v4396_v29 = vadd.f32 %v4395_v5, %v4381_v38  ;;  %v4392_v14 = vmul.f32 %v4374_v58, %v4374_v58  ;;  %v4393_v9 = vmul.f32 %v4375_v45, %v4375_v45  ;;  %v4394_v24 = vmul.f32 %v4376_v31, %v4376_v31 }
 0x27f   : > { %v5798_v34 = vadd.f32 %v5797_v30, %v5783_v59 }
 0x280   : > { %v4397_v11 = vadd.f32 %v4396_v29, %v4382_v21 }
 0x281   : > { %v5799_v33 = vadd.f32 %v5798_v34, %v5784_v13 }
 0x282   : > { %v4398_v50 = vadd.f32 %v4397_v11, %v4383_v7 }
 0x283   : > { %v5800_v16 = vadd.f32 %v5799_v33, %v5785_v43 }
 0x284   : > { %v4399_v28 = vadd.f32 %v4398_v50, %v4384_v25 }
 0x285   : > { %v5801_v63 = vadd.f32 %v5800_v16, %v5786_v47 }
 0x286   : > { %v4400_v6 = vadd.f32 %v4399_v28, %v4385_v19 }
 0x287   : > { %v5802_v62 = vadd.f32 %v5801_v63, %v5787_v15 }
 0x288   : > { %v4401_v41 = vadd.f32 %v4400_v6, %v4386_v22 }
 0x289   : > { %v5803_v27 = vadd.f32 %v5802_v62, %v5788_v8 }
 0x28a   : > { %v4402_v39 = vadd.f32 %v4401_v41, %v4387_v0 }
 0x28b   : > { %v5804_v12 = vrot.slane %v5803_v27, 4 }
 0x28c   : > { %v4403_v54 = vadd.f32 %v4402_v39, %v4388_v51 }
 0x28d   : > { %v5805_v46 = vadd.f32 %v5804_v12, %v5803_v27 }
 0x28e   : > { %v4404_v42 = vadd.f32 %v4403_v54, %v4389_v23 }
 0x28f   : > { %v5806_v4 = vrot.slane %v5805_v46, 2 }
 0x290   : > { %v4405_v48 = vadd.f32 %v4404_v42, %v4390_v56 }
 0x291   : > { %v5807_v49 = vadd.f32 %v5806_v4, %v5805_v46 }
 0x292   : > { %v4406_v10 = vadd.f32 %v4405_v48, %v4391_v17 }
 0x293   : > { %v5808_v55 = vrot.slane %v5807_v49, 1 }
 0x294   : > { %v4407_v36 = vadd.f32 %v4406_v10, %v4392_v14 }
 0x295   : > { %v5809_v52 = vadd.f32 %v5808_v55, %v5807_v49 }
 0x296   : > { %v4408_v40 = vadd.f32 %v4407_v36, %v4393_v9 }
 0x297   : > { %6345 = vst [vmem:[%s8668_s8 + $0x3] sm:$0x1] %v5809_v52 }
 0x298   : > { %v4409_v35 = vadd.f32 %v4408_v40, %v4394_v24 }
 0x29a   : > { %v4410_v61 = vrot.slane %v4409_v35, 4 }
 0x29c   : > { %v4411_v37 = vadd.f32 %v4410_v61, %v4409_v35 }
 0x29e   : > { %v4412_v26 = vrot.slane %v4411_v37, 2 }
 0x2a0   : > { %v4413_v44 = vadd.f32 %v4412_v26, %v4411_v37 }
 0x2a2   : > { %v4414_v32 = vrot.slane %v4413_v44, 1 }
 0x2a4   : > { %v4415_v53 = vadd.f32 %v4414_v32, %v4413_v44 }
 0x2a6   : > { %6258 = vst [vmem:[%s8668_s8 + $0x2] sm:$0x1] %v4415_v53 }
 0x2b9   : > { %v7109_v2 = vpop.trf.xlu1 }
 0x2ba   : > { %v7113_v18 = vunpack.i.h.bf16 %v7109_v2  ;;  %v7110_v1 = vunpack.i.l.bf16 %v7109_v2 }
 0x2bc   : > { %v5730_v58 = vpack.c.bf16 %v7113_v18, %v7113_v18  ;;  %v4336_v57 = vpack.c.bf16 %v7110_v1, %v7110_v1 }
 0x2be   : > { %6343 = vst [vmem:[%s8743_s13 + $0xc] sm:$0xf] %v5730_v58  ;;  %6256 = vst [vmem:[%s8743_s13 + $0x8] sm:$0xf] %v4336_v57 }
 0x2bf PF: > { %s17_s25 = sadd.s32 1, %s7178_s25   ;;  %s8922_s21 = smov %s7170_s23 }
 0x2c0   : > { %p14_p9 = scmp.ge.s32.totalorder %s17_s25, 6   ;;  %s8923_s22 = smov %s7174_s24 }
 0x2c1   : > { %s8924_s23 = smov %s8927_s26  ;;  %s8925_s24 = smov %s8931_s27 }
 0x2c2   :  { %16 = sbr.rel (!%p14_p9) target bundleno = 3 (0x3), region = 120 }

</bundles_post_ra>
